<compile_context>
chip_gen: v6e
topology: v6e:2x2x1
jax: 0.10.0
libtpu: 0.0.40
codegen_flags: <defaults>
</compile_context>

<pallas_src>
import math

import jax
import jax.numpy as jnp
from jax.experimental import pallas as pl
from jax.experimental.pallas import tpu as pltpu

# ---- model hyper-parameters (small, consistent with the module) ------------
D_MODEL = 48                 # must satisfy d_model % 3 == 0 and % NHEAD == 0
NHEAD = 4                    # head_dim = 12
NUM_LAYERS = 4
D_FF = 4 * D_MODEL           # TODO(synk): PyTorch default dim_feedforward=2048; scaled down with d_model
D3 = D_MODEL // 3
DH = D_MODEL // NHEAD
LN_EPS = 1e-5
NEG_INF = -1e30

B_TILE = 1                   # batch rows per grid block (>=2 blocks => megacore on v7x)

# 128-aligned lane regions inside the per-layer weight slab (L, D_MODEL, W_ENC)
OFF_QKV = 0      # [  0, 256): W_qkv (D, 3D)   real cols [  0, 144)
OFF_W1 = 256     # [256, 512): W_1   (D, D_FF) real cols [256, 448)
OFF_W2T = 512    # [512, 768): W_2^T (D, D_FF) real cols [512, 704)
OFF_WO = 768     # [768, 896): W_o   (D, D)    real cols [768, 816)
W_ENC = 896

# rows of the per-layer bias / LayerNorm slab (L, 8, 256)
ROW_BQKV, ROW_BO, ROW_LN1G, ROW_LN1B, ROW_B1, ROW_B2, ROW_LN2G, ROW_LN2B = range(8)

# rows of the misc slab (embeddings + fc_out head), shape (MISC_ROWS, D_MODEL)
#   [0:3)  W_emb rows (amount_w | type_delta | time_w)
#   [3:4)  b_emb      (amount_b + type_table[0] + time_b)
#   [8:56) fc1_w (48,24)   [56:57) fc1_b   [57:58) fc2_b   [64:88) fc2_w (24,1)
MISC_ROWS = 88


def _layernorm(x, g, b):
    mu = jnp.mean(x, axis=-1, keepdims=True)
    var = jnp.mean((x - mu) ** 2, axis=-1, keepdims=True)
    return (x - mu) * jax.lax.rsqrt(var + LN_EPS) * g + b


# ---------------------------------------------------------------------------
# Fused kernel: embeddings -> 4 post-norm encoder layers -> mean pool ->
# fc_out head -> sigmoid.  One grid step processes B_TILE batch elements;
# all weight slabs are VMEM-resident (constant index maps).
# ---------------------------------------------------------------------------
def fused_forward_kernel(feats_ref, kbias_ref, w_enc_ref, b_enc_ref, misc_ref, o_ref):
    BT, S, _ = feats_ref.shape
    R = BT * S                               # rows processed by this block
    D, H, dh = D_MODEL, NHEAD, DH
    scale = 1.0 / math.sqrt(dh)

    # ---- input embeddings: [amount | type | time] columns -> (R, D) -------
    feats = feats_ref[...].reshape(R, 3)
    w_emb = misc_ref[0:3, :]                 # (3, D)
    b_emb = misc_ref[3:4, :]                 # (1, D)
    x = (feats[:, 0:1] * w_emb[0:1, :]       # Linear(1, d3) on amounts
         + feats[:, 1:2] * w_emb[1:2, :]     # Embedding(2, d3): tbl0 + t*(tbl1-tbl0)
         + feats[:, 2:3] * w_emb[2:3, :]     # Linear(1, d3) on timestamps
         + b_emb)                            # (R, D) f32

    # key-padding bias, broadcast across heads ONCE (hoisted out of layer loop)
    kb = jnp.broadcast_to(kbias_ref[...].reshape(1, BT, S, S),
                          (H, BT, S, S)).reshape(H * BT, S, S)

    for l in range(NUM_LAYERS):              # static unroll (4 layers)
        wqkv = w_enc_ref[l, :, OFF_QKV:OFF_QKV + 256]   # (D, 256) bf16 (zero-padded)
        w1   = w_enc_ref[l, :, OFF_W1:OFF_W1 + 256]     # (D, 256) bf16
        w2t  = w_enc_ref[l, :, OFF_W2T:OFF_W2T + 256]   # (D, 256) bf16 = W_2^T
        wo   = w_enc_ref[l, :, OFF_WO:OFF_WO + D]       # (D, D)   bf16

        b_qkv = b_enc_ref[l, ROW_BQKV:ROW_BQKV + 1, :]      # (1, 256), zero-padded
        b_o   = b_enc_ref[l, ROW_BO:ROW_BO + 1, 0:D]
        ln1_g = b_enc_ref[l, ROW_LN1G:ROW_LN1G + 1, 0:D]
        ln1_b = b_enc_ref[l, ROW_LN1B:ROW_LN1B + 1, 0:D]
        b_1   = b_enc_ref[l, ROW_B1:ROW_B1 + 1, :]          # (1, 256), zero-padded
        b_2   = b_enc_ref[l, ROW_B2:ROW_B2 + 1, 0:D]
        ln2_g = b_enc_ref[l, ROW_LN2G:ROW_LN2G + 1, 0:D]
        ln2_b = b_enc_ref[l, ROW_LN2B:ROW_LN2B + 1, 0:D]

        # ---- fused QKV projection: ONE matmul per layer --------------------
        qkv = jnp.dot(x.astype(jnp.bfloat16), wqkv,
                      preferred_element_type=jnp.float32) + b_qkv   # (R, 256)

        # head-batched q/k/v: (H*BT, S, dh), batch index = h*BT + b
        def split_heads(base):
            parts = [qkv[:, base + h * dh: base + (h + 1) * dh].reshape(BT, S, dh)
                     for h in range(H)]
            return jnp.concatenate(parts, axis=0)
        q = split_heads(0)
        k = split_heads(D)
        v = split_heads(2 * D)

        # ---- attention scores + ONE softmax for all heads ------------------
        s = jnp.einsum('bqd,bkd->bqk', q, k,
                       preferred_element_type=jnp.float32) * scale   # (H*BT, S, S)
        s = s + kb
        s = s - jnp.max(s, axis=-1, keepdims=True)
        p = jnp.exp(s)
        p = p * pl.reciprocal(jnp.sum(p, axis=-1, keepdims=True), approx=True)
        ctx = jnp.einsum('bqk,bkd->bqd', p, v,
                         preferred_element_type=jnp.float32)         # (H*BT, S, dh)

        # concat heads along lanes -> (R, D), then ONE output projection
        ctx4 = ctx.reshape(H, BT, S, dh)
        ctx_cat = jnp.concatenate([ctx4[h].reshape(R, dh) for h in range(H)], axis=-1)
        attn = jnp.dot(ctx_cat.astype(jnp.bfloat16), wo,
                       preferred_element_type=jnp.float32) + b_o     # (R, D)

        # ---- residual + LayerNorm1 (post-norm) -----------------------------
        h1 = _layernorm(x + attn, ln1_g, ln1_b)

        # ---- feed-forward (Linear -> ReLU -> Linear); dropout = identity ---
        f = jnp.dot(h1.astype(jnp.bfloat16), w1,
                    preferred_element_type=jnp.float32) + b_1        # (R, 256)
        f = jnp.maximum(f, 0.0)
        # f @ W2 expressed as a contraction of the lane dims with W2^T
        # (padded lanes of w2t are zero, so the extra columns contribute 0).
        f2 = jax.lax.dot_general(f.astype(jnp.bfloat16), w2t,
                                 dimension_numbers=(((1,), (1,)), ((), ())),
                                 preferred_element_type=jnp.float32) + b_2

        # ---- residual + LayerNorm2 ------------------------------------------
        x = _layernorm(h1 + f2, ln2_g, ln2_b)

    # ---- mean over sequence (unmasked: matches PyTorch x.mean(dim=0)) -------
    pooled = jnp.mean(x.reshape(BT, S, D), axis=1)                   # (BT, D)

    # ---- fc_out head: Linear -> ReLU -> Linear -> Sigmoid -------------------
    fc1_w = misc_ref[8:56, 0:D_MODEL // 2]
    fc1_b = misc_ref[56:57, 0:D_MODEL // 2]
    fc2_w = misc_ref[64:88, 0:1]
    fc2_b = misc_ref[57:58, 0:1]
    hd = jnp.dot(pooled, fc1_w, preferred_element_type=jnp.float32) + fc1_b
    hd = jnp.maximum(hd, 0.0)
    y = jnp.dot(hd, fc2_w, preferred_element_type=jnp.float32) + fc2_b
    o_ref[...] = (1.0 / (1.0 + jnp.exp(-y))).reshape(BT, 1, 1)


# ---------------------------------------------------------------------------
# One-time parameter packing (run at model-load time, OUTSIDE the jit).
# ---------------------------------------------------------------------------
def pack_params(params):
    L, D = NUM_LAYERS, D_MODEL
    w_enc = jnp.zeros((L, D, W_ENC), jnp.float32)
    b_enc = jnp.zeros((L, 8, 256), jnp.float32)
    for l, lp in enumerate(params['layers']):
        w_enc = w_enc.at[l, :, OFF_QKV:OFF_QKV + 3 * D].set(lp['wqkv'])
        w_enc = w_enc.at[l, :, OFF_W1:OFF_W1 + D_FF].set(lp['w1'])
        w_enc = w_enc.at[l, :, OFF_W2T:OFF_W2T + D_FF].set(lp['w2'].T)
        w_enc = w_enc.at[l, :, OFF_WO:OFF_WO + D].set(lp['wo'])
        b_enc = b_enc.at[l, ROW_BQKV, 0:3 * D].set(lp['bqkv'][0])
        b_enc = b_enc.at[l, ROW_BO, 0:D].set(lp['bo'][0])
        b_enc = b_enc.at[l, ROW_LN1G, 0:D].set(lp['ln1_g'][0])
        b_enc = b_enc.at[l, ROW_LN1B, 0:D].set(lp['ln1_b'][0])
        b_enc = b_enc.at[l, ROW_B1, 0:D_FF].set(lp['b1'][0])
        b_enc = b_enc.at[l, ROW_B2, 0:D].set(lp['b2'][0])
        b_enc = b_enc.at[l, ROW_LN2G, 0:D].set(lp['ln2_g'][0])
        b_enc = b_enc.at[l, ROW_LN2B, 0:D].set(lp['ln2_b'][0])

    misc = jnp.zeros((MISC_ROWS, D), jnp.float32)
    misc = misc.at[0, 0:D3].set(params['emb_amount_w'][0])
    misc = misc.at[1, D3:2 * D3].set(params['emb_type_table'][1] - params['emb_type_table'][0])
    misc = misc.at[2, 2 * D3:3 * D3].set(params['emb_time_w'][0])
    misc = misc.at[3, 0:D3].set(params['emb_amount_b'][0])
    misc = misc.at[3, D3:2 * D3].set(params['emb_type_table'][0])
    misc = misc.at[3, 2 * D3:3 * D3].set(params['emb_time_b'][0])
    misc = misc.at[8:56, 0:D // 2].set(params['fc1_w'])
    misc = misc.at[56, 0:D // 2].set(params['fc1_b'][0])
    misc = misc.at[57, 0].set(params['fc2_b'][0, 0])
    misc = misc.at[64:88, 0].set(params['fc2_w'][:, 0])

    return {
        'w_enc': w_enc.astype(jnp.bfloat16),   # bf16 at the MXU: halves DMA / VMEM
        'b_enc': b_enc,                        # biases / LayerNorm stay f32
        'misc': misc,                          # embeddings + fc_out head, f32
    }


# ---------------------------------------------------------------------------
# Parameter init (deterministic, synthetic; natural PyTorch-like shapes)
# ---------------------------------------------------------------------------
def init_params(key):
    n_keys = 16 + NUM_LAYERS * 8
    keys = iter(jax.random.split(key, n_keys))

    def dense(shape, scale=0.1):
        return (scale * jax.random.normal(next(keys), shape)).astype(jnp.float32)

    params = {
        'emb_amount_w': dense((1, D3)),
        'emb_amount_b': dense((1, D3)),
        'emb_type_table': dense((2, D3)),
        'emb_time_w': dense((1, D3)),
        'emb_time_b': dense((1, D3)),
        'fc1_w': dense((D_MODEL, D_MODEL // 2)),
        'fc1_b': dense((1, D_MODEL // 2)),
        'fc2_w': dense((D_MODEL // 2, 1)),
        'fc2_b': dense((1, 1)),
        'layers': [],
    }
    for _ in range(NUM_LAYERS):
        lp = {
            'wqkv': dense((D_MODEL, 3 * D_MODEL)),
            'bqkv': dense((1, 3 * D_MODEL)),
            'wo': dense((D_MODEL, D_MODEL)),
            'bo': dense((1, D_MODEL)),
            'ln1_g': jnp.ones((1, D_MODEL), jnp.float32),
            'ln1_b': jnp.zeros((1, D_MODEL), jnp.float32),
            'w1': dense((D_MODEL, D_FF)),
            'b1': dense((1, D_FF)),
            'w2': dense((D_FF, D_MODEL)),
            'b2': dense((1, D_MODEL)),
            'ln2_g': jnp.ones((1, D_MODEL), jnp.float32),
            'ln2_b': jnp.zeros((1, D_MODEL), jnp.float32),
        }
        params['layers'].append(lp)
    return params


# ---------------------------------------------------------------------------
# Full forward pass (matches TransactionTransformer.forward at inference).
# `packed` comes from pack_params() and is produced once, outside this jit.
# ---------------------------------------------------------------------------
@jax.jit
def transaction_transformer_forward(packed, amounts, types, timestamps, attention_mask):
    B, S = amounts.shape
    # cheap per-call input prep (input-dependent, cannot be hoisted further)
    feats = jnp.stack([amounts.astype(jnp.float32),
                       types.astype(jnp.float32),
                       timestamps.astype(jnp.float32)], axis=-1)        # (B, S, 3)
    # PyTorch src_key_padding_mask = ~attention_mask (True = pad); broadcast once
    kbias = jnp.broadcast_to(
        ((attention_mask == 0).astype(jnp.float32) * NEG_INF)[:, None, :],
        (B, S, S))                                                       # (B, S, S)

    out = pl.pallas_call(
        fused_forward_kernel,
        out_shape=jax.ShapeDtypeStruct((B, 1, 1), jnp.float32),
        grid=(B // B_TILE,),
        in_specs=[
            pl.BlockSpec((B_TILE, S, 3), lambda b: (b, 0, 0)),           # features
            pl.BlockSpec((B_TILE, S, S), lambda b: (b, 0, 0)),           # key bias
            pl.BlockSpec((NUM_LAYERS, D_MODEL, W_ENC), lambda b: (0, 0, 0)),  # weights
            pl.BlockSpec((NUM_LAYERS, 8, 256), lambda b: (0, 0, 0)),     # bias / LN
            pl.BlockSpec((MISC_ROWS, D_MODEL), lambda b: (0, 0)),        # emb + head
        ],
        out_specs=pl.BlockSpec((B_TILE, 1, 1), lambda b: (b, 0, 0)),
        compiler_params=pltpu.CompilerParams(
            dimension_semantics=("parallel",),     # megacore sharding on v7x
            # total footprint ~1 MiB; budgeted well under v7x's 64 MiB VMEM
            vmem_limit_bytes=32 * 1024 * 1024),
    )(feats, kbias, packed['w_enc'], packed['b_enc'], packed['misc'])
    return out.reshape(B, 1)


# ---------------------------------------------------------------------------
if __name__ == "__main__":
    assert D_MODEL % 3 == 0 and D_MODEL % NHEAD == 0

    B, S = 2, 8
    assert B % B_TILE == 0
    key = jax.random.PRNGKey(0)
    k_params, k_amt, k_typ, k_time = jax.random.split(key, 4)

    params = init_params(k_params)
    packed = pack_params(params)          # one-time packing, OUTSIDE the jitted forward
    packed = jax.tree_util.tree_map(jax.block_until_ready, packed)

    amounts = jax.random.normal(k_amt, (B, S), dtype=jnp.float32)
    types = jax.random.randint(k_typ, (B, S), 0, 2, dtype=jnp.int32)
    timestamps = jax.random.uniform(k_time, (B, S), dtype=jnp.float32)
    attention_mask = jnp.array(
        [[1, 1, 1, 1, 1, 1, 1, 1],
         [1, 1, 1, 1, 1, 0, 0, 0]], dtype=jnp.int32)

    out = transaction_transformer_forward(packed, amounts, types, timestamps, attention_mask)
    out = jax.block_until_ready(out)

    assert out.shape == (B, 1), out.shape
    assert bool(jnp.all(jnp.isfinite(out)))
    assert bool(jnp.all((out > 0.0) & (out < 1.0)))
    print("KERNEL_OK")
</pallas_src>

<mosaic_0001>
module attributes {stable_mosaic.version = 11 : i64} {
  func.func @fused_forward_kernel(%arg0: i32, %arg1: memref<1x8x3xf32, #tpu.memory_space<vmem>>, %arg2: memref<1x8x8xf32, #tpu.memory_space<vmem>>, %arg3: memref<4x48x896xbf16, #tpu.memory_space<vmem>>, %arg4: memref<4x8x256xf32, #tpu.memory_space<vmem>>, %arg5: memref<88x48xf32, #tpu.memory_space<vmem>>, %arg6: memref<1x1x1xf32, #tpu.memory_space<vmem>>) attributes {dimension_semantics = [#tpu.dimension_semantics<parallel>], iteration_bounds = array<i64: 2>, scalar_prefetch = 0 : i64, scratch_operands = 0 : i64, tpu.core_type = #tpu.core_type<tc>, window_params = [{transform_indices = @transform_0, window_bounds = array<i64: 1, 8, 3>}, {transform_indices = @transform_1, window_bounds = array<i64: 1, 8, 8>}, {pipeline_mode = #tpu.pipeline_mode<synchronous>, transform_indices = @transform_2, window_bounds = array<i64: 4, 48, 896>}, {pipeline_mode = #tpu.pipeline_mode<synchronous>, transform_indices = @transform_3, window_bounds = array<i64: 4, 8, 256>}, {pipeline_mode = #tpu.pipeline_mode<synchronous>, transform_indices = @transform_4, window_bounds = array<i64: 88, 48>}, {transform_indices = @transform_5, window_bounds = array<i64: 1, 1, 1>}]} {
    %c0 = arith.constant 0 : index
    %c0_0 = arith.constant 0 : index
    %c0_1 = arith.constant 0 : index
    %0 = vector.load %arg1[%c0, %c0_0, %c0_1] : memref<1x8x3xf32, #tpu.memory_space<vmem>>, vector<1x8x3xf32>
    %1 = vector.shape_cast %0 : vector<1x8x3xf32> to vector<8x3xf32>
    %c0_2 = arith.constant 0 : index
    %c0_3 = arith.constant 0 : index
    %2 = vector.load %arg5[%c0_2, %c0_3] : memref<88x48xf32, #tpu.memory_space<vmem>>, vector<3x48xf32>
    %c3 = arith.constant 3 : index
    %c0_4 = arith.constant 0 : index
    %3 = vector.load %arg5[%c3, %c0_4] : memref<88x48xf32, #tpu.memory_space<vmem>>, vector<1x48xf32>
    %4 = vector.extract_strided_slice %1 {offsets = [0, 0], sizes = [8, 1], strides = [1, 1]} : vector<8x3xf32> to vector<8x1xf32>
    %5 = vector.extract_strided_slice %2 {offsets = [0, 0], sizes = [1, 48], strides = [1, 1]} : vector<3x48xf32> to vector<1x48xf32>
    %6 = vector.broadcast %4 : vector<8x1xf32> to vector<8x48xf32>
    %7 = vector.broadcast %5 : vector<1x48xf32> to vector<8x48xf32>
    %8 = arith.mulf %6, %7 : vector<8x48xf32>
    %9 = vector.extract_strided_slice %1 {offsets = [0, 1], sizes = [8, 1], strides = [1, 1]} : vector<8x3xf32> to vector<8x1xf32>
    %10 = vector.extract_strided_slice %2 {offsets = [1, 0], sizes = [1, 48], strides = [1, 1]} : vector<3x48xf32> to vector<1x48xf32>
    %11 = vector.broadcast %9 : vector<8x1xf32> to vector<8x48xf32>
    %12 = vector.broadcast %10 : vector<1x48xf32> to vector<8x48xf32>
    %13 = arith.mulf %11, %12 : vector<8x48xf32>
    %14 = arith.addf %8, %13 : vector<8x48xf32>
    %15 = vector.extract_strided_slice %1 {offsets = [0, 2], sizes = [8, 1], strides = [1, 1]} : vector<8x3xf32> to vector<8x1xf32>
    %16 = vector.extract_strided_slice %2 {offsets = [2, 0], sizes = [1, 48], strides = [1, 1]} : vector<3x48xf32> to vector<1x48xf32>
    %17 = vector.broadcast %15 : vector<8x1xf32> to vector<8x48xf32>
    %18 = vector.broadcast %16 : vector<1x48xf32> to vector<8x48xf32>
    %19 = arith.mulf %17, %18 : vector<8x48xf32>
    %20 = arith.addf %14, %19 : vector<8x48xf32>
    %21 = vector.broadcast %3 : vector<1x48xf32> to vector<8x48xf32>
    %22 = arith.addf %20, %21 : vector<8x48xf32>
    %c0_5 = arith.constant 0 : index
    %c0_6 = arith.constant 0 : index
    %c0_7 = arith.constant 0 : index
    %23 = vector.load %arg2[%c0_5, %c0_6, %c0_7] : memref<1x8x8xf32, #tpu.memory_space<vmem>>, vector<1x8x8xf32>
    %24 = vector.shape_cast %23 : vector<1x8x8xf32> to vector<1x1x8x8xf32>
    %25 = vector.shape_cast %24 : vector<1x1x8x8xf32> to vector<1x1x8x8xf32>
    %26 = vector.broadcast %25 : vector<1x1x8x8xf32> to vector<4x1x8x8xf32>
    %27 = vector.shape_cast %26 : vector<4x1x8x8xf32> to vector<4x8x8xf32>
    %c0_8 = arith.constant 0 : index
    %c0_9 = arith.constant 0 : index
    %c0_10 = arith.constant 0 : index
    %28 = vector.load %arg3[%c0_8, %c0_9, %c0_10] : memref<4x48x896xbf16, #tpu.memory_space<vmem>>, vector<1x48x256xbf16>
    %29 = vector.shape_cast %28 : vector<1x48x256xbf16> to vector<48x256xbf16>
    %c0_11 = arith.constant 0 : index
    %c0_12 = arith.constant 0 : index
    %c256 = arith.constant 256 : index
    %30 = vector.load %arg3[%c0_11, %c0_12, %c256] : memref<4x48x896xbf16, #tpu.memory_space<vmem>>, vector<1x48x256xbf16>
    %31 = vector.shape_cast %30 : vector<1x48x256xbf16> to vector<48x256xbf16>
    %c0_13 = arith.constant 0 : index
    %c0_14 = arith.constant 0 : index
    %c512 = arith.constant 512 : index
    %32 = vector.load %arg3[%c0_13, %c0_14, %c512] : memref<4x48x896xbf16, #tpu.memory_space<vmem>>, vector<1x48x256xbf16>
    %33 = vector.shape_cast %32 : vector<1x48x256xbf16> to vector<48x256xbf16>
    %c0_15 = arith.constant 0 : index
    %c0_16 = arith.constant 0 : index
    %c768 = arith.constant 768 : index
    %34 = vector.load %arg3[%c0_15, %c0_16, %c768] : memref<4x48x896xbf16, #tpu.memory_space<vmem>>, vector<1x48x48xbf16>
    %35 = vector.shape_cast %34 : vector<1x48x48xbf16> to vector<48x48xbf16>
    %c0_17 = arith.constant 0 : index
    %c0_18 = arith.constant 0 : index
    %c0_19 = arith.constant 0 : index
    %36 = vector.load %arg4[%c0_17, %c0_18, %c0_19] : memref<4x8x256xf32, #tpu.memory_space<vmem>>, vector<1x1x256xf32>
    %37 = vector.shape_cast %36 : vector<1x1x256xf32> to vector<1x256xf32>
    %c0_20 = arith.constant 0 : index
    %c1 = arith.constant 1 : index
    %c0_21 = arith.constant 0 : index
    %38 = vector.load %arg4[%c0_20, %c1, %c0_21] : memref<4x8x256xf32, #tpu.memory_space<vmem>>, vector<1x1x48xf32>
    %39 = vector.shape_cast %38 : vector<1x1x48xf32> to vector<1x48xf32>
    %c0_22 = arith.constant 0 : index
    %c2 = arith.constant 2 : index
    %c0_23 = arith.constant 0 : index
    %40 = vector.load %arg4[%c0_22, %c2, %c0_23] : memref<4x8x256xf32, #tpu.memory_space<vmem>>, vector<1x1x48xf32>
    %41 = vector.shape_cast %40 : vector<1x1x48xf32> to vector<1x48xf32>
    %c0_24 = arith.constant 0 : index
    %c3_25 = arith.constant 3 : index
    %c0_26 = arith.constant 0 : index
    %42 = vector.load %arg4[%c0_24, %c3_25, %c0_26] : memref<4x8x256xf32, #tpu.memory_space<vmem>>, vector<1x1x48xf32>
    %43 = vector.shape_cast %42 : vector<1x1x48xf32> to vector<1x48xf32>
    %c0_27 = arith.constant 0 : index
    %c4 = arith.constant 4 : index
    %c0_28 = arith.constant 0 : index
    %44 = vector.load %arg4[%c0_27, %c4, %c0_28] : memref<4x8x256xf32, #tpu.memory_space<vmem>>, vector<1x1x256xf32>
    %45 = vector.shape_cast %44 : vector<1x1x256xf32> to vector<1x256xf32>
    %c0_29 = arith.constant 0 : index
    %c5 = arith.constant 5 : index
    %c0_30 = arith.constant 0 : index
    %46 = vector.load %arg4[%c0_29, %c5, %c0_30] : memref<4x8x256xf32, #tpu.memory_space<vmem>>, vector<1x1x48xf32>
    %47 = vector.shape_cast %46 : vector<1x1x48xf32> to vector<1x48xf32>
    %c0_31 = arith.constant 0 : index
    %c6 = arith.constant 6 : index
    %c0_32 = arith.constant 0 : index
    %48 = vector.load %arg4[%c0_31, %c6, %c0_32] : memref<4x8x256xf32, #tpu.memory_space<vmem>>, vector<1x1x48xf32>
    %49 = vector.shape_cast %48 : vector<1x1x48xf32> to vector<1x48xf32>
    %c0_33 = arith.constant 0 : index
    %c7 = arith.constant 7 : index
    %c0_34 = arith.constant 0 : index
    %50 = vector.load %arg4[%c0_33, %c7, %c0_34] : memref<4x8x256xf32, #tpu.memory_space<vmem>>, vector<1x1x48xf32>
    %51 = vector.shape_cast %50 : vector<1x1x48xf32> to vector<1x48xf32>
    %52 = arith.truncf %22 : vector<8x48xf32> to vector<8x48xbf16>
    %cst = arith.constant dense<0.000000e+00> : vector<8x256xf32>
    %53 = tpu.matmul %52, %29, %cst {dimension_numbers = #tpu.dot_dimension_numbers<[1], [0], [0], [1], [0, 0, 1, 1], [], []>} : vector<8x48xbf16>, vector<48x256xbf16>, vector<8x256xf32> -> vector<8x256xf32>
    %54 = vector.broadcast %37 : vector<1x256xf32> to vector<8x256xf32>
    %55 = arith.addf %53, %54 : vector<8x256xf32>
    %56 = vector.extract_strided_slice %55 {offsets = [0, 0], sizes = [8, 12], strides = [1, 1]} : vector<8x256xf32> to vector<8x12xf32>
    %57 = vector.shape_cast %56 : vector<8x12xf32> to vector<1x8x12xf32>
    %58 = vector.extract_strided_slice %55 {offsets = [0, 12], sizes = [8, 12], strides = [1, 1]} : vector<8x256xf32> to vector<8x12xf32>
    %59 = vector.shape_cast %58 : vector<8x12xf32> to vector<1x8x12xf32>
    %60 = vector.extract_strided_slice %55 {offsets = [0, 24], sizes = [8, 12], strides = [1, 1]} : vector<8x256xf32> to vector<8x12xf32>
    %61 = vector.shape_cast %60 : vector<8x12xf32> to vector<1x8x12xf32>
    %62 = vector.extract_strided_slice %55 {offsets = [0, 36], sizes = [8, 12], strides = [1, 1]} : vector<8x256xf32> to vector<8x12xf32>
    %63 = vector.shape_cast %62 : vector<8x12xf32> to vector<1x8x12xf32>
    %64 = tpu.concatenate %57, %59, %61, %63 in 0 : vector<1x8x12xf32>, vector<1x8x12xf32>, vector<1x8x12xf32>, vector<1x8x12xf32> -> vector<4x8x12xf32>
    %65 = vector.extract_strided_slice %55 {offsets = [0, 48], sizes = [8, 12], strides = [1, 1]} : vector<8x256xf32> to vector<8x12xf32>
    %66 = vector.shape_cast %65 : vector<8x12xf32> to vector<1x8x12xf32>
    %67 = vector.extract_strided_slice %55 {offsets = [0, 60], sizes = [8, 12], strides = [1, 1]} : vector<8x256xf32> to vector<8x12xf32>
    %68 = vector.shape_cast %67 : vector<8x12xf32> to vector<1x8x12xf32>
    %69 = vector.extract_strided_slice %55 {offsets = [0, 72], sizes = [8, 12], strides = [1, 1]} : vector<8x256xf32> to vector<8x12xf32>
    %70 = vector.shape_cast %69 : vector<8x12xf32> to vector<1x8x12xf32>
    %71 = vector.extract_strided_slice %55 {offsets = [0, 84], sizes = [8, 12], strides = [1, 1]} : vector<8x256xf32> to vector<8x12xf32>
    %72 = vector.shape_cast %71 : vector<8x12xf32> to vector<1x8x12xf32>
    %73 = tpu.concatenate %66, %68, %70, %72 in 0 : vector<1x8x12xf32>, vector<1x8x12xf32>, vector<1x8x12xf32>, vector<1x8x12xf32> -> vector<4x8x12xf32>
    %74 = vector.extract_strided_slice %55 {offsets = [0, 96], sizes = [8, 12], strides = [1, 1]} : vector<8x256xf32> to vector<8x12xf32>
    %75 = vector.shape_cast %74 : vector<8x12xf32> to vector<1x8x12xf32>
    %76 = vector.extract_strided_slice %55 {offsets = [0, 108], sizes = [8, 12], strides = [1, 1]} : vector<8x256xf32> to vector<8x12xf32>
    %77 = vector.shape_cast %76 : vector<8x12xf32> to vector<1x8x12xf32>
    %78 = vector.extract_strided_slice %55 {offsets = [0, 120], sizes = [8, 12], strides = [1, 1]} : vector<8x256xf32> to vector<8x12xf32>
    %79 = vector.shape_cast %78 : vector<8x12xf32> to vector<1x8x12xf32>
    %80 = vector.extract_strided_slice %55 {offsets = [0, 132], sizes = [8, 12], strides = [1, 1]} : vector<8x256xf32> to vector<8x12xf32>
    %81 = vector.shape_cast %80 : vector<8x12xf32> to vector<1x8x12xf32>
    %82 = tpu.concatenate %75, %77, %79, %81 in 0 : vector<1x8x12xf32>, vector<1x8x12xf32>, vector<1x8x12xf32>, vector<1x8x12xf32> -> vector<4x8x12xf32>
    "tpu.trace_start"() <{level = 10 : i32, message = "bqd,bkd->bqk"}> : () -> ()
    %cst_35 = arith.constant dense<0.000000e+00> : vector<4x8x8xf32>
    %83 = tpu.matmul %64, %73, %cst_35 {dimension_numbers = #tpu.dot_dimension_numbers<[2], [2], [1], [1], [0, 0, 0, 1, 1, 1], [0], [0]>} : vector<4x8x12xf32>, vector<4x8x12xf32>, vector<4x8x8xf32> -> vector<4x8x8xf32>
    "tpu.trace_stop"() : () -> ()
    %cst_36 = arith.constant 0.288675129 : f32
    %84 = vector.broadcast %cst_36 : f32 to vector<4x8x8xf32>
    %85 = arith.mulf %83, %84 : vector<4x8x8xf32>
    %86 = arith.addf %85, %27 : vector<4x8x8xf32>
    %cst_37 = arith.constant dense<0xFF800000> : vector<4x8xf32>
    %87 = vector.multi_reduction <maximumf>, %86, %cst_37 [2] : vector<4x8x8xf32> to vector<4x8xf32>
    %88 = vector.shape_cast %87 : vector<4x8xf32> to vector<4x8x1xf32>
    %89 = vector.broadcast %88 : vector<4x8x1xf32> to vector<4x8x8xf32>
    %90 = arith.subf %86, %89 : vector<4x8x8xf32>
    %91 = math.exp %90 : vector<4x8x8xf32>
    %cst_38 = arith.constant dense<0.000000e+00> : vector<4x8xf32>
    %92 = vector.multi_reduction <add>, %91, %cst_38 [2] : vector<4x8x8xf32> to vector<4x8xf32>
    %93 = vector.shape_cast %92 : vector<4x8xf32> to vector<4x8x1xf32>
    %94 = tpu.reciprocal %93 {approx = true} : vector<4x8x1xf32> -> vector<4x8x1xf32>
    %95 = vector.broadcast %94 : vector<4x8x1xf32> to vector<4x8x8xf32>
    %96 = arith.mulf %91, %95 : vector<4x8x8xf32>
    "tpu.trace_start"() <{level = 10 : i32, message = "bqk,bkd->bqd"}> : () -> ()
    %cst_39 = arith.constant dense<0.000000e+00> : vector<4x8x12xf32>
    %97 = tpu.matmul %96, %82, %cst_39 {dimension_numbers = #tpu.dot_dimension_numbers<[2], [1], [1], [2], [0, 0, 0, 1, 1, 2], [0], [0]>} : vector<4x8x8xf32>, vector<4x8x12xf32>, vector<4x8x12xf32> -> vector<4x8x12xf32>
    "tpu.trace_stop"() : () -> ()
    %98 = vector.shape_cast %97 : vector<4x8x12xf32> to vector<4x1x8x12xf32>
    %99 = vector.extract_strided_slice %98 {offsets = [0, 0, 0, 0], sizes = [1, 1, 8, 12], strides = [1, 1, 1, 1]} : vector<4x1x8x12xf32> to vector<1x1x8x12xf32>
    %100 = vector.shape_cast %99 : vector<1x1x8x12xf32> to vector<1x8x12xf32>
    %101 = vector.shape_cast %100 : vector<1x8x12xf32> to vector<8x12xf32>
    %102 = vector.extract_strided_slice %98 {offsets = [1, 0, 0, 0], sizes = [1, 1, 8, 12], strides = [1, 1, 1, 1]} : vector<4x1x8x12xf32> to vector<1x1x8x12xf32>
    %103 = vector.shape_cast %102 : vector<1x1x8x12xf32> to vector<1x8x12xf32>
    %104 = vector.shape_cast %103 : vector<1x8x12xf32> to vector<8x12xf32>
    %105 = vector.extract_strided_slice %98 {offsets = [2, 0, 0, 0], sizes = [1, 1, 8, 12], strides = [1, 1, 1, 1]} : vector<4x1x8x12xf32> to vector<1x1x8x12xf32>
    %106 = vector.shape_cast %105 : vector<1x1x8x12xf32> to vector<1x8x12xf32>
    %107 = vector.shape_cast %106 : vector<1x8x12xf32> to vector<8x12xf32>
    %108 = vector.extract_strided_slice %98 {offsets = [3, 0, 0, 0], sizes = [1, 1, 8, 12], strides = [1, 1, 1, 1]} : vector<4x1x8x12xf32> to vector<1x1x8x12xf32>
    %109 = vector.shape_cast %108 : vector<1x1x8x12xf32> to vector<1x8x12xf32>
    %110 = vector.shape_cast %109 : vector<1x8x12xf32> to vector<8x12xf32>
    %111 = tpu.concatenate %101, %104, %107, %110 in 1 : vector<8x12xf32>, vector<8x12xf32>, vector<8x12xf32>, vector<8x12xf32> -> vector<8x48xf32>
    %112 = arith.truncf %111 : vector<8x48xf32> to vector<8x48xbf16>
    %cst_40 = arith.constant dense<0.000000e+00> : vector<8x48xf32>
    %113 = tpu.matmul %112, %35, %cst_40 {dimension_numbers = #tpu.dot_dimension_numbers<[1], [0], [0], [1], [0, 0, 1, 1], [], []>} : vector<8x48xbf16>, vector<48x48xbf16>, vector<8x48xf32> -> vector<8x48xf32>
    %114 = vector.broadcast %39 : vector<1x48xf32> to vector<8x48xf32>
    %115 = arith.addf %113, %114 : vector<8x48xf32>
    %116 = arith.addf %22, %115 : vector<8x48xf32>
    %cst_41 = arith.constant dense<0.000000e+00> : vector<8xf32>
    %117 = vector.multi_reduction <add>, %116, %cst_41 [1] : vector<8x48xf32> to vector<8xf32>
    %118 = vector.shape_cast %117 : vector<8xf32> to vector<8x1xf32>
    %cst_42 = arith.constant 4.800000e+01 : f32
    %119 = vector.broadcast %cst_42 : f32 to vector<8x1xf32>
    %120 = arith.divf %118, %119 : vector<8x1xf32>
    %121 = vector.broadcast %120 : vector<8x1xf32> to vector<8x48xf32>
    %122 = arith.subf %116, %121 : vector<8x48xf32>
    %123 = arith.mulf %122, %122 : vector<8x48xf32>
    %cst_43 = arith.constant dense<0.000000e+00> : vector<8xf32>
    %124 = vector.multi_reduction <add>, %123, %cst_43 [1] : vector<8x48xf32> to vector<8xf32>
    %125 = vector.shape_cast %124 : vector<8xf32> to vector<8x1xf32>
    %cst_44 = arith.constant 4.800000e+01 : f32
    %126 = vector.broadcast %cst_44 : f32 to vector<8x1xf32>
    %127 = arith.divf %125, %126 : vector<8x1xf32>
    %128 = vector.broadcast %120 : vector<8x1xf32> to vector<8x48xf32>
    %129 = arith.subf %116, %128 : vector<8x48xf32>
    %cst_45 = arith.constant 9.99999974E-6 : f32
    %130 = vector.broadcast %cst_45 : f32 to vector<8x1xf32>
    %131 = arith.addf %127, %130 : vector<8x1xf32>
    %132 = math.rsqrt %131 : vector<8x1xf32>
    %133 = vector.broadcast %132 : vector<8x1xf32> to vector<8x48xf32>
    %134 = arith.mulf %129, %133 : vector<8x48xf32>
    %135 = vector.broadcast %41 : vector<1x48xf32> to vector<8x48xf32>
    %136 = arith.mulf %134, %135 : vector<8x48xf32>
    %137 = vector.broadcast %43 : vector<1x48xf32> to vector<8x48xf32>
    %138 = arith.addf %136, %137 : vector<8x48xf32>
    %139 = arith.truncf %138 : vector<8x48xf32> to vector<8x48xbf16>
    %cst_46 = arith.constant dense<0.000000e+00> : vector<8x256xf32>
    %140 = tpu.matmul %139, %31, %cst_46 {dimension_numbers = #tpu.dot_dimension_numbers<[1], [0], [0], [1], [0, 0, 1, 1], [], []>} : vector<8x48xbf16>, vector<48x256xbf16>, vector<8x256xf32> -> vector<8x256xf32>
    %141 = vector.broadcast %45 : vector<1x256xf32> to vector<8x256xf32>
    %142 = arith.addf %140, %141 : vector<8x256xf32>
    %cst_47 = arith.constant 0.000000e+00 : f32
    %143 = vector.broadcast %cst_47 : f32 to vector<8x256xf32>
    %144 = arith.maximumf %142, %143 : vector<8x256xf32>
    %145 = arith.truncf %144 : vector<8x256xf32> to vector<8x256xbf16>
    %cst_48 = arith.constant dense<0.000000e+00> : vector<8x48xf32>
    %146 = tpu.matmul %145, %33, %cst_48 {dimension_numbers = #tpu.dot_dimension_numbers<[1], [1], [0], [0], [0, 0, 1, 0], [], []>} : vector<8x256xbf16>, vector<48x256xbf16>, vector<8x48xf32> -> vector<8x48xf32>
    %147 = vector.broadcast %47 : vector<1x48xf32> to vector<8x48xf32>
    %148 = arith.addf %146, %147 : vector<8x48xf32>
    %149 = arith.addf %138, %148 : vector<8x48xf32>
    %cst_49 = arith.constant dense<0.000000e+00> : vector<8xf32>
    %150 = vector.multi_reduction <add>, %149, %cst_49 [1] : vector<8x48xf32> to vector<8xf32>
    %151 = vector.shape_cast %150 : vector<8xf32> to vector<8x1xf32>
    %cst_50 = arith.constant 4.800000e+01 : f32
    %152 = vector.broadcast %cst_50 : f32 to vector<8x1xf32>
    %153 = arith.divf %151, %152 : vector<8x1xf32>
    %154 = vector.broadcast %153 : vector<8x1xf32> to vector<8x48xf32>
    %155 = arith.subf %149, %154 : vector<8x48xf32>
    %156 = arith.mulf %155, %155 : vector<8x48xf32>
    %cst_51 = arith.constant dense<0.000000e+00> : vector<8xf32>
    %157 = vector.multi_reduction <add>, %156, %cst_51 [1] : vector<8x48xf32> to vector<8xf32>
    %158 = vector.shape_cast %157 : vector<8xf32> to vector<8x1xf32>
    %cst_52 = arith.constant 4.800000e+01 : f32
    %159 = vector.broadcast %cst_52 : f32 to vector<8x1xf32>
    %160 = arith.divf %158, %159 : vector<8x1xf32>
    %161 = vector.broadcast %153 : vector<8x1xf32> to vector<8x48xf32>
    %162 = arith.subf %149, %161 : vector<8x48xf32>
    %cst_53 = arith.constant 9.99999974E-6 : f32
    %163 = vector.broadcast %cst_53 : f32 to vector<8x1xf32>
    %164 = arith.addf %160, %163 : vector<8x1xf32>
    %165 = math.rsqrt %164 : vector<8x1xf32>
    %166 = vector.broadcast %165 : vector<8x1xf32> to vector<8x48xf32>
    %167 = arith.mulf %162, %166 : vector<8x48xf32>
    %168 = vector.broadcast %49 : vector<1x48xf32> to vector<8x48xf32>
    %169 = arith.mulf %167, %168 : vector<8x48xf32>
    %170 = vector.broadcast %51 : vector<1x48xf32> to vector<8x48xf32>
    %171 = arith.addf %169, %170 : vector<8x48xf32>
    %c1_54 = arith.constant 1 : index
    %c0_55 = arith.constant 0 : index
    %c0_56 = arith.constant 0 : index
    %172 = vector.load %arg3[%c1_54, %c0_55, %c0_56] : memref<4x48x896xbf16, #tpu.memory_space<vmem>>, vector<1x48x256xbf16>
    %173 = vector.shape_cast %172 : vector<1x48x256xbf16> to vector<48x256xbf16>
    %c1_57 = arith.constant 1 : index
    %c0_58 = arith.constant 0 : index
    %c256_59 = arith.constant 256 : index
    %174 = vector.load %arg3[%c1_57, %c0_58, %c256_59] : memref<4x48x896xbf16, #tpu.memory_space<vmem>>, vector<1x48x256xbf16>
    %175 = vector.shape_cast %174 : vector<1x48x256xbf16> to vector<48x256xbf16>
    %c1_60 = arith.constant 1 : index
    %c0_61 = arith.constant 0 : index
    %c512_62 = arith.constant 512 : index
    %176 = vector.load %arg3[%c1_60, %c0_61, %c512_62] : memref<4x48x896xbf16, #tpu.memory_space<vmem>>, vector<1x48x256xbf16>
    %177 = vector.shape_cast %176 : vector<1x48x256xbf16> to vector<48x256xbf16>
    %c1_63 = arith.constant 1 : index
    %c0_64 = arith.constant 0 : index
    %c768_65 = arith.constant 768 : index
    %178 = vector.load %arg3[%c1_63, %c0_64, %c768_65] : memref<4x48x896xbf16, #tpu.memory_space<vmem>>, vector<1x48x48xbf16>
    %179 = vector.shape_cast %178 : vector<1x48x48xbf16> to vector<48x48xbf16>
    %c1_66 = arith.constant 1 : index
    %c0_67 = arith.constant 0 : index
    %c0_68 = arith.constant 0 : index
    %180 = vector.load %arg4[%c1_66, %c0_67, %c0_68] : memref<4x8x256xf32, #tpu.memory_space<vmem>>, vector<1x1x256xf32>
    %181 = vector.shape_cast %180 : vector<1x1x256xf32> to vector<1x256xf32>
    %c1_69 = arith.constant 1 : index
    %c1_70 = arith.constant 1 : index
    %c0_71 = arith.constant 0 : index
    %182 = vector.load %arg4[%c1_69, %c1_70, %c0_71] : memref<4x8x256xf32, #tpu.memory_space<vmem>>, vector<1x1x48xf32>
    %183 = vector.shape_cast %182 : vector<1x1x48xf32> to vector<1x48xf32>
    %c1_72 = arith.constant 1 : index
    %c2_73 = arith.constant 2 : index
    %c0_74 = arith.constant 0 : index
    %184 = vector.load %arg4[%c1_72, %c2_73, %c0_74] : memref<4x8x256xf32, #tpu.memory_space<vmem>>, vector<1x1x48xf32>
    %185 = vector.shape_cast %184 : vector<1x1x48xf32> to vector<1x48xf32>
    %c1_75 = arith.constant 1 : index
    %c3_76 = arith.constant 3 : index
    %c0_77 = arith.constant 0 : index
    %186 = vector.load %arg4[%c1_75, %c3_76, %c0_77] : memref<4x8x256xf32, #tpu.memory_space<vmem>>, vector<1x1x48xf32>
    %187 = vector.shape_cast %186 : vector<1x1x48xf32> to vector<1x48xf32>
    %c1_78 = arith.constant 1 : index
    %c4_79 = arith.constant 4 : index
    %c0_80 = arith.constant 0 : index
    %188 = vector.load %arg4[%c1_78, %c4_79, %c0_80] : memref<4x8x256xf32, #tpu.memory_space<vmem>>, vector<1x1x256xf32>
    %189 = vector.shape_cast %188 : vector<1x1x256xf32> to vector<1x256xf32>
    %c1_81 = arith.constant 1 : index
    %c5_82 = arith.constant 5 : index
    %c0_83 = arith.constant 0 : index
    %190 = vector.load %arg4[%c1_81, %c5_82, %c0_83] : memref<4x8x256xf32, #tpu.memory_space<vmem>>, vector<1x1x48xf32>
    %191 = vector.shape_cast %190 : vector<1x1x48xf32> to vector<1x48xf32>
    %c1_84 = arith.constant 1 : index
    %c6_85 = arith.constant 6 : index
    %c0_86 = arith.constant 0 : index
    %192 = vector.load %arg4[%c1_84, %c6_85, %c0_86] : memref<4x8x256xf32, #tpu.memory_space<vmem>>, vector<1x1x48xf32>
    %193 = vector.shape_cast %192 : vector<1x1x48xf32> to vector<1x48xf32>
    %c1_87 = arith.constant 1 : index
    %c7_88 = arith.constant 7 : index
    %c0_89 = arith.constant 0 : index
    %194 = vector.load %arg4[%c1_87, %c7_88, %c0_89] : memref<4x8x256xf32, #tpu.memory_space<vmem>>, vector<1x1x48xf32>
    %195 = vector.shape_cast %194 : vector<1x1x48xf32> to vector<1x48xf32>
    %196 = arith.truncf %171 : vector<8x48xf32> to vector<8x48xbf16>
    %cst_90 = arith.constant dense<0.000000e+00> : vector<8x256xf32>
    %197 = tpu.matmul %196, %173, %cst_90 {dimension_numbers = #tpu.dot_dimension_numbers<[1], [0], [0], [1], [0, 0, 1, 1], [], []>} : vector<8x48xbf16>, vector<48x256xbf16>, vector<8x256xf32> -> vector<8x256xf32>
    %198 = vector.broadcast %181 : vector<1x256xf32> to vector<8x256xf32>
    %199 = arith.addf %197, %198 : vector<8x256xf32>
    %200 = vector.extract_strided_slice %199 {offsets = [0, 0], sizes = [8, 12], strides = [1, 1]} : vector<8x256xf32> to vector<8x12xf32>
    %201 = vector.shape_cast %200 : vector<8x12xf32> to vector<1x8x12xf32>
    %202 = vector.extract_strided_slice %199 {offsets = [0, 12], sizes = [8, 12], strides = [1, 1]} : vector<8x256xf32> to vector<8x12xf32>
    %203 = vector.shape_cast %202 : vector<8x12xf32> to vector<1x8x12xf32>
    %204 = vector.extract_strided_slice %199 {offsets = [0, 24], sizes = [8, 12], strides = [1, 1]} : vector<8x256xf32> to vector<8x12xf32>
    %205 = vector.shape_cast %204 : vector<8x12xf32> to vector<1x8x12xf32>
    %206 = vector.extract_strided_slice %199 {offsets = [0, 36], sizes = [8, 12], strides = [1, 1]} : vector<8x256xf32> to vector<8x12xf32>
    %207 = vector.shape_cast %206 : vector<8x12xf32> to vector<1x8x12xf32>
    %208 = tpu.concatenate %201, %203, %205, %207 in 0 : vector<1x8x12xf32>, vector<1x8x12xf32>, vector<1x8x12xf32>, vector<1x8x12xf32> -> vector<4x8x12xf32>
    %209 = vector.extract_strided_slice %199 {offsets = [0, 48], sizes = [8, 12], strides = [1, 1]} : vector<8x256xf32> to vector<8x12xf32>
    %210 = vector.shape_cast %209 : vector<8x12xf32> to vector<1x8x12xf32>
    %211 = vector.extract_strided_slice %199 {offsets = [0, 60], sizes = [8, 12], strides = [1, 1]} : vector<8x256xf32> to vector<8x12xf32>
    %212 = vector.shape_cast %211 : vector<8x12xf32> to vector<1x8x12xf32>
    %213 = vector.extract_strided_slice %199 {offsets = [0, 72], sizes = [8, 12], strides = [1, 1]} : vector<8x256xf32> to vector<8x12xf32>
    %214 = vector.shape_cast %213 : vector<8x12xf32> to vector<1x8x12xf32>
    %215 = vector.extract_strided_slice %199 {offsets = [0, 84], sizes = [8, 12], strides = [1, 1]} : vector<8x256xf32> to vector<8x12xf32>
    %216 = vector.shape_cast %215 : vector<8x12xf32> to vector<1x8x12xf32>
    %217 = tpu.concatenate %210, %212, %214, %216 in 0 : vector<1x8x12xf32>, vector<1x8x12xf32>, vector<1x8x12xf32>, vector<1x8x12xf32> -> vector<4x8x12xf32>
    %218 = vector.extract_strided_slice %199 {offsets = [0, 96], sizes = [8, 12], strides = [1, 1]} : vector<8x256xf32> to vector<8x12xf32>
    %219 = vector.shape_cast %218 : vector<8x12xf32> to vector<1x8x12xf32>
    %220 = vector.extract_strided_slice %199 {offsets = [0, 108], sizes = [8, 12], strides = [1, 1]} : vector<8x256xf32> to vector<8x12xf32>
    %221 = vector.shape_cast %220 : vector<8x12xf32> to vector<1x8x12xf32>
    %222 = vector.extract_strided_slice %199 {offsets = [0, 120], sizes = [8, 12], strides = [1, 1]} : vector<8x256xf32> to vector<8x12xf32>
    %223 = vector.shape_cast %222 : vector<8x12xf32> to vector<1x8x12xf32>
    %224 = vector.extract_strided_slice %199 {offsets = [0, 132], sizes = [8, 12], strides = [1, 1]} : vector<8x256xf32> to vector<8x12xf32>
    %225 = vector.shape_cast %224 : vector<8x12xf32> to vector<1x8x12xf32>
    %226 = tpu.concatenate %219, %221, %223, %225 in 0 : vector<1x8x12xf32>, vector<1x8x12xf32>, vector<1x8x12xf32>, vector<1x8x12xf32> -> vector<4x8x12xf32>
    "tpu.trace_start"() <{level = 10 : i32, message = "bqd,bkd->bqk"}> : () -> ()
    %cst_91 = arith.constant dense<0.000000e+00> : vector<4x8x8xf32>
    %227 = tpu.matmul %208, %217, %cst_91 {dimension_numbers = #tpu.dot_dimension_numbers<[2], [2], [1], [1], [0, 0, 0, 1, 1, 1], [0], [0]>} : vector<4x8x12xf32>, vector<4x8x12xf32>, vector<4x8x8xf32> -> vector<4x8x8xf32>
    "tpu.trace_stop"() : () -> ()
    %cst_92 = arith.constant 0.288675129 : f32
    %228 = vector.broadcast %cst_92 : f32 to vector<4x8x8xf32>
    %229 = arith.mulf %227, %228 : vector<4x8x8xf32>
    %230 = arith.addf %229, %27 : vector<4x8x8xf32>
    %cst_93 = arith.constant dense<0xFF800000> : vector<4x8xf32>
    %231 = vector.multi_reduction <maximumf>, %230, %cst_93 [2] : vector<4x8x8xf32> to vector<4x8xf32>
    %232 = vector.shape_cast %231 : vector<4x8xf32> to vector<4x8x1xf32>
    %233 = vector.broadcast %232 : vector<4x8x1xf32> to vector<4x8x8xf32>
    %234 = arith.subf %230, %233 : vector<4x8x8xf32>
    %235 = math.exp %234 : vector<4x8x8xf32>
    %cst_94 = arith.constant dense<0.000000e+00> : vector<4x8xf32>
    %236 = vector.multi_reduction <add>, %235, %cst_94 [2] : vector<4x8x8xf32> to vector<4x8xf32>
    %237 = vector.shape_cast %236 : vector<4x8xf32> to vector<4x8x1xf32>
    %238 = tpu.reciprocal %237 {approx = true} : vector<4x8x1xf32> -> vector<4x8x1xf32>
    %239 = vector.broadcast %238 : vector<4x8x1xf32> to vector<4x8x8xf32>
    %240 = arith.mulf %235, %239 : vector<4x8x8xf32>
    "tpu.trace_start"() <{level = 10 : i32, message = "bqk,bkd->bqd"}> : () -> ()
    %cst_95 = arith.constant dense<0.000000e+00> : vector<4x8x12xf32>
    %241 = tpu.matmul %240, %226, %cst_95 {dimension_numbers = #tpu.dot_dimension_numbers<[2], [1], [1], [2], [0, 0, 0, 1, 1, 2], [0], [0]>} : vector<4x8x8xf32>, vector<4x8x12xf32>, vector<4x8x12xf32> -> vector<4x8x12xf32>
    "tpu.trace_stop"() : () -> ()
    %242 = vector.shape_cast %241 : vector<4x8x12xf32> to vector<4x1x8x12xf32>
    %243 = vector.extract_strided_slice %242 {offsets = [0, 0, 0, 0], sizes = [1, 1, 8, 12], strides = [1, 1, 1, 1]} : vector<4x1x8x12xf32> to vector<1x1x8x12xf32>
    %244 = vector.shape_cast %243 : vector<1x1x8x12xf32> to vector<1x8x12xf32>
    %245 = vector.shape_cast %244 : vector<1x8x12xf32> to vector<8x12xf32>
    %246 = vector.extract_strided_slice %242 {offsets = [1, 0, 0, 0], sizes = [1, 1, 8, 12], strides = [1, 1, 1, 1]} : vector<4x1x8x12xf32> to vector<1x1x8x12xf32>
    %247 = vector.shape_cast %246 : vector<1x1x8x12xf32> to vector<1x8x12xf32>
    %248 = vector.shape_cast %247 : vector<1x8x12xf32> to vector<8x12xf32>
    %249 = vector.extract_strided_slice %242 {offsets = [2, 0, 0, 0], sizes = [1, 1, 8, 12], strides = [1, 1, 1, 1]} : vector<4x1x8x12xf32> to vector<1x1x8x12xf32>
    %250 = vector.shape_cast %249 : vector<1x1x8x12xf32> to vector<1x8x12xf32>
    %251 = vector.shape_cast %250 : vector<1x8x12xf32> to vector<8x12xf32>
    %252 = vector.extract_strided_slice %242 {offsets = [3, 0, 0, 0], sizes = [1, 1, 8, 12], strides = [1, 1, 1, 1]} : vector<4x1x8x12xf32> to vector<1x1x8x12xf32>
    %253 = vector.shape_cast %252 : vector<1x1x8x12xf32> to vector<1x8x12xf32>
    %254 = vector.shape_cast %253 : vector<1x8x12xf32> to vector<8x12xf32>
    %255 = tpu.concatenate %245, %248, %251, %254 in 1 : vector<8x12xf32>, vector<8x12xf32>, vector<8x12xf32>, vector<8x12xf32> -> vector<8x48xf32>
    %256 = arith.truncf %255 : vector<8x48xf32> to vector<8x48xbf16>
    %cst_96 = arith.constant dense<0.000000e+00> : vector<8x48xf32>
    %257 = tpu.matmul %256, %179, %cst_96 {dimension_numbers = #tpu.dot_dimension_numbers<[1], [0], [0], [1], [0, 0, 1, 1], [], []>} : vector<8x48xbf16>, vector<48x48xbf16>, vector<8x48xf32> -> vector<8x48xf32>
    %258 = vector.broadcast %183 : vector<1x48xf32> to vector<8x48xf32>
    %259 = arith.addf %257, %258 : vector<8x48xf32>
    %260 = arith.addf %171, %259 : vector<8x48xf32>
    %cst_97 = arith.constant dense<0.000000e+00> : vector<8xf32>
    %261 = vector.multi_reduction <add>, %260, %cst_97 [1] : vector<8x48xf32> to vector<8xf32>
    %262 = vector.shape_cast %261 : vector<8xf32> to vector<8x1xf32>
    %cst_98 = arith.constant 4.800000e+01 : f32
    %263 = vector.broadcast %cst_98 : f32 to vector<8x1xf32>
    %264 = arith.divf %262, %263 : vector<8x1xf32>
    %265 = vector.broadcast %264 : vector<8x1xf32> to vector<8x48xf32>
    %266 = arith.subf %260, %265 : vector<8x48xf32>
    %267 = arith.mulf %266, %266 : vector<8x48xf32>
    %cst_99 = arith.constant dense<0.000000e+00> : vector<8xf32>
    %268 = vector.multi_reduction <add>, %267, %cst_99 [1] : vector<8x48xf32> to vector<8xf32>
    %269 = vector.shape_cast %268 : vector<8xf32> to vector<8x1xf32>
    %cst_100 = arith.constant 4.800000e+01 : f32
    %270 = vector.broadcast %cst_100 : f32 to vector<8x1xf32>
    %271 = arith.divf %269, %270 : vector<8x1xf32>
    %272 = vector.broadcast %264 : vector<8x1xf32> to vector<8x48xf32>
    %273 = arith.subf %260, %272 : vector<8x48xf32>
    %cst_101 = arith.constant 9.99999974E-6 : f32
    %274 = vector.broadcast %cst_101 : f32 to vector<8x1xf32>
    %275 = arith.addf %271, %274 : vector<8x1xf32>
    %276 = math.rsqrt %275 : vector<8x1xf32>
    %277 = vector.broadcast %276 : vector<8x1xf32> to vector<8x48xf32>
    %278 = arith.mulf %273, %277 : vector<8x48xf32>
    %279 = vector.broadcast %185 : vector<1x48xf32> to vector<8x48xf32>
    %280 = arith.mulf %278, %279 : vector<8x48xf32>
    %281 = vector.broadcast %187 : vector<1x48xf32> to vector<8x48xf32>
    %282 = arith.addf %280, %281 : vector<8x48xf32>
    %283 = arith.truncf %282 : vector<8x48xf32> to vector<8x48xbf16>
    %cst_102 = arith.constant dense<0.000000e+00> : vector<8x256xf32>
    %284 = tpu.matmul %283, %175, %cst_102 {dimension_numbers = #tpu.dot_dimension_numbers<[1], [0], [0], [1], [0, 0, 1, 1], [], []>} : vector<8x48xbf16>, vector<48x256xbf16>, vector<8x256xf32> -> vector<8x256xf32>
    %285 = vector.broadcast %189 : vector<1x256xf32> to vector<8x256xf32>
    %286 = arith.addf %284, %285 : vector<8x256xf32>
    %cst_103 = arith.constant 0.000000e+00 : f32
    %287 = vector.broadcast %cst_103 : f32 to vector<8x256xf32>
    %288 = arith.maximumf %286, %287 : vector<8x256xf32>
    %289 = arith.truncf %288 : vector<8x256xf32> to vector<8x256xbf16>
    %cst_104 = arith.constant dense<0.000000e+00> : vector<8x48xf32>
    %290 = tpu.matmul %289, %177, %cst_104 {dimension_numbers = #tpu.dot_dimension_numbers<[1], [1], [0], [0], [0, 0, 1, 0], [], []>} : vector<8x256xbf16>, vector<48x256xbf16>, vector<8x48xf32> -> vector<8x48xf32>
    %291 = vector.broadcast %191 : vector<1x48xf32> to vector<8x48xf32>
    %292 = arith.addf %290, %291 : vector<8x48xf32>
    %293 = arith.addf %282, %292 : vector<8x48xf32>
    %cst_105 = arith.constant dense<0.000000e+00> : vector<8xf32>
    %294 = vector.multi_reduction <add>, %293, %cst_105 [1] : vector<8x48xf32> to vector<8xf32>
    %295 = vector.shape_cast %294 : vector<8xf32> to vector<8x1xf32>
    %cst_106 = arith.constant 4.800000e+01 : f32
    %296 = vector.broadcast %cst_106 : f32 to vector<8x1xf32>
    %297 = arith.divf %295, %296 : vector<8x1xf32>
    %298 = vector.broadcast %297 : vector<8x1xf32> to vector<8x48xf32>
    %299 = arith.subf %293, %298 : vector<8x48xf32>
    %300 = arith.mulf %299, %299 : vector<8x48xf32>
    %cst_107 = arith.constant dense<0.000000e+00> : vector<8xf32>
    %301 = vector.multi_reduction <add>, %300, %cst_107 [1] : vector<8x48xf32> to vector<8xf32>
    %302 = vector.shape_cast %301 : vector<8xf32> to vector<8x1xf32>
    %cst_108 = arith.constant 4.800000e+01 : f32
    %303 = vector.broadcast %cst_108 : f32 to vector<8x1xf32>
    %304 = arith.divf %302, %303 : vector<8x1xf32>
    %305 = vector.broadcast %297 : vector<8x1xf32> to vector<8x48xf32>
    %306 = arith.subf %293, %305 : vector<8x48xf32>
    %cst_109 = arith.constant 9.99999974E-6 : f32
    %307 = vector.broadcast %cst_109 : f32 to vector<8x1xf32>
    %308 = arith.addf %304, %307 : vector<8x1xf32>
    %309 = math.rsqrt %308 : vector<8x1xf32>
    %310 = vector.broadcast %309 : vector<8x1xf32> to vector<8x48xf32>
    %311 = arith.mulf %306, %310 : vector<8x48xf32>
    %312 = vector.broadcast %193 : vector<1x48xf32> to vector<8x48xf32>
    %313 = arith.mulf %311, %312 : vector<8x48xf32>
    %314 = vector.broadcast %195 : vector<1x48xf32> to vector<8x48xf32>
    %315 = arith.addf %313, %314 : vector<8x48xf32>
    %c2_110 = arith.constant 2 : index
    %c0_111 = arith.constant 0 : index
    %c0_112 = arith.constant 0 : index
    %316 = vector.load %arg3[%c2_110, %c0_111, %c0_112] : memref<4x48x896xbf16, #tpu.memory_space<vmem>>, vector<1x48x256xbf16>
    %317 = vector.shape_cast %316 : vector<1x48x256xbf16> to vector<48x256xbf16>
    %c2_113 = arith.constant 2 : index
    %c0_114 = arith.constant 0 : index
    %c256_115 = arith.constant 256 : index
    %318 = vector.load %arg3[%c2_113, %c0_114, %c256_115] : memref<4x48x896xbf16, #tpu.memory_space<vmem>>, vector<1x48x256xbf16>
    %319 = vector.shape_cast %318 : vector<1x48x256xbf16> to vector<48x256xbf16>
    %c2_116 = arith.constant 2 : index
    %c0_117 = arith.constant 0 : index
    %c512_118 = arith.constant 512 : index
    %320 = vector.load %arg3[%c2_116, %c0_117, %c512_118] : memref<4x48x896xbf16, #tpu.memory_space<vmem>>, vector<1x48x256xbf16>
    %321 = vector.shape_cast %320 : vector<1x48x256xbf16> to vector<48x256xbf16>
    %c2_119 = arith.constant 2 : index
    %c0_120 = arith.constant 0 : index
    %c768_121 = arith.constant 768 : index
    %322 = vector.load %arg3[%c2_119, %c0_120, %c768_121] : memref<4x48x896xbf16, #tpu.memory_space<vmem>>, vector<1x48x48xbf16>
    %323 = vector.shape_cast %322 : vector<1x48x48xbf16> to vector<48x48xbf16>
    %c2_122 = arith.constant 2 : index
    %c0_123 = arith.constant 0 : index
    %c0_124 = arith.constant 0 : index
    %324 = vector.load %arg4[%c2_122, %c0_123, %c0_124] : memref<4x8x256xf32, #tpu.memory_space<vmem>>, vector<1x1x256xf32>
    %325 = vector.shape_cast %324 : vector<1x1x256xf32> to vector<1x256xf32>
    %c2_125 = arith.constant 2 : index
    %c1_126 = arith.constant 1 : index
    %c0_127 = arith.constant 0 : index
    %326 = vector.load %arg4[%c2_125, %c1_126, %c0_127] : memref<4x8x256xf32, #tpu.memory_space<vmem>>, vector<1x1x48xf32>
    %327 = vector.shape_cast %326 : vector<1x1x48xf32> to vector<1x48xf32>
    %c2_128 = arith.constant 2 : index
    %c2_129 = arith.constant 2 : index
    %c0_130 = arith.constant 0 : index
    %328 = vector.load %arg4[%c2_128, %c2_129, %c0_130] : memref<4x8x256xf32, #tpu.memory_space<vmem>>, vector<1x1x48xf32>
    %329 = vector.shape_cast %328 : vector<1x1x48xf32> to vector<1x48xf32>
    %c2_131 = arith.constant 2 : index
    %c3_132 = arith.constant 3 : index
    %c0_133 = arith.constant 0 : index
    %330 = vector.load %arg4[%c2_131, %c3_132, %c0_133] : memref<4x8x256xf32, #tpu.memory_space<vmem>>, vector<1x1x48xf32>
    %331 = vector.shape_cast %330 : vector<1x1x48xf32> to vector<1x48xf32>
    %c2_134 = arith.constant 2 : index
    %c4_135 = arith.constant 4 : index
    %c0_136 = arith.constant 0 : index
    %332 = vector.load %arg4[%c2_134, %c4_135, %c0_136] : memref<4x8x256xf32, #tpu.memory_space<vmem>>, vector<1x1x256xf32>
    %333 = vector.shape_cast %332 : vector<1x1x256xf32> to vector<1x256xf32>
    %c2_137 = arith.constant 2 : index
    %c5_138 = arith.constant 5 : index
    %c0_139 = arith.constant 0 : index
    %334 = vector.load %arg4[%c2_137, %c5_138, %c0_139] : memref<4x8x256xf32, #tpu.memory_space<vmem>>, vector<1x1x48xf32>
    %335 = vector.shape_cast %334 : vector<1x1x48xf32> to vector<1x48xf32>
    %c2_140 = arith.constant 2 : index
    %c6_141 = arith.constant 6 : index
    %c0_142 = arith.constant 0 : index
    %336 = vector.load %arg4[%c2_140, %c6_141, %c0_142] : memref<4x8x256xf32, #tpu.memory_space<vmem>>, vector<1x1x48xf32>
    %337 = vector.shape_cast %336 : vector<1x1x48xf32> to vector<1x48xf32>
    %c2_143 = arith.constant 2 : index
    %c7_144 = arith.constant 7 : index
    %c0_145 = arith.constant 0 : index
    %338 = vector.load %arg4[%c2_143, %c7_144, %c0_145] : memref<4x8x256xf32, #tpu.memory_space<vmem>>, vector<1x1x48xf32>
    %339 = vector.shape_cast %338 : vector<1x1x48xf32> to vector<1x48xf32>
    %340 = arith.truncf %315 : vector<8x48xf32> to vector<8x48xbf16>
    %cst_146 = arith.constant dense<0.000000e+00> : vector<8x256xf32>
    %341 = tpu.matmul %340, %317, %cst_146 {dimension_numbers = #tpu.dot_dimension_numbers<[1], [0], [0], [1], [0, 0, 1, 1], [], []>} : vector<8x48xbf16>, vector<48x256xbf16>, vector<8x256xf32> -> vector<8x256xf32>
    %342 = vector.broadcast %325 : vector<1x256xf32> to vector<8x256xf32>
    %343 = arith.addf %341, %342 : vector<8x256xf32>
    %344 = vector.extract_strided_slice %343 {offsets = [0, 0], sizes = [8, 12], strides = [1, 1]} : vector<8x256xf32> to vector<8x12xf32>
    %345 = vector.shape_cast %344 : vector<8x12xf32> to vector<1x8x12xf32>
    %346 = vector.extract_strided_slice %343 {offsets = [0, 12], sizes = [8, 12], strides = [1, 1]} : vector<8x256xf32> to vector<8x12xf32>
    %347 = vector.shape_cast %346 : vector<8x12xf32> to vector<1x8x12xf32>
    %348 = vector.extract_strided_slice %343 {offsets = [0, 24], sizes = [8, 12], strides = [1, 1]} : vector<8x256xf32> to vector<8x12xf32>
    %349 = vector.shape_cast %348 : vector<8x12xf32> to vector<1x8x12xf32>
    %350 = vector.extract_strided_slice %343 {offsets = [0, 36], sizes = [8, 12], strides = [1, 1]} : vector<8x256xf32> to vector<8x12xf32>
    %351 = vector.shape_cast %350 : vector<8x12xf32> to vector<1x8x12xf32>
    %352 = tpu.concatenate %345, %347, %349, %351 in 0 : vector<1x8x12xf32>, vector<1x8x12xf32>, vector<1x8x12xf32>, vector<1x8x12xf32> -> vector<4x8x12xf32>
    %353 = vector.extract_strided_slice %343 {offsets = [0, 48], sizes = [8, 12], strides = [1, 1]} : vector<8x256xf32> to vector<8x12xf32>
    %354 = vector.shape_cast %353 : vector<8x12xf32> to vector<1x8x12xf32>
    %355 = vector.extract_strided_slice %343 {offsets = [0, 60], sizes = [8, 12], strides = [1, 1]} : vector<8x256xf32> to vector<8x12xf32>
    %356 = vector.shape_cast %355 : vector<8x12xf32> to vector<1x8x12xf32>
    %357 = vector.extract_strided_slice %343 {offsets = [0, 72], sizes = [8, 12], strides = [1, 1]} : vector<8x256xf32> to vector<8x12xf32>
    %358 = vector.shape_cast %357 : vector<8x12xf32> to vector<1x8x12xf32>
    %359 = vector.extract_strided_slice %343 {offsets = [0, 84], sizes = [8, 12], strides = [1, 1]} : vector<8x256xf32> to vector<8x12xf32>
    %360 = vector.shape_cast %359 : vector<8x12xf32> to vector<1x8x12xf32>
    %361 = tpu.concatenate %354, %356, %358, %360 in 0 : vector<1x8x12xf32>, vector<1x8x12xf32>, vector<1x8x12xf32>, vector<1x8x12xf32> -> vector<4x8x12xf32>
    %362 = vector.extract_strided_slice %343 {offsets = [0, 96], sizes = [8, 12], strides = [1, 1]} : vector<8x256xf32> to vector<8x12xf32>
    %363 = vector.shape_cast %362 : vector<8x12xf32> to vector<1x8x12xf32>
    %364 = vector.extract_strided_slice %343 {offsets = [0, 108], sizes = [8, 12], strides = [1, 1]} : vector<8x256xf32> to vector<8x12xf32>
    %365 = vector.shape_cast %364 : vector<8x12xf32> to vector<1x8x12xf32>
    %366 = vector.extract_strided_slice %343 {offsets = [0, 120], sizes = [8, 12], strides = [1, 1]} : vector<8x256xf32> to vector<8x12xf32>
    %367 = vector.shape_cast %366 : vector<8x12xf32> to vector<1x8x12xf32>
    %368 = vector.extract_strided_slice %343 {offsets = [0, 132], sizes = [8, 12], strides = [1, 1]} : vector<8x256xf32> to vector<8x12xf32>
    %369 = vector.shape_cast %368 : vector<8x12xf32> to vector<1x8x12xf32>
    %370 = tpu.concatenate %363, %365, %367, %369 in 0 : vector<1x8x12xf32>, vector<1x8x12xf32>, vector<1x8x12xf32>, vector<1x8x12xf32> -> vector<4x8x12xf32>
    "tpu.trace_start"() <{level = 10 : i32, message = "bqd,bkd->bqk"}> : () -> ()
    %cst_147 = arith.constant dense<0.000000e+00> : vector<4x8x8xf32>
    %371 = tpu.matmul %352, %361, %cst_147 {dimension_numbers = #tpu.dot_dimension_numbers<[2], [2], [1], [1], [0, 0, 0, 1, 1, 1], [0], [0]>} : vector<4x8x12xf32>, vector<4x8x12xf32>, vector<4x8x8xf32> -> vector<4x8x8xf32>
    "tpu.trace_stop"() : () -> ()
    %cst_148 = arith.constant 0.288675129 : f32
    %372 = vector.broadcast %cst_148 : f32 to vector<4x8x8xf32>
    %373 = arith.mulf %371, %372 : vector<4x8x8xf32>
    %374 = arith.addf %373, %27 : vector<4x8x8xf32>
    %cst_149 = arith.constant dense<0xFF800000> : vector<4x8xf32>
    %375 = vector.multi_reduction <maximumf>, %374, %cst_149 [2] : vector<4x8x8xf32> to vector<4x8xf32>
    %376 = vector.shape_cast %375 : vector<4x8xf32> to vector<4x8x1xf32>
    %377 = vector.broadcast %376 : vector<4x8x1xf32> to vector<4x8x8xf32>
    %378 = arith.subf %374, %377 : vector<4x8x8xf32>
    %379 = math.exp %378 : vector<4x8x8xf32>
    %cst_150 = arith.constant dense<0.000000e+00> : vector<4x8xf32>
    %380 = vector.multi_reduction <add>, %379, %cst_150 [2] : vector<4x8x8xf32> to vector<4x8xf32>
    %381 = vector.shape_cast %380 : vector<4x8xf32> to vector<4x8x1xf32>
    %382 = tpu.reciprocal %381 {approx = true} : vector<4x8x1xf32> -> vector<4x8x1xf32>
    %383 = vector.broadcast %382 : vector<4x8x1xf32> to vector<4x8x8xf32>
    %384 = arith.mulf %379, %383 : vector<4x8x8xf32>
    "tpu.trace_start"() <{level = 10 : i32, message = "bqk,bkd->bqd"}> : () -> ()
    %cst_151 = arith.constant dense<0.000000e+00> : vector<4x8x12xf32>
    %385 = tpu.matmul %384, %370, %cst_151 {dimension_numbers = #tpu.dot_dimension_numbers<[2], [1], [1], [2], [0, 0, 0, 1, 1, 2], [0], [0]>} : vector<4x8x8xf32>, vector<4x8x12xf32>, vector<4x8x12xf32> -> vector<4x8x12xf32>
    "tpu.trace_stop"() : () -> ()
    %386 = vector.shape_cast %385 : vector<4x8x12xf32> to vector<4x1x8x12xf32>
    %387 = vector.extract_strided_slice %386 {offsets = [0, 0, 0, 0], sizes = [1, 1, 8, 12], strides = [1, 1, 1, 1]} : vector<4x1x8x12xf32> to vector<1x1x8x12xf32>
    %388 = vector.shape_cast %387 : vector<1x1x8x12xf32> to vector<1x8x12xf32>
    %389 = vector.shape_cast %388 : vector<1x8x12xf32> to vector<8x12xf32>
    %390 = vector.extract_strided_slice %386 {offsets = [1, 0, 0, 0], sizes = [1, 1, 8, 12], strides = [1, 1, 1, 1]} : vector<4x1x8x12xf32> to vector<1x1x8x12xf32>
    %391 = vector.shape_cast %390 : vector<1x1x8x12xf32> to vector<1x8x12xf32>
    %392 = vector.shape_cast %391 : vector<1x8x12xf32> to vector<8x12xf32>
    %393 = vector.extract_strided_slice %386 {offsets = [2, 0, 0, 0], sizes = [1, 1, 8, 12], strides = [1, 1, 1, 1]} : vector<4x1x8x12xf32> to vector<1x1x8x12xf32>
    %394 = vector.shape_cast %393 : vector<1x1x8x12xf32> to vector<1x8x12xf32>
    %395 = vector.shape_cast %394 : vector<1x8x12xf32> to vector<8x12xf32>
    %396 = vector.extract_strided_slice %386 {offsets = [3, 0, 0, 0], sizes = [1, 1, 8, 12], strides = [1, 1, 1, 1]} : vector<4x1x8x12xf32> to vector<1x1x8x12xf32>
    %397 = vector.shape_cast %396 : vector<1x1x8x12xf32> to vector<1x8x12xf32>
    %398 = vector.shape_cast %397 : vector<1x8x12xf32> to vector<8x12xf32>
    %399 = tpu.concatenate %389, %392, %395, %398 in 1 : vector<8x12xf32>, vector<8x12xf32>, vector<8x12xf32>, vector<8x12xf32> -> vector<8x48xf32>
    %400 = arith.truncf %399 : vector<8x48xf32> to vector<8x48xbf16>
    %cst_152 = arith.constant dense<0.000000e+00> : vector<8x48xf32>
    %401 = tpu.matmul %400, %323, %cst_152 {dimension_numbers = #tpu.dot_dimension_numbers<[1], [0], [0], [1], [0, 0, 1, 1], [], []>} : vector<8x48xbf16>, vector<48x48xbf16>, vector<8x48xf32> -> vector<8x48xf32>
    %402 = vector.broadcast %327 : vector<1x48xf32> to vector<8x48xf32>
    %403 = arith.addf %401, %402 : vector<8x48xf32>
    %404 = arith.addf %315, %403 : vector<8x48xf32>
    %cst_153 = arith.constant dense<0.000000e+00> : vector<8xf32>
    %405 = vector.multi_reduction <add>, %404, %cst_153 [1] : vector<8x48xf32> to vector<8xf32>
    %406 = vector.shape_cast %405 : vector<8xf32> to vector<8x1xf32>
    %cst_154 = arith.constant 4.800000e+01 : f32
    %407 = vector.broadcast %cst_154 : f32 to vector<8x1xf32>
    %408 = arith.divf %406, %407 : vector<8x1xf32>
    %409 = vector.broadcast %408 : vector<8x1xf32> to vector<8x48xf32>
    %410 = arith.subf %404, %409 : vector<8x48xf32>
    %411 = arith.mulf %410, %410 : vector<8x48xf32>
    %cst_155 = arith.constant dense<0.000000e+00> : vector<8xf32>
    %412 = vector.multi_reduction <add>, %411, %cst_155 [1] : vector<8x48xf32> to vector<8xf32>
    %413 = vector.shape_cast %412 : vector<8xf32> to vector<8x1xf32>
    %cst_156 = arith.constant 4.800000e+01 : f32
    %414 = vector.broadcast %cst_156 : f32 to vector<8x1xf32>
    %415 = arith.divf %413, %414 : vector<8x1xf32>
    %416 = vector.broadcast %408 : vector<8x1xf32> to vector<8x48xf32>
    %417 = arith.subf %404, %416 : vector<8x48xf32>
    %cst_157 = arith.constant 9.99999974E-6 : f32
    %418 = vector.broadcast %cst_157 : f32 to vector<8x1xf32>
    %419 = arith.addf %415, %418 : vector<8x1xf32>
    %420 = math.rsqrt %419 : vector<8x1xf32>
    %421 = vector.broadcast %420 : vector<8x1xf32> to vector<8x48xf32>
    %422 = arith.mulf %417, %421 : vector<8x48xf32>
    %423 = vector.broadcast %329 : vector<1x48xf32> to vector<8x48xf32>
    %424 = arith.mulf %422, %423 : vector<8x48xf32>
    %425 = vector.broadcast %331 : vector<1x48xf32> to vector<8x48xf32>
    %426 = arith.addf %424, %425 : vector<8x48xf32>
    %427 = arith.truncf %426 : vector<8x48xf32> to vector<8x48xbf16>
    %cst_158 = arith.constant dense<0.000000e+00> : vector<8x256xf32>
    %428 = tpu.matmul %427, %319, %cst_158 {dimension_numbers = #tpu.dot_dimension_numbers<[1], [0], [0], [1], [0, 0, 1, 1], [], []>} : vector<8x48xbf16>, vector<48x256xbf16>, vector<8x256xf32> -> vector<8x256xf32>
    %429 = vector.broadcast %333 : vector<1x256xf32> to vector<8x256xf32>
    %430 = arith.addf %428, %429 : vector<8x256xf32>
    %cst_159 = arith.constant 0.000000e+00 : f32
    %431 = vector.broadcast %cst_159 : f32 to vector<8x256xf32>
    %432 = arith.maximumf %430, %431 : vector<8x256xf32>
    %433 = arith.truncf %432 : vector<8x256xf32> to vector<8x256xbf16>
    %cst_160 = arith.constant dense<0.000000e+00> : vector<8x48xf32>
    %434 = tpu.matmul %433, %321, %cst_160 {dimension_numbers = #tpu.dot_dimension_numbers<[1], [1], [0], [0], [0, 0, 1, 0], [], []>} : vector<8x256xbf16>, vector<48x256xbf16>, vector<8x48xf32> -> vector<8x48xf32>
    %435 = vector.broadcast %335 : vector<1x48xf32> to vector<8x48xf32>
    %436 = arith.addf %434, %435 : vector<8x48xf32>
    %437 = arith.addf %426, %436 : vector<8x48xf32>
    %cst_161 = arith.constant dense<0.000000e+00> : vector<8xf32>
    %438 = vector.multi_reduction <add>, %437, %cst_161 [1] : vector<8x48xf32> to vector<8xf32>
    %439 = vector.shape_cast %438 : vector<8xf32> to vector<8x1xf32>
    %cst_162 = arith.constant 4.800000e+01 : f32
    %440 = vector.broadcast %cst_162 : f32 to vector<8x1xf32>
    %441 = arith.divf %439, %440 : vector<8x1xf32>
    %442 = vector.broadcast %441 : vector<8x1xf32> to vector<8x48xf32>
    %443 = arith.subf %437, %442 : vector<8x48xf32>
    %444 = arith.mulf %443, %443 : vector<8x48xf32>
    %cst_163 = arith.constant dense<0.000000e+00> : vector<8xf32>
    %445 = vector.multi_reduction <add>, %444, %cst_163 [1] : vector<8x48xf32> to vector<8xf32>
    %446 = vector.shape_cast %445 : vector<8xf32> to vector<8x1xf32>
    %cst_164 = arith.constant 4.800000e+01 : f32
    %447 = vector.broadcast %cst_164 : f32 to vector<8x1xf32>
    %448 = arith.divf %446, %447 : vector<8x1xf32>
    %449 = vector.broadcast %441 : vector<8x1xf32> to vector<8x48xf32>
    %450 = arith.subf %437, %449 : vector<8x48xf32>
    %cst_165 = arith.constant 9.99999974E-6 : f32
    %451 = vector.broadcast %cst_165 : f32 to vector<8x1xf32>
    %452 = arith.addf %448, %451 : vector<8x1xf32>
    %453 = math.rsqrt %452 : vector<8x1xf32>
    %454 = vector.broadcast %453 : vector<8x1xf32> to vector<8x48xf32>
    %455 = arith.mulf %450, %454 : vector<8x48xf32>
    %456 = vector.broadcast %337 : vector<1x48xf32> to vector<8x48xf32>
    %457 = arith.mulf %455, %456 : vector<8x48xf32>
    %458 = vector.broadcast %339 : vector<1x48xf32> to vector<8x48xf32>
    %459 = arith.addf %457, %458 : vector<8x48xf32>
    %c3_166 = arith.constant 3 : index
    %c0_167 = arith.constant 0 : index
    %c0_168 = arith.constant 0 : index
    %460 = vector.load %arg3[%c3_166, %c0_167, %c0_168] : memref<4x48x896xbf16, #tpu.memory_space<vmem>>, vector<1x48x256xbf16>
    %461 = vector.shape_cast %460 : vector<1x48x256xbf16> to vector<48x256xbf16>
    %c3_169 = arith.constant 3 : index
    %c0_170 = arith.constant 0 : index
    %c256_171 = arith.constant 256 : index
    %462 = vector.load %arg3[%c3_169, %c0_170, %c256_171] : memref<4x48x896xbf16, #tpu.memory_space<vmem>>, vector<1x48x256xbf16>
    %463 = vector.shape_cast %462 : vector<1x48x256xbf16> to vector<48x256xbf16>
    %c3_172 = arith.constant 3 : index
    %c0_173 = arith.constant 0 : index
    %c512_174 = arith.constant 512 : index
    %464 = vector.load %arg3[%c3_172, %c0_173, %c512_174] : memref<4x48x896xbf16, #tpu.memory_space<vmem>>, vector<1x48x256xbf16>
    %465 = vector.shape_cast %464 : vector<1x48x256xbf16> to vector<48x256xbf16>
    %c3_175 = arith.constant 3 : index
    %c0_176 = arith.constant 0 : index
    %c768_177 = arith.constant 768 : index
    %466 = vector.load %arg3[%c3_175, %c0_176, %c768_177] : memref<4x48x896xbf16, #tpu.memory_space<vmem>>, vector<1x48x48xbf16>
    %467 = vector.shape_cast %466 : vector<1x48x48xbf16> to vector<48x48xbf16>
    %c3_178 = arith.constant 3 : index
    %c0_179 = arith.constant 0 : index
    %c0_180 = arith.constant 0 : index
    %468 = vector.load %arg4[%c3_178, %c0_179, %c0_180] : memref<4x8x256xf32, #tpu.memory_space<vmem>>, vector<1x1x256xf32>
    %469 = vector.shape_cast %468 : vector<1x1x256xf32> to vector<1x256xf32>
    %c3_181 = arith.constant 3 : index
    %c1_182 = arith.constant 1 : index
    %c0_183 = arith.constant 0 : index
    %470 = vector.load %arg4[%c3_181, %c1_182, %c0_183] : memref<4x8x256xf32, #tpu.memory_space<vmem>>, vector<1x1x48xf32>
    %471 = vector.shape_cast %470 : vector<1x1x48xf32> to vector<1x48xf32>
    %c3_184 = arith.constant 3 : index
    %c2_185 = arith.constant 2 : index
    %c0_186 = arith.constant 0 : index
    %472 = vector.load %arg4[%c3_184, %c2_185, %c0_186] : memref<4x8x256xf32, #tpu.memory_space<vmem>>, vector<1x1x48xf32>
    %473 = vector.shape_cast %472 : vector<1x1x48xf32> to vector<1x48xf32>
    %c3_187 = arith.constant 3 : index
    %c3_188 = arith.constant 3 : index
    %c0_189 = arith.constant 0 : index
    %474 = vector.load %arg4[%c3_187, %c3_188, %c0_189] : memref<4x8x256xf32, #tpu.memory_space<vmem>>, vector<1x1x48xf32>
    %475 = vector.shape_cast %474 : vector<1x1x48xf32> to vector<1x48xf32>
    %c3_190 = arith.constant 3 : index
    %c4_191 = arith.constant 4 : index
    %c0_192 = arith.constant 0 : index
    %476 = vector.load %arg4[%c3_190, %c4_191, %c0_192] : memref<4x8x256xf32, #tpu.memory_space<vmem>>, vector<1x1x256xf32>
    %477 = vector.shape_cast %476 : vector<1x1x256xf32> to vector<1x256xf32>
    %c3_193 = arith.constant 3 : index
    %c5_194 = arith.constant 5 : index
    %c0_195 = arith.constant 0 : index
    %478 = vector.load %arg4[%c3_193, %c5_194, %c0_195] : memref<4x8x256xf32, #tpu.memory_space<vmem>>, vector<1x1x48xf32>
    %479 = vector.shape_cast %478 : vector<1x1x48xf32> to vector<1x48xf32>
    %c3_196 = arith.constant 3 : index
    %c6_197 = arith.constant 6 : index
    %c0_198 = arith.constant 0 : index
    %480 = vector.load %arg4[%c3_196, %c6_197, %c0_198] : memref<4x8x256xf32, #tpu.memory_space<vmem>>, vector<1x1x48xf32>
    %481 = vector.shape_cast %480 : vector<1x1x48xf32> to vector<1x48xf32>
    %c3_199 = arith.constant 3 : index
    %c7_200 = arith.constant 7 : index
    %c0_201 = arith.constant 0 : index
    %482 = vector.load %arg4[%c3_199, %c7_200, %c0_201] : memref<4x8x256xf32, #tpu.memory_space<vmem>>, vector<1x1x48xf32>
    %483 = vector.shape_cast %482 : vector<1x1x48xf32> to vector<1x48xf32>
    %484 = arith.truncf %459 : vector<8x48xf32> to vector<8x48xbf16>
    %cst_202 = arith.constant dense<0.000000e+00> : vector<8x256xf32>
    %485 = tpu.matmul %484, %461, %cst_202 {dimension_numbers = #tpu.dot_dimension_numbers<[1], [0], [0], [1], [0, 0, 1, 1], [], []>} : vector<8x48xbf16>, vector<48x256xbf16>, vector<8x256xf32> -> vector<8x256xf32>
    %486 = vector.broadcast %469 : vector<1x256xf32> to vector<8x256xf32>
    %487 = arith.addf %485, %486 : vector<8x256xf32>
    %488 = vector.extract_strided_slice %487 {offsets = [0, 0], sizes = [8, 12], strides = [1, 1]} : vector<8x256xf32> to vector<8x12xf32>
    %489 = vector.shape_cast %488 : vector<8x12xf32> to vector<1x8x12xf32>
    %490 = vector.extract_strided_slice %487 {offsets = [0, 12], sizes = [8, 12], strides = [1, 1]} : vector<8x256xf32> to vector<8x12xf32>
    %491 = vector.shape_cast %490 : vector<8x12xf32> to vector<1x8x12xf32>
    %492 = vector.extract_strided_slice %487 {offsets = [0, 24], sizes = [8, 12], strides = [1, 1]} : vector<8x256xf32> to vector<8x12xf32>
    %493 = vector.shape_cast %492 : vector<8x12xf32> to vector<1x8x12xf32>
    %494 = vector.extract_strided_slice %487 {offsets = [0, 36], sizes = [8, 12], strides = [1, 1]} : vector<8x256xf32> to vector<8x12xf32>
    %495 = vector.shape_cast %494 : vector<8x12xf32> to vector<1x8x12xf32>
    %496 = tpu.concatenate %489, %491, %493, %495 in 0 : vector<1x8x12xf32>, vector<1x8x12xf32>, vector<1x8x12xf32>, vector<1x8x12xf32> -> vector<4x8x12xf32>
    %497 = vector.extract_strided_slice %487 {offsets = [0, 48], sizes = [8, 12], strides = [1, 1]} : vector<8x256xf32> to vector<8x12xf32>
    %498 = vector.shape_cast %497 : vector<8x12xf32> to vector<1x8x12xf32>
    %499 = vector.extract_strided_slice %487 {offsets = [0, 60], sizes = [8, 12], strides = [1, 1]} : vector<8x256xf32> to vector<8x12xf32>
    %500 = vector.shape_cast %499 : vector<8x12xf32> to vector<1x8x12xf32>
    %501 = vector.extract_strided_slice %487 {offsets = [0, 72], sizes = [8, 12], strides = [1, 1]} : vector<8x256xf32> to vector<8x12xf32>
    %502 = vector.shape_cast %501 : vector<8x12xf32> to vector<1x8x12xf32>
    %503 = vector.extract_strided_slice %487 {offsets = [0, 84], sizes = [8, 12], strides = [1, 1]} : vector<8x256xf32> to vector<8x12xf32>
    %504 = vector.shape_cast %503 : vector<8x12xf32> to vector<1x8x12xf32>
    %505 = tpu.concatenate %498, %500, %502, %504 in 0 : vector<1x8x12xf32>, vector<1x8x12xf32>, vector<1x8x12xf32>, vector<1x8x12xf32> -> vector<4x8x12xf32>
    %506 = vector.extract_strided_slice %487 {offsets = [0, 96], sizes = [8, 12], strides = [1, 1]} : vector<8x256xf32> to vector<8x12xf32>
    %507 = vector.shape_cast %506 : vector<8x12xf32> to vector<1x8x12xf32>
    %508 = vector.extract_strided_slice %487 {offsets = [0, 108], sizes = [8, 12], strides = [1, 1]} : vector<8x256xf32> to vector<8x12xf32>
    %509 = vector.shape_cast %508 : vector<8x12xf32> to vector<1x8x12xf32>
    %510 = vector.extract_strided_slice %487 {offsets = [0, 120], sizes = [8, 12], strides = [1, 1]} : vector<8x256xf32> to vector<8x12xf32>
    %511 = vector.shape_cast %510 : vector<8x12xf32> to vector<1x8x12xf32>
    %512 = vector.extract_strided_slice %487 {offsets = [0, 132], sizes = [8, 12], strides = [1, 1]} : vector<8x256xf32> to vector<8x12xf32>
    %513 = vector.shape_cast %512 : vector<8x12xf32> to vector<1x8x12xf32>
    %514 = tpu.concatenate %507, %509, %511, %513 in 0 : vector<1x8x12xf32>, vector<1x8x12xf32>, vector<1x8x12xf32>, vector<1x8x12xf32> -> vector<4x8x12xf32>
    "tpu.trace_start"() <{level = 10 : i32, message = "bqd,bkd->bqk"}> : () -> ()
    %cst_203 = arith.constant dense<0.000000e+00> : vector<4x8x8xf32>
    %515 = tpu.matmul %496, %505, %cst_203 {dimension_numbers = #tpu.dot_dimension_numbers<[2], [2], [1], [1], [0, 0, 0, 1, 1, 1], [0], [0]>} : vector<4x8x12xf32>, vector<4x8x12xf32>, vector<4x8x8xf32> -> vector<4x8x8xf32>
    "tpu.trace_stop"() : () -> ()
    %cst_204 = arith.constant 0.288675129 : f32
    %516 = vector.broadcast %cst_204 : f32 to vector<4x8x8xf32>
    %517 = arith.mulf %515, %516 : vector<4x8x8xf32>
    %518 = arith.addf %517, %27 : vector<4x8x8xf32>
    %cst_205 = arith.constant dense<0xFF800000> : vector<4x8xf32>
    %519 = vector.multi_reduction <maximumf>, %518, %cst_205 [2] : vector<4x8x8xf32> to vector<4x8xf32>
    %520 = vector.shape_cast %519 : vector<4x8xf32> to vector<4x8x1xf32>
    %521 = vector.broadcast %520 : vector<4x8x1xf32> to vector<4x8x8xf32>
    %522 = arith.subf %518, %521 : vector<4x8x8xf32>
    %523 = math.exp %522 : vector<4x8x8xf32>
    %cst_206 = arith.constant dense<0.000000e+00> : vector<4x8xf32>
    %524 = vector.multi_reduction <add>, %523, %cst_206 [2] : vector<4x8x8xf32> to vector<4x8xf32>
    %525 = vector.shape_cast %524 : vector<4x8xf32> to vector<4x8x1xf32>
    %526 = tpu.reciprocal %525 {approx = true} : vector<4x8x1xf32> -> vector<4x8x1xf32>
    %527 = vector.broadcast %526 : vector<4x8x1xf32> to vector<4x8x8xf32>
    %528 = arith.mulf %523, %527 : vector<4x8x8xf32>
    "tpu.trace_start"() <{level = 10 : i32, message = "bqk,bkd->bqd"}> : () -> ()
    %cst_207 = arith.constant dense<0.000000e+00> : vector<4x8x12xf32>
    %529 = tpu.matmul %528, %514, %cst_207 {dimension_numbers = #tpu.dot_dimension_numbers<[2], [1], [1], [2], [0, 0, 0, 1, 1, 2], [0], [0]>} : vector<4x8x8xf32>, vector<4x8x12xf32>, vector<4x8x12xf32> -> vector<4x8x12xf32>
    "tpu.trace_stop"() : () -> ()
    %530 = vector.shape_cast %529 : vector<4x8x12xf32> to vector<4x1x8x12xf32>
    %531 = vector.extract_strided_slice %530 {offsets = [0, 0, 0, 0], sizes = [1, 1, 8, 12], strides = [1, 1, 1, 1]} : vector<4x1x8x12xf32> to vector<1x1x8x12xf32>
    %532 = vector.shape_cast %531 : vector<1x1x8x12xf32> to vector<1x8x12xf32>
    %533 = vector.shape_cast %532 : vector<1x8x12xf32> to vector<8x12xf32>
    %534 = vector.extract_strided_slice %530 {offsets = [1, 0, 0, 0], sizes = [1, 1, 8, 12], strides = [1, 1, 1, 1]} : vector<4x1x8x12xf32> to vector<1x1x8x12xf32>
    %535 = vector.shape_cast %534 : vector<1x1x8x12xf32> to vector<1x8x12xf32>
    %536 = vector.shape_cast %535 : vector<1x8x12xf32> to vector<8x12xf32>
    %537 = vector.extract_strided_slice %530 {offsets = [2, 0, 0, 0], sizes = [1, 1, 8, 12], strides = [1, 1, 1, 1]} : vector<4x1x8x12xf32> to vector<1x1x8x12xf32>
    %538 = vector.shape_cast %537 : vector<1x1x8x12xf32> to vector<1x8x12xf32>
    %539 = vector.shape_cast %538 : vector<1x8x12xf32> to vector<8x12xf32>
    %540 = vector.extract_strided_slice %530 {offsets = [3, 0, 0, 0], sizes = [1, 1, 8, 12], strides = [1, 1, 1, 1]} : vector<4x1x8x12xf32> to vector<1x1x8x12xf32>
    %541 = vector.shape_cast %540 : vector<1x1x8x12xf32> to vector<1x8x12xf32>
    %542 = vector.shape_cast %541 : vector<1x8x12xf32> to vector<8x12xf32>
    %543 = tpu.concatenate %533, %536, %539, %542 in 1 : vector<8x12xf32>, vector<8x12xf32>, vector<8x12xf32>, vector<8x12xf32> -> vector<8x48xf32>
    %544 = arith.truncf %543 : vector<8x48xf32> to vector<8x48xbf16>
    %cst_208 = arith.constant dense<0.000000e+00> : vector<8x48xf32>
    %545 = tpu.matmul %544, %467, %cst_208 {dimension_numbers = #tpu.dot_dimension_numbers<[1], [0], [0], [1], [0, 0, 1, 1], [], []>} : vector<8x48xbf16>, vector<48x48xbf16>, vector<8x48xf32> -> vector<8x48xf32>
    %546 = vector.broadcast %471 : vector<1x48xf32> to vector<8x48xf32>
    %547 = arith.addf %545, %546 : vector<8x48xf32>
    %548 = arith.addf %459, %547 : vector<8x48xf32>
    %cst_209 = arith.constant dense<0.000000e+00> : vector<8xf32>
    %549 = vector.multi_reduction <add>, %548, %cst_209 [1] : vector<8x48xf32> to vector<8xf32>
    %550 = vector.shape_cast %549 : vector<8xf32> to vector<8x1xf32>
    %cst_210 = arith.constant 4.800000e+01 : f32
    %551 = vector.broadcast %cst_210 : f32 to vector<8x1xf32>
    %552 = arith.divf %550, %551 : vector<8x1xf32>
    %553 = vector.broadcast %552 : vector<8x1xf32> to vector<8x48xf32>
    %554 = arith.subf %548, %553 : vector<8x48xf32>
    %555 = arith.mulf %554, %554 : vector<8x48xf32>
    %cst_211 = arith.constant dense<0.000000e+00> : vector<8xf32>
    %556 = vector.multi_reduction <add>, %555, %cst_211 [1] : vector<8x48xf32> to vector<8xf32>
    %557 = vector.shape_cast %556 : vector<8xf32> to vector<8x1xf32>
    %cst_212 = arith.constant 4.800000e+01 : f32
    %558 = vector.broadcast %cst_212 : f32 to vector<8x1xf32>
    %559 = arith.divf %557, %558 : vector<8x1xf32>
    %560 = vector.broadcast %552 : vector<8x1xf32> to vector<8x48xf32>
    %561 = arith.subf %548, %560 : vector<8x48xf32>
    %cst_213 = arith.constant 9.99999974E-6 : f32
    %562 = vector.broadcast %cst_213 : f32 to vector<8x1xf32>
    %563 = arith.addf %559, %562 : vector<8x1xf32>
    %564 = math.rsqrt %563 : vector<8x1xf32>
    %565 = vector.broadcast %564 : vector<8x1xf32> to vector<8x48xf32>
    %566 = arith.mulf %561, %565 : vector<8x48xf32>
    %567 = vector.broadcast %473 : vector<1x48xf32> to vector<8x48xf32>
    %568 = arith.mulf %566, %567 : vector<8x48xf32>
    %569 = vector.broadcast %475 : vector<1x48xf32> to vector<8x48xf32>
    %570 = arith.addf %568, %569 : vector<8x48xf32>
    %571 = arith.truncf %570 : vector<8x48xf32> to vector<8x48xbf16>
    %cst_214 = arith.constant dense<0.000000e+00> : vector<8x256xf32>
    %572 = tpu.matmul %571, %463, %cst_214 {dimension_numbers = #tpu.dot_dimension_numbers<[1], [0], [0], [1], [0, 0, 1, 1], [], []>} : vector<8x48xbf16>, vector<48x256xbf16>, vector<8x256xf32> -> vector<8x256xf32>
    %573 = vector.broadcast %477 : vector<1x256xf32> to vector<8x256xf32>
    %574 = arith.addf %572, %573 : vector<8x256xf32>
    %cst_215 = arith.constant 0.000000e+00 : f32
    %575 = vector.broadcast %cst_215 : f32 to vector<8x256xf32>
    %576 = arith.maximumf %574, %575 : vector<8x256xf32>
    %577 = arith.truncf %576 : vector<8x256xf32> to vector<8x256xbf16>
    %cst_216 = arith.constant dense<0.000000e+00> : vector<8x48xf32>
    %578 = tpu.matmul %577, %465, %cst_216 {dimension_numbers = #tpu.dot_dimension_numbers<[1], [1], [0], [0], [0, 0, 1, 0], [], []>} : vector<8x256xbf16>, vector<48x256xbf16>, vector<8x48xf32> -> vector<8x48xf32>
    %579 = vector.broadcast %479 : vector<1x48xf32> to vector<8x48xf32>
    %580 = arith.addf %578, %579 : vector<8x48xf32>
    %581 = arith.addf %570, %580 : vector<8x48xf32>
    %cst_217 = arith.constant dense<0.000000e+00> : vector<8xf32>
    %582 = vector.multi_reduction <add>, %581, %cst_217 [1] : vector<8x48xf32> to vector<8xf32>
    %583 = vector.shape_cast %582 : vector<8xf32> to vector<8x1xf32>
    %cst_218 = arith.constant 4.800000e+01 : f32
    %584 = vector.broadcast %cst_218 : f32 to vector<8x1xf32>
    %585 = arith.divf %583, %584 : vector<8x1xf32>
    %586 = vector.broadcast %585 : vector<8x1xf32> to vector<8x48xf32>
    %587 = arith.subf %581, %586 : vector<8x48xf32>
    %588 = arith.mulf %587, %587 : vector<8x48xf32>
    %cst_219 = arith.constant dense<0.000000e+00> : vector<8xf32>
    %589 = vector.multi_reduction <add>, %588, %cst_219 [1] : vector<8x48xf32> to vector<8xf32>
    %590 = vector.shape_cast %589 : vector<8xf32> to vector<8x1xf32>
    %cst_220 = arith.constant 4.800000e+01 : f32
    %591 = vector.broadcast %cst_220 : f32 to vector<8x1xf32>
    %592 = arith.divf %590, %591 : vector<8x1xf32>
    %593 = vector.broadcast %585 : vector<8x1xf32> to vector<8x48xf32>
    %594 = arith.subf %581, %593 : vector<8x48xf32>
    %cst_221 = arith.constant 9.99999974E-6 : f32
    %595 = vector.broadcast %cst_221 : f32 to vector<8x1xf32>
    %596 = arith.addf %592, %595 : vector<8x1xf32>
    %597 = math.rsqrt %596 : vector<8x1xf32>
    %598 = vector.broadcast %597 : vector<8x1xf32> to vector<8x48xf32>
    %599 = arith.mulf %594, %598 : vector<8x48xf32>
    %600 = vector.broadcast %481 : vector<1x48xf32> to vector<8x48xf32>
    %601 = arith.mulf %599, %600 : vector<8x48xf32>
    %602 = vector.broadcast %483 : vector<1x48xf32> to vector<8x48xf32>
    %603 = arith.addf %601, %602 : vector<8x48xf32>
    %604 = vector.shape_cast %603 : vector<8x48xf32> to vector<1x8x48xf32>
    %cst_222 = arith.constant dense<0.000000e+00> : vector<1x48xf32>
    %605 = vector.multi_reduction <add>, %604, %cst_222 [1] : vector<1x8x48xf32> to vector<1x48xf32>
    %cst_223 = arith.constant 8.000000e+00 : f32
    %606 = vector.broadcast %cst_223 : f32 to vector<1x48xf32>
    %607 = arith.divf %605, %606 : vector<1x48xf32>
    %c8 = arith.constant 8 : index
    %c0_224 = arith.constant 0 : index
    %608 = vector.load %arg5[%c8, %c0_224] : memref<88x48xf32, #tpu.memory_space<vmem>>, vector<48x24xf32>
    %c56 = arith.constant 56 : index
    %c0_225 = arith.constant 0 : index
    %609 = vector.load %arg5[%c56, %c0_225] : memref<88x48xf32, #tpu.memory_space<vmem>>, vector<1x24xf32>
    %c64 = arith.constant 64 : index
    %c0_226 = arith.constant 0 : index
    %610 = vector.load %arg5[%c64, %c0_226] : memref<88x48xf32, #tpu.memory_space<vmem>>, vector<24x1xf32>
    %c57 = arith.constant 57 : index
    %c0_227 = arith.constant 0 : index
    %611 = vector.load %arg5[%c57, %c0_227] : memref<88x48xf32, #tpu.memory_space<vmem>>, vector<1x1xf32>
    %cst_228 = arith.constant dense<0.000000e+00> : vector<1x24xf32>
    %612 = tpu.matmul %607, %608, %cst_228 {dimension_numbers = #tpu.dot_dimension_numbers<[1], [0], [0], [1], [0, 0, 1, 1], [], []>} : vector<1x48xf32>, vector<48x24xf32>, vector<1x24xf32> -> vector<1x24xf32>
    %613 = arith.addf %612, %609 : vector<1x24xf32>
    %cst_229 = arith.constant 0.000000e+00 : f32
    %614 = vector.broadcast %cst_229 : f32 to vector<1x24xf32>
    %615 = arith.maximumf %613, %614 : vector<1x24xf32>
    %cst_230 = arith.constant dense<0.000000e+00> : vector<1x1xf32>
    %616 = tpu.matmul %615, %610, %cst_230 {dimension_numbers = #tpu.dot_dimension_numbers<[1], [0], [0], [1], [0, 0, 1, 1], [], []>} : vector<1x24xf32>, vector<24x1xf32>, vector<1x1xf32> -> vector<1x1xf32>
    %617 = arith.addf %616, %611 : vector<1x1xf32>
    %cst_231 = arith.constant 0.000000e+00 : f32
    %618 = vector.broadcast %cst_231 : f32 to vector<1x1xf32>
    %619 = arith.subf %618, %617 : vector<1x1xf32>
    %620 = math.exp %619 : vector<1x1xf32>
    %cst_232 = arith.constant 1.000000e+00 : f32
    %621 = vector.broadcast %cst_232 : f32 to vector<1x1xf32>
    %622 = arith.addf %621, %620 : vector<1x1xf32>
    %cst_233 = arith.constant 1.000000e+00 : f32
    %623 = vector.broadcast %cst_233 : f32 to vector<1x1xf32>
    %624 = arith.divf %623, %622 : vector<1x1xf32>
    %625 = vector.shape_cast %624 : vector<1x1xf32> to vector<1x1x1xf32>
    %c0_234 = arith.constant 0 : index
    %c0_235 = arith.constant 0 : index
    %c0_236 = arith.constant 0 : index
    %626 = vector.load %arg6[%c0_234, %c0_235, %c0_236] : memref<1x1x1xf32, #tpu.memory_space<vmem>>, vector<1x1x1xf32>
    tpu.vector_store %arg6[%c0_234, %c0_235, %c0_236], %625 {strides = array<i32>} : memref<1x1x1xf32, #tpu.memory_space<vmem>>, vector<1x1x1xf32>,
    return
  }
  func.func @transform_0(%arg0: i32) -> (i32, i32, i32) {
    %c0_i32 = arith.constant 0 : i32
    %c0_i32_0 = arith.constant 0 : i32
    %c0_i32_1 = arith.constant 0 : i32
    return %arg0, %c0_i32, %c0_i32_0 : i32, i32, i32
  }
  func.func @transform_1(%arg0: i32) -> (i32, i32, i32) {
    %c0_i32 = arith.constant 0 : i32
    %c0_i32_0 = arith.constant 0 : i32
    %c0_i32_1 = arith.constant 0 : i32
    return %arg0, %c0_i32, %c0_i32_0 : i32, i32, i32
  }
  func.func @transform_2(%arg0: i32) -> (i32, i32, i32) {
    %c0_i32 = arith.constant 0 : i32
    %c0_i32_0 = arith.constant 0 : i32
    %c0_i32_1 = arith.constant 0 : i32
    %c0_i32_2 = arith.constant 0 : i32
    return %c0_i32, %c0_i32_0, %c0_i32_1 : i32, i32, i32
  }
  func.func @transform_3(%arg0: i32) -> (i32, i32, i32) {
    %c0_i32 = arith.constant 0 : i32
    %c0_i32_0 = arith.constant 0 : i32
    %c0_i32_1 = arith.constant 0 : i32
    %c0_i32_2 = arith.constant 0 : i32
    return %c0_i32, %c0_i32_0, %c0_i32_1 : i32, i32, i32
  }
  func.func @transform_4(%arg0: i32) -> (i32, i32) {
    %c0_i32 = arith.constant 0 : i32
    %c0_i32_0 = arith.constant 0 : i32
    %c0_i32_1 = arith.constant 0 : i32
    return %c0_i32, %c0_i32_0 : i32, i32
  }
  func.func @transform_5(%arg0: i32) -> (i32, i32, i32) {
    %c0_i32 = arith.constant 0 : i32
    %c0_i32_0 = arith.constant 0 : i32
    %c0_i32_1 = arith.constant 0 : i32
    return %arg0, %c0_i32, %c0_i32_0 : i32, i32, i32
  }
}

</mosaic_0001>

<bundles_post_ra>
// kernel: transaction_transformer_forward.1
= control target key start
LH: loop header
LB: loop body
LE: loop exit
PB: predicated region body
PF: predicated region fallthrough
CT: control target
= control target key end

     0   :  { %10 = vsyncpa [#allocation3], 0  ;;  %s5621_s18 = smov 0   ;;  %s6256_s0 = inlined_call_operand.vmem [shape: f32[2,8,3], index: 0, kind: input, shape index: {}]   ;;  %s6257_s1 = inlined_call_operand.vmem [shape: f32[2,8,8], index: 1, kind: input, shape index: {}]   ;;  %s6258_s2 = inlined_call_operand.hbm [shape: bf16[4,48,896], index: 2, kind: input, shape index: {}]   ;;  %s6259_s3 = inlined_call_operand.vmem [shape: f32[4,8,256], index: 3, kind: input, shape index: {}]   ;;  %s6260_s4 = inlined_call_operand.vmem [shape: f32[88,48], index: 4, kind: input, shape index: {}]   ;;  %s6261_s5 = inlined_call_operand.vmem [shape: f32[2,1,1], index: 5, kind: output, shape index: {}]  }
   0x1 LB: > { %s5627_s19 = sadd.s32 4294967295, %s5573_s18   ;;  %p4798_p0 = scmp.ge.s32.totalorder %s5573_s18, 1  ;;  %s5573_s18 = sphi %s5621_s18, %s16_s18  }
   0x2   : > { %p162_p1 = scmp.lt.s32.totalorder %s5573_s18, 3  ;;  %s5575_s20 = smov [#allocation2]  }
   0x3   : > { %s174_s21 = sshll.u32 %s5575_s20, 4  ;;  %p5302_p3 = scmp.eq.s32.totalorder %s5627_s19, 0  ;;  %s175_s21 = int_to_ptr.vmem [resolvable:$true] %s174_s21 }
   0x4   : > { %p5631_p2 = pnand %p4798_p0, %p162_p1  ;;  %s5548_s23 = scalar_lea.vmem %s175_s21, 10752 }
   0x5   : > { %p5549_p7 = scmp.ne.s32.totalorder %s175_s21, %s5548_s23  ;;  %p5556_p10 = scmp.lt.s32.totalorder %s175_s21, %s175_s21 }
   0x6   : > { %p5298_p4 = pneg %p5631_p2  ;;  %p5557_p11 = scmp.lt.s32.totalorder %s5548_s23, %s5548_s23 }
   0x8   : > { %p5299_p5 = pnand %p5302_p3, %p5298_p4  ;;  %p5558_p12 = por %p5557_p11, %p5556_p10 }
   0xa   : > { %p5539_p6 = pneg %p5299_p5 }
   0xc   : > { %p5551_p8 = pnand %p5549_p7, %p5539_p6 }
   0xe   : > { %p5552_p9 = pneg %p5551_p8 }
  0x10   : > { %p5559_p13 = pnand %p5558_p12, %p5552_p9 }
  0x12   : > { %5562 = shalt.err (!%p5559_p13)
}
  0x13   : > { %s5576_s24 = smov 448   ;;  %s5577_s25 = smov 28  }
  0x14   : > { %5301 = dma.hbm_to_vmem [thread:$0]  (!%p5299_p5), %s6258_s2, 10752, %s175_s21, [#allocation3], %s5576_s24, %s5576_s24, %s5577_s25  }
  0x15   : > { %210 = sbr.rel (%p5631_p2) target bundleno = 10491 (0x28fb), region = 40 }
  0x1a   : > { %5568 = dma.done.wait (%p5302_p3), [#allocation3], 10752  }
  0x1b   : > { %5570 = vsyncadd (%p5302_p3), [#allocation3], 4294956544  ;;  %p239_p0 = scmp.lt.s32.totalorder %s5627_s19, 1  ;;  %v5578_v0 = vmov 0   ;;  %v5579_v1 = vmov 2   ;;  %v5580_v7 = vmov 1   ;;  %v259_v10 = vlaneseq }
  0x1c   : > { %5328 = vset.pattern.permute.xlu0 %v5578_v0  ;;  %5330 = vset.pattern.permute.xlu1 %v5579_v1  ;;  %v5332_v3 = vld [vmem:[#allocation2 + $0x74] ss:$28 sps:$4 sm:$0xff]   ;;  %v5335_v5 = vld [vmem:[#allocation2 + $0x3c] ss:$28 sps:$4 sm:$0xff]   ;;  %v5338_v8 = vld [vmem:[#allocation2 + $0x4] ss:$28 sps:$4 sm:$0xff]  }
  0x1d   : > { %s6264_s19 = smov (!%p239_p0, %s5627_s19), 1  ;;  %401 = vmatprep.mubr.bf16.mxu0 %v5578_v0  ;;  %v5334_v4 = vld [vmem:[#allocation2 + $0x70] ss:$28 sps:$4 sm:$0xff]   ;;  %379 = vmatprep.subr.bf16.mxu0 %v5332_v3  ;;  %v5337_v6 = vld [vmem:[#allocation2 + $0x38] ss:$28 sps:$4 sm:$0xff]   ;;  %v260_v11 = vshrl.u32 %v259_v10, 7 }
  0x1e   : > { %s4803_s28 = sshll.u32 %s6264_s19, 3  ;;  %380 = vmatpush1.bf16.msra.mxu0 %v5334_v4  ;;  %v5340_v9 = vld [vmem:[#allocation2] ss:$28 sps:$4 sm:$0xff]   ;;  %vm365_vm0 = vcmask 392192   ;;  %v5581_v30 = vmov 0.0   ;;  %vm5582_vm1 = vmmov 0   ;;  %s249_s12 = scalar_lea.vmem %s6261_s5, %s6264_s19 }
  0x1f   : > { %s242_s6 = scalar_lea.vmem %s6256_s0, %s4803_s28  ;;  %381 = vmatprep.subr.bf16.mxu0 %v5335_v5  ;;  %v5661_v12 = vsub.s32 0, %v260_v11  ;;  %v5663_v13 = vsub.s32 1, %v260_v11  ;;  %v280_v14 = vsub.s32 2, %v260_v11  ;;  %v252_v15 = vld [vmem:[%s6260_s4] sm:$0x7]  ;;  %5075 = vmatprep.subr.mxu1 %v5581_v30  ;;  %s5583_s13 = smov 92  }
  0x20   : > { %v251_v2 = vld [vmem:[%s242_s6] sm:$0xff]  ;;  %5077 = vmatprep.mubr.msk.f32.mxu1 %vm5582_vm1, %v5581_v30  ;;  %s5584_s14 = smov 116   ;;  %s5585_s15 = smov 80   ;;  %vm426_vm2 = vcmask 97280   ;;  %vm737_vm3 = vcmask 64512   ;;  %vm420_vm4 = vcmask 850944  }
  0x21   : > { %256 = vperm.xlu0 %5328, %v251_v2   ;;  %275 = vperm.xlu1 %5330, %v251_v2   ;;  %v262_v17 = vrot.slane %v252_v15, %v5661_v12  ;;  %v271_v18 = vrot.slane %v252_v15, %v5663_v13  ;;  %v281_v19 = vrot.slane %v252_v15, %v280_v14  ;;  %v4805_v26 = vld [vmem:[%s6260_s4 + $0x3] ss:$0 sm:$0xff]  ;;  %v5683_v31 = vld [vmem:[%s6259_s3] ss:$8 sm:$0x3]  ;;  %s5586_s16 = smov 104   ;;  %s5736_s21 = scalar_lea.vmem %s6257_s1, %s4803_s28 }
  0x22   : > { %382 = vmatpush1.bf16.msra.mxu0 %v5337_v6  ;;  %v328_v32 = vrot.slane %v5683_v31, %v5661_v12  ;;  %v5739_v45 = vld [vmem:[%s5736_s21] sm:$0xff]  ;;  %v332_v3 = vrot.slane %v5683_v31, %v5663_v13  ;;  %s5587_s22 = smov 32   ;;  %s5588_s23 = smov 12   ;;  %vm1099_vm5 = vcmask 195584   ;;  %vm1101_vm6 = vcmask 293888  }
  0x23   : > { %383 = vmatprep.subr.bf16.mxu0 %v5338_v8  ;;  %s5589_s24 = smov 24   ;;  %s5590_s25 = smov 36   ;;  %vm4720_vm7 = vcmask 0  }
  0x25   : > { %5329 = vset.pattern.permute.xlu0 %v5580_v7 }
  0x26   : > { %265 = vperm.xlu0 %5329, %v251_v2   ;;  %384 = vmatpush1.bf16.msra.mxu0 %v5340_v9 }
  0x27   : > { %5070 = vmatprep.subr.mxu0 %v5581_v30 }
  0x2a   : > { %5331 = vset.pattern.permute.xlu0 %v5579_v1 }
  0x9c   : > { %v257_v16 = vpop.permute.xlu0 %256  ;;  %v276_v20 = vpop.permute.xlu1 %275 }
  0x9d   : > { %v263_v22 = vmul.f32 %v262_v17, %v257_v16  ;;  %v282_v24 = vmul.f32 %v281_v19, %v276_v20 }
  0xa1   : > { %v266_v21 = vpop.permute.xlu0 %265 }
  0xa2   : > { %v272_v23 = vmul.f32 %v271_v18, %v266_v21 }
  0xa4   : > { %v273_v25 = vadd.f32 %v272_v23, %v263_v22 }
  0xa6   : > { %v283_v27 = vadd.f32 %v282_v24, %v273_v25 }
  0xa8   : > { %v5673_v28 = vadd.f32 %v4805_v26, %v283_v27 }
  0xaa   : > { %v323_v29 = vpack.c.bf16 %v5673_v28, %v5673_v28 }
  0xac   : > { %4813 = vmatmul.mubr.msk.bf16.vlgmr.msra.gmra.mxu0 %vm365_vm0, %v323_v29 }
  0xad   : > { %5072 = vmatprep.mubr.msk.f32.mxu0 %vm5582_vm1, %v5581_v30 }
 0x16c   : > { %v403_v33 = vpop.f32.mrf.mxu0 }
 0x16d   : > { %v5691_v34 = vadd.f32 %v403_v33, %v328_v32 }
 0x16e   : > { %v5693_v35 = vpop.f32.mrf.mxu0 }
 0x16f   : > { %415 = vrot.lane.b32.xlu0 %v5691_v34, %s5583_s13  ;;  %411 = vrot.lane.b32.xlu1 %v5691_v34, %s5584_s14  ;;  %v406_v4 = vadd.f32 %v5693_v35, %v332_v3 }
 0x170   : > { %v407_v36 = vpop.f32.mrf.mxu0 }
 0x172   : > { %v408_v37 = vpop.f32.mrf.mxu0 }
 0x173   : > { %424 = vrot.lane.b32.xlu0 %v5691_v34, %s5585_s15  ;;  %413 = vrot.lane.b32.xlu1 %v5691_v34, %s5586_s16 }
 0x1e1   : > { %v416_v38 = vpop.permute.xlu0 %415  ;;  %v412_v39 = vpop.permute.xlu1 %411 }
 0x1e2   : > { %653 = vrot.lane.b32.xlu0 %v416_v38, %s5585_s15  ;;  %501 = vrot.lane.b32.xlu1 %v412_v39, %s5585_s15 }
 0x1e5   : > { %v425_v40 = vpop.permute.xlu0 %424  ;;  %v5705_v41 = vpop.permute.xlu1 %413 }
 0x1e6   : > { %5071 = vmatpush3.xpose.msk.msra.mxu0 %vm426_vm2, %v425_v40  ;;  %577 = vrot.lane.b32.xlu1 %v5705_v41, %s5585_s15 }
 0x1e7   : > { %5090 = vmatprep.subr.mxu0 %v5581_v30 }
 0x1e9   : > { %5073 = vmatmul.mubr.msk.f32.vlgmr.msra.gmra.mxu0 %vm426_vm2, %v5691_v34 }
 0x1ea   : > { %5092 = vmatprep.mubr.msk.f32.mxu0 %vm5582_vm1, %v5581_v30 }
 0x254   : > { %v502_v42 = vpop.permute.xlu1 %501  ;;  %v654_v44 = vpop.permute.xlu0 %653 }
 0x255   : > { %5076 = vmatpush3.xpose.msk.msra.mxu1 %vm426_vm2, %v502_v42 }
 0x256   : > { %5080 = vmatprep.subr.mxu1 %v5581_v30 }
 0x258   : > { %5078 = vmatmul.mubr.msk.f32.vlgmr.msra.gmra.mxu1 %vm426_vm2, %v412_v39  ;;  %v578_v43 = vpop.permute.xlu1 %577 }
 0x259   : > { %5081 = vmatpush3.xpose.msk.msra.mxu1 %vm426_vm2, %v578_v43  ;;  %5082 = vmatprep.mubr.msk.f32.mxu1 %vm5582_vm1, %v5581_v30 }
 0x25a   : > { %5085 = vmatprep.subr.mxu1 %v5581_v30 }
 0x25c   : > { %5083 = vmatmul.mubr.msk.f32.vlgmr.msra.gmra.mxu1 %vm426_vm2, %v5705_v41 }
 0x25d   : > { %5086 = vmatpush3.xpose.msk.msra.mxu1 %vm426_vm2, %v654_v44  ;;  %5087 = vmatprep.mubr.msk.f32.mxu1 %vm5582_vm1, %v5581_v30 }
 0x25e   : > { %5095 = vmatprep.subr.mxu1 %v5581_v30 }
 0x260   : > { %5088 = vmatmul.mubr.msk.f32.vlgmr.msra.gmra.mxu1 %vm426_vm2, %v416_v38 }
 0x261   : > { %5097 = vmatprep.mubr.msk.f32.mxu1 %vm5582_vm1, %v5581_v30 }
 0x2a9   : > { %v497_v46 = vpop.f32.mrf.mxu0 }
 0x2aa   : > { %v729_v47 = vmul.f32 0.28867513, %v497_v46 }
 0x2ab   : > { %v5074_v48 = vpop.f32.mrf.mxu0 }
 0x2ac   : > { %v733_v49 = vadd.f32 %v729_v47, %v5739_v45 }
 0x2ae   : > { %v738_v50 = vsel %vm737_vm3, %v733_v49, -inf }
 0x2af   : > { %739 = vmax.xlane.f32.xlu1 %v738_v50 }
 0x318   : > { %v573_v51 = vpop.f32.mrf.mxu1 }
 0x319   : > { %v730_v52 = vmul.f32 0.28867513, %v573_v51  ;;  %v5341_v51 = vld [vmem:[#allocation2 + $0x88] ss:$28 sps:$4 sm:$0xff]  }
 0x31a   : > { %v5079_v53 = vpop.f32.mrf.mxu1 }
 0x31b   : > { %v734_v54 = vadd.f32 %v730_v52, %v5739_v45  ;;  %v5342_v52 = vld [vmem:[#allocation2 + $0x50] ss:$28 sps:$4 sm:$0xff]   ;;  %v5343_v53 = vld [vmem:[#allocation2 + $0x18] ss:$28 sps:$4 sm:$0xff]  }
 0x31c   : > { %v649_v55 = vpop.f32.mrf.mxu1 }
 0x31d   : > { %v731_v56 = vmul.f32 0.28867513, %v649_v55  ;;  %v741_v57 = vsel %vm737_vm3, %v734_v54, -inf }
 0x31e   : > { %742 = vmax.xlane.f32.xlu0 %v741_v57  ;;  %v5084_v58 = vpop.f32.mrf.mxu1 }
 0x31f   : > { %v735_v59 = vadd.f32 %v731_v56, %v5739_v45 }
 0x320   : > { %v725_v60 = vpop.f32.mrf.mxu1 }
 0x321   : > { %v732_v61 = vmul.f32 0.28867513, %v725_v60  ;;  %v744_v62 = vsel %vm737_vm3, %v735_v59, -inf }
 0x322   : > { %745 = vmax.xlane.f32.xlu0 %v744_v62  ;;  %v5089_v63 = vpop.f32.mrf.mxu1 }
 0x323   : > { %v736_v1 = vadd.f32 %v732_v61, %v5739_v45 }
 0x325   : > { %v747_v2 = vsel %vm737_vm3, %v736_v1, -inf }
 0x326   : > { %748 = vmax.xlane.f32.xlu1 %v747_v2 }
 0x337   : > { %422 = vrot.lane.b32.xlu1 %v406_v4, %s5583_s13 }
 0x338   : > { %418 = vrot.lane.b32.xlu0 %v406_v4, %s5586_s16  ;;  %v740_v5 = vpop.xlane.xlu1 %739  ;;  %v315_v4 = vld [vmem:[%s6259_s3 + $0x1] ss:$0 sm:$0xff] }
 0x339   : > { %v750_v6 = vsub.f32 %v733_v49, %v740_v5 }
 0x33b   : > { %858 = vrot.lane.b32.xlu1 %v412_v39, %s5587_s22  ;;  %v754_v7 = vmul.f32 1.442695, %v750_v6 }
 0x33c   : > { %782 = vrot.lane.b32.xlu0 %v5691_v34, %s5587_s22 }
 0x33d   : > { %5452 = vpow2.f32 %v754_v7 }
 0x34a   : > { %v5453_v8 = vpop.eup %5452 }
 0x34b   : > { %v762_v9 = vsel %vm737_vm3, %v5453_v8, 0.0 }
 0x35f   : > { %763 = vadd.xlane.f32.xlu1 %v762_v9 }
 0x3a7   : > { %v743_v10 = vpop.xlane.xlu0 %742 }
 0x3a8   : > { %v751_v11 = vsub.f32 %v734_v54, %v743_v10 }
 0x3aa   : > { %v756_v14 = vmul.f32 1.442695, %v751_v11 }
 0x3ab   : > { %v746_v15 = vpop.xlane.xlu0 %745 }
 0x3ac   : > { %5454 = vpow2.f32 %v756_v14  ;;  %v752_v16 = vsub.f32 %v735_v59, %v746_v15 }
 0x3ae   : > { %v758_v17 = vmul.f32 1.442695, %v752_v16 }
 0x3af   : > { %v419_v18 = vpop.permute.xlu0 %418  ;;  %v749_v19 = vpop.xlane.xlu1 %748 }
 0x3b0   : > { %5456 = vpow2.f32 %v758_v17  ;;  %v753_v20 = vsub.f32 %v736_v1, %v749_v19  ;;  %v421_v33 = vsel %vm420_vm4, %v5705_v41, %v419_v18  ;;  %v5346_v19 = vld [vmem:[#allocation2 + $0x7c] ss:$28 sps:$4 sm:$0xff]  }
 0x3b2   : > { %v760_v21 = vmul.f32 1.442695, %v753_v20  ;;  %v5344_v20 = vld [vmem:[#allocation2 + $0x78] ss:$28 sps:$4 sm:$0xff]  }
 0x3b3   : > { %v783_v22 = vpop.permute.xlu0 %782  ;;  %v423_v23 = vpop.permute.xlu1 %422 }
 0x3b4   : > { %5458 = vpow2.f32 %v760_v21  ;;  %5091 = vmatpush3.msra.mxu0 %v783_v22  ;;  %v5349_v21 = vld [vmem:[#allocation2 + $0x44] ss:$28 sps:$4 sm:$0xff]  }
 0x3b5   : > { %5100 = vmatprep.subr.mxu0 %v5581_v30  ;;  %v5347_v22 = vld [vmem:[#allocation2 + $0x40] ss:$28 sps:$4 sm:$0xff]  }
 0x3b7   : > { %v859_v24 = vpop.permute.xlu1 %858 }
 0x3b8   : > { %5096 = vmatpush3.msra.mxu1 %v859_v24  ;;  %v5353_v24 = vld [vmem:[#allocation2 + $0x80] ss:$28 sps:$4 sm:$0xff]  }
 0x3b9   : > { %v5455_v25 = vpop.eup %5454  ;;  %5105 = vmatprep.subr.mxu1 %v5581_v30 }
 0x3ba   : > { %v765_v26 = vsel %vm737_vm3, %v5455_v25, 0.0 }
 0x3bb   : > { %766 = vadd.xlane.f32.xlu0 %v765_v26  ;;  %v5358_v26 = vld [vmem:[#allocation2 + $0x4c] ss:$28 sps:$4 sm:$0xff]  }
 0x3bd   : > { %v5457_v27 = vpop.eup %5456 }
 0x3be   : > { %v768_v29 = vsel %vm737_vm3, %v5457_v27, 0.0 }
 0x3bf   : > { %769 = vadd.xlane.f32.xlu0 %v768_v29 }
 0x3c1   : > { %v5459_v31 = vpop.eup %5458 }
 0x3c2   : > { %v771_v32 = vsel %vm737_vm3, %v5459_v31, 0.0 }
 0x3c3   : > { %772 = vadd.xlane.f32.xlu1 %v771_v32 }
 0x3d4   : > { %934 = vrot.lane.b32.xlu1 %v421_v33, %s5587_s22 }
 0x3d5   : > { %1010 = vrot.lane.b32.xlu0 %v423_v23, %s5587_s22  ;;  %v5352_v23 = vld [vmem:[#allocation2 + $0xc] ss:$28 sps:$4 sm:$0xff]  }
 0x3e8   : > { %v764_v34 = vpop.xlane.xlu1 %763 }
 0x3e9   : > { %5460 = vrcp.f32 %v764_v34  ;;  %v316_v34 = vld [vmem:[%s6259_s3 + $0x2] ss:$0 sm:$0xff] }
 0x3f6   : > { %v5461_v35 = vpop.eup %5460 }
 0x3f7   : > { %v778_v36 = vmul.f32 %v5461_v35, %v5453_v8 }
 0x3f9   : > { %5093 = vmatmul.mubr.msk.f32.vlgmr.msra.gmra.mxu0 %vm737_vm3, %v778_v36  ;;  %v317_v36 = vld [vmem:[%s6259_s3 + $0x3] ss:$0 sm:$0xff] }
 0x3fa   : > { %5102 = vmatprep.mubr.msk.f32.mxu0 %vm5582_vm1, %v5581_v30 }
 0x444   : > { %v767_v37 = vpop.xlane.xlu0 %766 }
 0x445   : > { %5462 = vrcp.f32 %v767_v37 }
 0x448   : > { %v770_v38 = vpop.xlane.xlu0 %769 }
 0x449   : > { %5464 = vrcp.f32 %v770_v38 }
 0x44c   : > { %v773_v39 = vpop.xlane.xlu1 %772  ;;  %v1011_v43 = vpop.permute.xlu0 %1010 }
 0x44d   : > { %5466 = vrcp.f32 %v773_v39 }
 0x450   : > { %v935_v40 = vpop.permute.xlu1 %934 }
 0x451   : > { %5101 = vmatpush3.msra.mxu0 %v935_v40  ;;  %v5361_v40 = vld [vmem:[#allocation2 + $0x14] ss:$28 sps:$4 sm:$0xff]  }
 0x452   : > { %v5463_v41 = vpop.eup %5462  ;;  %5110 = vmatprep.subr.bf16.mxu0 %v5581_v30 }
 0x453   : > { %v779_v42 = vmul.f32 %v5463_v41, %v5455_v25  ;;  %v5355_v25 = vld [vmem:[#allocation2 + $0x84] ss:$28 sps:$4 sm:$0xff]   ;;  %v5359_v41 = vld [vmem:[#allocation2 + $0x10] ss:$28 sps:$4 sm:$0xff]  }
 0x455   : > { %5098 = vmatmul.mubr.msk.f32.vlgmr.msra.gmra.mxu1 %vm737_vm3, %v779_v42  ;;  %v4806_v42 = vld [vmem:[%s6259_s3 + $0x4] ss:$8 sm:$0x3] }
 0x456   : > { %v5465_v44 = vpop.eup %5464  ;;  %5106 = vmatpush3.msra.mxu1 %v1011_v43  ;;  %5107 = vmatprep.mubr.msk.f32.mxu1 %vm5582_vm1, %v5581_v30  ;;  %v1187_v43 = vrot.slane %v4806_v42, %v5661_v12 }
 0x457   : > { %v780_v46 = vmul.f32 %v5465_v44, %v5457_v27  ;;  %1237 = vmatprep.subr.bf16.mxu1 %v5346_v19  ;;  %v5356_v27 = vld [vmem:[#allocation2 + $0x48] ss:$28 sps:$4 sm:$0xff]   ;;  %v1191_v44 = vrot.slane %v4806_v42, %v5663_v13 }
 0x459   : > { %5103 = vmatmul.mubr.msk.f32.vlgmr.msra.gmra.mxu0 %vm737_vm3, %v780_v46 }
 0x45a   : > { %v5467_v47 = vpop.eup %5466  ;;  %5116 = vmatprep.mubr.msk.bf16.mxu0 %vm5582_vm1, %v5581_v30  ;;  %5111 = vmatpush3.bf16.msra.mxu0 %v5341_v51 }
 0x45b   : > { %v781_v48 = vmul.f32 %v5467_v47, %v5459_v31  ;;  %5112 = vmatprep.subr.bf16.mxu0 %v5581_v30 }
 0x45d   : > { %5108 = vmatmul.mubr.msk.f32.vlgmr.msra.gmra.mxu1 %vm737_vm3, %v781_v48 }
 0x45e   : > { %1259 = vmatprep.mubr.bf16.mxu1 %v5578_v0  ;;  %5113 = vmatpush3.bf16.msra.mxu0 %v5342_v52 }
 0x45f   : > { %5114 = vmatprep.subr.bf16.mxu0 %v5581_v30  ;;  %1238 = vmatpush1.bf16.msra.mxu1 %v5344_v20  ;;  %v322_v20 = vld [vmem:[%s6259_s3 + $0x7] ss:$0 sm:$0xff] }
 0x460   : > { %1239 = vmatprep.subr.bf16.mxu1 %v5349_v21 }
 0x462   : > { %5115 = vmatpush3.bf16.msra.mxu0 %v5343_v53 }
 0x463   : > { %1240 = vmatpush1.bf16.msra.mxu1 %v5347_v22  ;;  %1312 = vmatprep.subr.bf16.mxu0 %v5355_v25 }
 0x464   : > { %1241 = vmatprep.subr.bf16.mxu1 %v5352_v23 }
 0x4b9   : > { %v854_v49 = vpop.f32.mrf.mxu0 }
 0x4bb   : > { %v5094_v50 = vpop.f32.mrf.mxu0 }
 0x515   : > { %v930_v54 = vpop.f32.mrf.mxu1 }
 0x516   : > { %1087 = vrot.lane.b32.xlu1 %v930_v54, %s5588_s23 }
 0x517   : > { %v5099_v55 = vpop.f32.mrf.mxu1 }
 0x519   : > { %v1006_v56 = vpop.f32.mrf.mxu0 }
 0x51a   : > { %1091 = vrot.lane.b32.xlu0 %v1006_v56, %s5589_s24  ;;  %v320_v56 = vld [vmem:[%s6259_s3 + $0x5] ss:$0 sm:$0xff] }
 0x51b   : > { %v5104_v57 = vpop.f32.mrf.mxu0 }
 0x51d   : > { %v1082_v58 = vpop.f32.mrf.mxu1 }
 0x51e   : > { %1095 = vrot.lane.b32.xlu1 %v1082_v58, %s5590_s25 }
 0x51f   : > { %v5109_v59 = vpop.f32.mrf.mxu1 }
 0x588   : > { %v1088_v60 = vpop.permute.xlu1 %1087 }
 0x589   : > { %v1098_v62 = vsel %vm426_vm2, %v854_v49, %v1088_v60 }
 0x58c   : > { %v1092_v61 = vpop.permute.xlu0 %1091 }
 0x58d   : > { %v1100_v63 = vsel %vm1099_vm5, %v1098_v62, %v1092_v61 }
 0x590   : > { %v1096_v1 = vpop.permute.xlu1 %1095 }
 0x591   : > { %v1102_v2 = vsel %vm1101_vm6, %v1100_v63, %v1096_v1 }
 0x592   : > { %v1103_v3 = vpack.c.bf16 %v1102_v2, %v1102_v2 }
 0x594   : > { %5117 = vmatmul.mubr.msk.bf16.vlgmr.msra.gmra.mxu0 %vm365_vm0, %v1103_v3 }
 0x595   : > { %1313 = vmatpush1.bf16.xpose.msra.mxu0 %v5353_v24 }
 0x596   : > { %1314 = vmatprep.subr.bf16.mxu0 %v5358_v26 }
 0x59d   : > { %1315 = vmatpush1.bf16.xpose.msra.mxu0 %v5356_v27 }
 0x59e   : > { %1316 = vmatprep.subr.bf16.mxu0 %v5361_v40 }
 0x5a5   : > { %1317 = vmatpush1.bf16.xpose.msra.mxu0 %v5359_v41 }
 0x5a6   : > { %5135 = vmatprep.subr.mxu0 %v5581_v30 }
 0x654   : > { %v1159_v5 = vpop.f32.mrf.mxu0 }
 0x655   : > { %v1160_v6 = vadd.f32 %v1159_v5, %v315_v4 }
 0x656   : > { %v5118_v7 = vpop.f32.mrf.mxu0 }
 0x657   : > { %v1165_v8 = vadd.f32 %v1160_v6, %v5673_v28  ;;  %v5350_v28 = vld [vmem:[#allocation2 + $0x8] ss:$28 sps:$4 sm:$0xff]   ;;  %v5364_v6 = vld [vmem:[#allocation2 + $0x11c] ss:$28 sps:$4 sm:$0xff]  }
 0x658   : > { %v1162_v9 = vpop.f32.mrf.mxu0  ;;  %1242 = vmatpush1.bf16.msra.mxu1 %v5350_v28  ;;  %v5362_v7 = vld [vmem:[#allocation2 + $0x118] ss:$28 sps:$4 sm:$0xff]  }
 0x659   : > { %v1166_v10 = vsel %vm365_vm0, %v1165_v8, 0.0  ;;  %1448 = vmatprep.subr.bf16.mxu1 %v5364_v6  ;;  %v5365_v9 = vld [vmem:[#allocation2 + $0xe0] ss:$28 sps:$4 sm:$0xff]   ;;  %v5832_v28 = vld [vmem:[%s6259_s3 + $0x10] ss:$8 sm:$0x3] }
 0x65a   : > { %1167 = vadd.xlane.f32.xlu0 %v1166_v10  ;;  %v5119_v11 = vpop.f32.mrf.mxu0  ;;  %v5370_v10 = vld [vmem:[#allocation2 + $0xac] ss:$28 sps:$4 sm:$0xff]   ;;  %v1398_v24 = vrot.slane %v5832_v28, %v5661_v12 }
 0x65b   : > { %v5368_v11 = vld [vmem:[#allocation2 + $0xa8] ss:$28 sps:$4 sm:$0xff]  }
 0x6e3   : > { %v1168_v14 = vpop.xlane.xlu0 %1167 }
 0x6e4   : > { %v1170_v15 = vmul.f32 0.020833334, %v1168_v14 }
 0x6e6   : > { %v1171_v16 = vsub.f32 %v1165_v8, %v1170_v15  ;;  %v5367_v8 = vld [vmem:[#allocation2 + $0xe4] ss:$28 sps:$4 sm:$0xff]  }
 0x6e8   : > { %v1172_v17 = vmul.f32 %v1171_v16, %v1171_v16 }
 0x6ea   : > { %v1173_v18 = vsel %vm365_vm0, %v1172_v17, 0.0 }
 0x6eb   : > { %1174 = vadd.xlane.f32.xlu1 %v1173_v18  ;;  %v321_v18 = vld [vmem:[%s6259_s3 + $0x6] ss:$0 sm:$0xff] }
 0x774   : > { %v1175_v29 = vpop.xlane.xlu1 %1174 }
 0x775   : > { %v1176_v31 = vmul.f32 0.020833334, %v1175_v29 }
 0x777   : > { %v1177_v32 = vadd.f32 1e-05, %v1176_v31 }
 0x779   : > { %5468 = vrsqrt.f32 %v1177_v32 }
 0x786   : > { %v5469_v33 = vpop.eup %5468 }
 0x787   : > { %v1179_v35 = vmul.f32 %v5469_v33, %v1171_v16 }
 0x789   : > { %v1180_v37 = vmul.f32 %v1179_v35, %v316_v34 }
 0x78b   : > { %v1181_v38 = vadd.f32 %v1180_v37, %v317_v36 }
 0x78d   : > { %v1182_v39 = vpack.c.bf16 %v1181_v38, %v1181_v38 }
 0x78f   : > { %4836 = vmatmul.mubr.msk.bf16.vlgmr.msra.gmra.mxu1 %vm365_vm0, %v1182_v39 }
 0x790   : > { %1470 = vmatprep.mubr.bf16.mxu1 %v5578_v0  ;;  %1449 = vmatpush1.bf16.msra.mxu1 %v5362_v7 }
 0x791   : > { %1450 = vmatprep.subr.bf16.mxu1 %v5367_v8 }
 0x794   : > { %1451 = vmatpush1.bf16.msra.mxu1 %v5365_v9 }
 0x795   : > { %1452 = vmatprep.subr.bf16.mxu1 %v5370_v10 }
 0x798   : > { %1453 = vmatpush1.bf16.msra.mxu1 %v5368_v11 }
 0x799   : > { %5120 = vmatprep.subr.mxu1 %v5581_v30 }
 0x84f   : > { %v1261_v46 = vpop.f32.mrf.mxu1 }
 0x850   : > { %v1262_v47 = vadd.f32 %v1261_v46, %v1187_v43 }
 0x851   : > { %v1263_v48 = vpop.f32.mrf.mxu1 }
 0x852   : > { %v1264_v49 = vadd.f32 %v1263_v48, %v1191_v44  ;;  %v1268_v50 = vmax.f32 %v1262_v47, 0.0 }
 0x853   : > { %v1265_v51 = vpop.f32.mrf.mxu1 }
 0x854   : > { %v1269_v52 = vmax.f32 %v1264_v49, 0.0  ;;  %v1270_v55 = vpack.c.bf16 %v1268_v50, %v1268_v50 }
 0x855   : > { %v1266_v53 = vpop.f32.mrf.mxu1 }
 0x856   : > { %v1271_v54 = vpack.c.bf16 %v1269_v52, %v1269_v52 }
 0x858   : > { %1334 = vmatprep.mubr.bf16.mxu0 %v1271_v54 }
 0x859   : > { %1335 = vmatmul.mubr.bf16.vlgmr.msra.gmra.mxu0 %v1270_v55 }
 0x85a   : > { %5137 = vmatprep.mubr.msk.f32.mxu0 %vm5582_vm1, %v5581_v30 }
 0x919   : > { %v1336_v57 = vpop.f32.mrf.mxu0 }
 0x91a   : > { %v1337_v58 = vadd.f32 %v1336_v57, %v320_v56 }
 0x91b   : > { %v1338_v59 = vpop.f32.mrf.mxu0 }
 0x91c   : > { %v1342_v60 = vadd.f32 %v1337_v58, %v1181_v38 }
 0x91d   : > { %v1339_v61 = vpop.f32.mrf.mxu0 }
 0x91e   : > { %v1343_v62 = vsel %vm365_vm0, %v1342_v60, 0.0 }
 0x91f   : > { %v1340_v63 = vpop.f32.mrf.mxu0  ;;  %1344 = vadd.xlane.f32.xlu0 %v1343_v62 }
 0x9a8   : > { %v1345_v1 = vpop.xlane.xlu0 %1344 }
 0x9a9   : > { %v1346_v2 = vmul.f32 0.020833334, %v1345_v1 }
 0x9ab   : > { %v1347_v3 = vsub.f32 %v1342_v60, %v1346_v2  ;;  %v1402_v60 = vrot.slane %v5832_v28, %v5663_v13 }
 0x9ad   : > { %v1348_v4 = vmul.f32 %v1347_v3, %v1347_v3 }
 0x9af   : > { %v1349_v5 = vsel %vm365_vm0, %v1348_v4, 0.0 }
 0x9b0   : > { %1350 = vadd.xlane.f32.xlu0 %v1349_v5 }
 0xa39   : > { %v1351_v14 = vpop.xlane.xlu0 %1350 }
 0xa3a   : > { %v1352_v15 = vmul.f32 0.020833334, %v1351_v14 }
 0xa3c   : > { %v1353_v16 = vadd.f32 1e-05, %v1352_v15 }
 0xa3e   : > { %5470 = vrsqrt.f32 %v1353_v16 }
 0xa4b   : > { %v5471_v17 = vpop.eup %5470 }
 0xa4c   : > { %v1355_v19 = vmul.f32 %v5471_v17, %v1347_v3 }
 0xa4e   : > { %v1356_v21 = vmul.f32 %v1355_v19, %v321_v18 }
 0xa50   : > { %v5822_v22 = vadd.f32 %v1356_v21, %v322_v20 }
 0xa52   : > { %v1393_v23 = vpack.c.bf16 %v5822_v22, %v5822_v22 }
 0xa54   : > { %4857 = vmatmul.mubr.msk.bf16.vlgmr.msra.gmra.mxu1 %vm365_vm0, %v1393_v23 }
 0xa55   : > { %5122 = vmatprep.mubr.msk.f32.mxu1 %vm5582_vm1, %v5581_v30 }
 0xb14   : > { %v1472_v25 = vpop.f32.mrf.mxu1 }
 0xb15   : > { %v1473_v26 = vadd.f32 %v1472_v25, %v1398_v24 }
 0xb16   : > { %v1474_v27 = vpop.f32.mrf.mxu1 }
 0xb17   : > { %1482 = vrot.lane.b32.xlu0 %v1473_v26, %s5586_s16  ;;  %1480 = vrot.lane.b32.xlu1 %v1473_v26, %s5584_s14  ;;  %v1475_v61 = vadd.f32 %v1474_v27, %v1402_v60  ;;  %v4844_v60 = vld [vmem:[%s6259_s3 + $0x11] ss:$0 sm:$0xff] }
 0xb18   : > { %v1476_v29 = vpop.f32.mrf.mxu1 }
 0xb1a   : > { %v1477_v31 = vpop.f32.mrf.mxu1 }
 0xb1b   : > { %1484 = vrot.lane.b32.xlu1 %v1473_v26, %s5583_s13 }
 0xb1f   : > { %1492 = vrot.lane.b32.xlu1 %v1473_v26, %s5585_s15 }
 0xb89   : > { %v5840_v32 = vpop.permute.xlu0 %1482  ;;  %v1481_v33 = vpop.permute.xlu1 %1480 }
 0xb8a   : > { %1644 = vrot.lane.b32.xlu1 %v5840_v32, %s5585_s15  ;;  %1568 = vrot.lane.b32.xlu0 %v1481_v33, %s5585_s15 }
 0xb8d   : > { %v1485_v34 = vpop.permute.xlu1 %1484 }
 0xb8e   : > { %1720 = vrot.lane.b32.xlu0 %v1485_v34, %s5585_s15 }
 0xb91   : > { %v1493_v35 = vpop.permute.xlu1 %1492 }
 0xb92   : > { %5121 = vmatpush3.xpose.msk.msra.mxu1 %vm426_vm2, %v1493_v35 }
 0xb93   : > { %5125 = vmatprep.subr.mxu1 %v5581_v30 }
 0xb95   : > { %5123 = vmatmul.mubr.msk.f32.vlgmr.msra.gmra.mxu1 %vm426_vm2, %v1473_v26 }
 0xb96   : > { %5127 = vmatprep.mubr.msk.f32.mxu1 %vm5582_vm1, %v5581_v30 }
 0xbfc   : > { %v1569_v36 = vpop.permute.xlu0 %1568  ;;  %v1645_v37 = vpop.permute.xlu1 %1644 }
 0xbfd   : > { %5126 = vmatpush3.xpose.msk.msra.mxu1 %vm426_vm2, %v1569_v36 }
 0xbfe   : > { %5130 = vmatprep.subr.mxu1 %v5581_v30 }
 0xc00   : > { %v1721_v38 = vpop.permute.xlu0 %1720  ;;  %5128 = vmatmul.mubr.msk.f32.vlgmr.msra.gmra.mxu1 %vm426_vm2, %v1481_v33 }
 0xc01   : > { %5131 = vmatpush3.xpose.msk.msra.mxu1 %vm426_vm2, %v1645_v37  ;;  %5136 = vmatpush3.xpose.msk.msra.mxu0 %vm426_vm2, %v1721_v38 }
 0xc02   : > { %5132 = vmatprep.mubr.msk.f32.mxu1 %vm5582_vm1, %v5581_v30  ;;  %5140 = vmatprep.subr.mxu1 %v5581_v30 }
 0xc03   : > { %5145 = vmatprep.subr.mxu0 %v5581_v30 }
 0xc04   : > { %5133 = vmatmul.mubr.msk.f32.vlgmr.msra.gmra.mxu1 %vm426_vm2, %v5840_v32  ;;  %5138 = vmatmul.mubr.msk.f32.vlgmr.msra.gmra.mxu0 %vm426_vm2, %v1485_v34 }
 0xc05   : > { %5142 = vmatprep.mubr.msk.f32.mxu1 %vm5582_vm1, %v5581_v30  ;;  %5147 = vmatprep.mubr.msk.f32.mxu0 %vm5582_vm1, %v5581_v30 }
 0xc55   : > { %v1564_v39 = vpop.f32.mrf.mxu1 }
 0xc56   : > { %v1796_v40 = vmul.f32 0.28867513, %v1564_v39 }
 0xc57   : > { %v5124_v41 = vpop.f32.mrf.mxu1 }
 0xc58   : > { %v1800_v42 = vadd.f32 %v1796_v40, %v5739_v45  ;;  %v5371_v41 = vld [vmem:[#allocation2 + $0x130] ss:$28 sps:$4 sm:$0xff]  }
 0xc5a   : > { %v1804_v43 = vsel %vm737_vm3, %v1800_v42, -inf }
 0xc5b   : > { %1805 = vmax.xlane.f32.xlu1 %v1804_v43 }
 0xcc0   : > { %v1640_v44 = vpop.f32.mrf.mxu1 }
 0xcc1   : > { %v1797_v46 = vmul.f32 0.28867513, %v1640_v44  ;;  %v5372_v44 = vld [vmem:[#allocation2 + $0xf8] ss:$28 sps:$4 sm:$0xff]  }
 0xcc2   : > { %v5129_v47 = vpop.f32.mrf.mxu1 }
 0xcc3   : > { %v1801_v48 = vadd.f32 %v1797_v46, %v5739_v45  ;;  %v5373_v46 = vld [vmem:[#allocation2 + $0xc0] ss:$28 sps:$4 sm:$0xff]  }
 0xcc4   : > { %v1716_v49 = vpop.f32.mrf.mxu1  ;;  %v1792_v50 = vpop.f32.mrf.mxu0 }
 0xcc5   : > { %v1798_v51 = vmul.f32 0.28867513, %v1716_v49  ;;  %v1799_v52 = vmul.f32 0.28867513, %v1792_v50  ;;  %v1807_v53 = vsel %vm737_vm3, %v1801_v48, -inf }
 0xcc6   : > { %v5139_v54 = vpop.f32.mrf.mxu0  ;;  %1808 = vmax.xlane.f32.xlu0 %v1807_v53  ;;  %v5134_v55 = vpop.f32.mrf.mxu1 }
 0xcc7   : > { %v1803_v56 = vadd.f32 %v1799_v52, %v5739_v45  ;;  %v1802_v57 = vadd.f32 %v1798_v51, %v5739_v45 }
 0xcc9   : > { %v1813_v58 = vsel %vm737_vm3, %v1803_v56, -inf  ;;  %v1810_v59 = vsel %vm737_vm3, %v1802_v57, -inf }
 0xcca   : > { %1814 = vmax.xlane.f32.xlu1 %v1813_v58  ;;  %1811 = vmax.xlane.f32.xlu0 %v1810_v59 }
 0xcdb   : > { %1490 = vrot.lane.b32.xlu1 %v1475_v61, %s5583_s13 }
 0xcdf   : > { %1924 = vrot.lane.b32.xlu1 %v1481_v33, %s5587_s22 }
 0xce0   : > { %1487 = vrot.lane.b32.xlu0 %v1475_v61, %s5586_s16 }
 0xce4   : > { %1848 = vrot.lane.b32.xlu0 %v1473_v26, %s5587_s22  ;;  %v1806_v62 = vpop.xlane.xlu1 %1805 }
 0xce5   : > { %v1816_v45 = vsub.f32 %v1800_v42, %v1806_v62 }
 0xce7   : > { %v1820_v63 = vmul.f32 1.442695, %v1816_v45 }
 0xce9   : > { %5472 = vpow2.f32 %v1820_v63 }
 0xcf6   : > { %v5473_v1 = vpop.eup %5472 }
 0xcf7   : > { %v1828_v2 = vsel %vm737_vm3, %v5473_v1, 0.0 }
 0xd03   : > { %1829 = vadd.xlane.f32.xlu1 %v1828_v2 }
 0xd4f   : > { %v1809_v3 = vpop.xlane.xlu0 %1808 }
 0xd50   : > { %v1817_v4 = vsub.f32 %v1801_v48, %v1809_v3 }
 0xd52   : > { %v1822_v5 = vmul.f32 1.442695, %v1817_v4 }
 0xd53   : > { %v1812_v6 = vpop.xlane.xlu0 %1811  ;;  %v1815_v7 = vpop.xlane.xlu1 %1814 }
 0xd54   : > { %5474 = vpow2.f32 %v1822_v5  ;;  %v1818_v8 = vsub.f32 %v1802_v57, %v1812_v6  ;;  %v1819_v9 = vsub.f32 %v1803_v56, %v1815_v7 }
 0xd56   : > { %v1824_v10 = vmul.f32 1.442695, %v1818_v8  ;;  %v1826_v11 = vmul.f32 1.442695, %v1819_v9  ;;  %v5376_v9 = vld [vmem:[#allocation2 + $0x124] ss:$28 sps:$4 sm:$0xff]  }
 0xd57   : > { %v1488_v14 = vpop.permute.xlu0 %1487  ;;  %v1491_v15 = vpop.permute.xlu1 %1490 }
 0xd58   : > { %5476 = vpow2.f32 %v1824_v10  ;;  %v1489_v24 = vsel %vm420_vm4, %v5840_v32, %v1488_v14  ;;  %v5374_v10 = vld [vmem:[#allocation2 + $0x120] ss:$28 sps:$4 sm:$0xff]   ;;  %v5377_v14 = vld [vmem:[#allocation2 + $0xe8] ss:$28 sps:$4 sm:$0xff]  }
 0xd59   : > { %5478 = vpow2.f32 %v1826_v11  ;;  %v5379_v11 = vld [vmem:[#allocation2 + $0xec] ss:$28 sps:$4 sm:$0xff]  }
 0xd5b   : > { %v1849_v16 = vpop.permute.xlu0 %1848  ;;  %v1925_v17 = vpop.permute.xlu1 %1924 }
 0xd5c   : > { %5141 = vmatpush3.msra.mxu1 %v1849_v16  ;;  %5146 = vmatpush3.msra.mxu0 %v1925_v17  ;;  %v5383_v16 = vld [vmem:[#allocation2 + $0x128] ss:$28 sps:$4 sm:$0xff]  }
 0xd5d   : > { %5150 = vmatprep.subr.mxu1 %v5581_v30  ;;  %5155 = vmatprep.subr.mxu0 %v5581_v30  ;;  %v5385_v17 = vld [vmem:[#allocation2 + $0x12c] ss:$28 sps:$4 sm:$0xff]  }
 0xd61   : > { %v5475_v18 = vpop.eup %5474 }
 0xd62   : > { %v1831_v19 = vsel %vm737_vm3, %v5475_v18, 0.0 }
 0xd63   : > { %1832 = vadd.xlane.f32.xlu0 %v1831_v19  ;;  %v5386_v19 = vld [vmem:[#allocation2 + $0xf0] ss:$28 sps:$4 sm:$0xff]  }
 0xd65   : > { %v5477_v20 = vpop.eup %5476 }
 0xd66   : > { %v5479_v21 = vpop.eup %5478  ;;  %v1834_v23 = vsel %vm737_vm3, %v5477_v20, 0.0 }
 0xd67   : > { %1835 = vadd.xlane.f32.xlu0 %v1834_v23  ;;  %v1837_v28 = vsel %vm737_vm3, %v5479_v21, 0.0 }
 0xd68   : > { %1838 = vadd.xlane.f32.xlu1 %v1837_v28 }
 0xd79   : > { %2000 = vrot.lane.b32.xlu1 %v1489_v24, %s5587_s22  ;;  %v4845_v24 = vld [vmem:[%s6259_s3 + $0x12] ss:$0 sm:$0xff] }
 0xd7d   : > { %2076 = vrot.lane.b32.xlu0 %v1491_v15, %s5587_s22  ;;  %v5382_v15 = vld [vmem:[#allocation2 + $0xb4] ss:$28 sps:$4 sm:$0xff]  }
 0xd8c   : > { %v1830_v25 = vpop.xlane.xlu1 %1829 }
 0xd8d   : > { %5480 = vrcp.f32 %v1830_v25 }
 0xd9a   : > { %v5481_v26 = vpop.eup %5480 }
 0xd9b   : > { %v1844_v27 = vmul.f32 %v5481_v26, %v5473_v1  ;;  %v4846_v26 = vld [vmem:[%s6259_s3 + $0x13] ss:$0 sm:$0xff] }
 0xd9d   : > { %5143 = vmatmul.mubr.msk.f32.vlgmr.msra.gmra.mxu1 %vm737_vm3, %v1844_v27 }
 0xd9e   : > { %5152 = vmatprep.mubr.msk.f32.mxu1 %vm5582_vm1, %v5581_v30 }
 0xdec   : > { %v1833_v29 = vpop.xlane.xlu0 %1832 }
 0xded   : > { %5482 = vrcp.f32 %v1833_v29 }
 0xdf0   : > { %v1836_v31 = vpop.xlane.xlu0 %1835 }
 0xdf1   : > { %5484 = vrcp.f32 %v1836_v31  ;;  %v1839_v33 = vpop.xlane.xlu1 %1838 }
 0xdf2   : > { %5486 = vrcp.f32 %v1839_v33  ;;  %v5391_v33 = vld [vmem:[#allocation2 + $0xbc] ss:$28 sps:$4 sm:$0xff]  }
 0xdf4   : > { %v2077_v36 = vpop.permute.xlu0 %2076 }
 0xdf5   : > { %v2001_v32 = vpop.permute.xlu1 %2000 }
 0xdf6   : > { %5151 = vmatpush3.msra.mxu1 %v2001_v32  ;;  %v5389_v32 = vld [vmem:[#allocation2 + $0xb8] ss:$28 sps:$4 sm:$0xff]  }
 0xdf7   : > { %5160 = vmatprep.subr.bf16.mxu1 %v5581_v30 }
 0xdfa   : > { %v5483_v34 = vpop.eup %5482 }
 0xdfb   : > { %v1845_v35 = vmul.f32 %v5483_v34, %v5475_v18  ;;  %v5388_v18 = vld [vmem:[#allocation2 + $0xf4] ss:$28 sps:$4 sm:$0xff]  }
 0xdfc   : > { %v4847_v34 = vld [vmem:[%s6259_s3 + $0x14] ss:$8 sm:$0x3] }
 0xdfd   : > { %5148 = vmatmul.mubr.msk.f32.vlgmr.msra.gmra.mxu0 %vm737_vm3, %v1845_v35  ;;  %v2250_v35 = vrot.slane %v4847_v34, %v5661_v12 }
 0xdfe   : > { %v5485_v37 = vpop.eup %5484  ;;  %5156 = vmatpush3.msra.mxu0 %v2077_v36  ;;  %5157 = vmatprep.mubr.msk.f32.mxu0 %vm5582_vm1, %v5581_v30  ;;  %v2254_v36 = vrot.slane %v4847_v34, %v5663_v13 }
 0xdff   : > { %v5487_v38 = vpop.eup %5486  ;;  %v1846_v39 = vmul.f32 %v5485_v37, %v5477_v20  ;;  %2300 = vmatprep.subr.bf16.mxu0 %v5376_v9  ;;  %v4850_v9 = vld [vmem:[%s6259_s3 + $0x17] ss:$0 sm:$0xff] }
 0xe00   : > { %v1847_v40 = vmul.f32 %v5487_v38, %v5479_v21 }
 0xe01   : > { %5153 = vmatmul.mubr.msk.f32.vlgmr.msra.gmra.mxu1 %vm737_vm3, %v1846_v39 }
 0xe02   : > { %5158 = vmatmul.mubr.msk.f32.vlgmr.msra.gmra.mxu0 %vm737_vm3, %v1847_v40  ;;  %5166 = vmatprep.mubr.msk.bf16.mxu1 %vm5582_vm1, %v5581_v30 }
 0xe03   : > { %2322 = vmatprep.mubr.bf16.mxu0 %v5578_v0  ;;  %5161 = vmatpush3.bf16.msra.mxu1 %v5371_v41 }
 0xe04   : > { %5162 = vmatprep.subr.bf16.mxu1 %v5581_v30  ;;  %2301 = vmatpush1.bf16.msra.mxu0 %v5374_v10 }
 0xe05   : > { %2302 = vmatprep.subr.bf16.mxu0 %v5379_v11 }
 0xe07   : > { %5163 = vmatpush3.bf16.msra.mxu1 %v5372_v44 }
 0xe08   : > { %5164 = vmatprep.subr.bf16.mxu1 %v5581_v30  ;;  %2303 = vmatpush1.bf16.msra.mxu0 %v5377_v14 }
 0xe09   : > { %2304 = vmatprep.subr.bf16.mxu0 %v5382_v15  ;;  %v5956_v15 = vld [vmem:[%s6259_s3 + $0x20] ss:$8 sm:$0x3] }
 0xe0b   : > { %5165 = vmatpush3.bf16.msra.mxu1 %v5373_v46 }
 0xe0c   : > { %2375 = vmatprep.subr.bf16.mxu1 %v5385_v17 }
 0xe5d   : > { %v1920_v42 = vpop.f32.mrf.mxu1 }
 0xe5f   : > { %v5144_v43 = vpop.f32.mrf.mxu1 }
 0xebd   : > { %v1996_v47 = vpop.f32.mrf.mxu0 }
 0xebe   : > { %2153 = vrot.lane.b32.xlu1 %v1996_v47, %s5588_s23 }
 0xebf   : > { %v5149_v48 = vpop.f32.mrf.mxu0 }
 0xec0   : > { %v4848_v48 = vld [vmem:[%s6259_s3 + $0x15] ss:$0 sm:$0xff] }
 0xec1   : > { %v2072_v49 = vpop.f32.mrf.mxu1 }
 0xec2   : > { %v2148_v50 = vpop.f32.mrf.mxu0  ;;  %2157 = vrot.lane.b32.xlu0 %v2072_v49, %s5589_s24 }
 0xec3   : > { %2161 = vrot.lane.b32.xlu1 %v2148_v50, %s5590_s25  ;;  %v5154_v51 = vpop.f32.mrf.mxu1 }
 0xec4   : > { %v5159_v52 = vpop.f32.mrf.mxu0 }
 0xf30   : > { %v2154_v53 = vpop.permute.xlu1 %2153 }
 0xf31   : > { %v2164_v54 = vsel %vm426_vm2, %v1920_v42, %v2154_v53 }
 0xf34   : > { %v2158_v55 = vpop.permute.xlu0 %2157 }
 0xf35   : > { %v2165_v56 = vsel %vm1099_vm5, %v2164_v54, %v2158_v55  ;;  %v2162_v57 = vpop.permute.xlu1 %2161 }
 0xf36   : > { %v2166_v58 = vsel %vm1101_vm6, %v2165_v56, %v2162_v57 }
 0xf37   : > { %v2167_v59 = vpack.c.bf16 %v2166_v58, %v2166_v58 }
 0xf39   : > { %5167 = vmatmul.mubr.msk.bf16.vlgmr.msra.gmra.mxu1 %vm365_vm0, %v2167_v59 }
 0xf3a   : > { %2376 = vmatpush1.bf16.xpose.msra.mxu1 %v5383_v16 }
 0xf3b   : > { %2377 = vmatprep.subr.bf16.mxu1 %v5388_v18 }
 0xf42   : > { %2378 = vmatpush1.bf16.xpose.msra.mxu1 %v5386_v19 }
 0xf43   : > { %2379 = vmatprep.subr.bf16.mxu1 %v5391_v33 }
 0xf4a   : > { %2380 = vmatpush1.bf16.xpose.msra.mxu1 %v5389_v32  ;;  %v5999_v32 = vld [vmem:[%s5736_s21] sm:$0xff] }
 0xf4b   : > { %5185 = vmatprep.subr.mxu1 %v5581_v30 }
 0xff9   : > { %v2223_v61 = vpop.f32.mrf.mxu1 }
 0xffa   : > { %v2224_v62 = vadd.f32 %v4844_v60, %v2223_v61  ;;  %v5394_v61 = vld [vmem:[#allocation2 + $0x1c4] ss:$28 sps:$4 sm:$0xff]  }
 0xffb   : > { %v5168_v45 = vpop.f32.mrf.mxu1 }
 0xffc   : > { %v2229_v63 = vadd.f32 %v2224_v62, %v5822_v22  ;;  %v5380_v22 = vld [vmem:[#allocation2 + $0xb0] ss:$28 sps:$4 sm:$0xff]   ;;  %v5392_v62 = vld [vmem:[#allocation2 + $0x1c0] ss:$28 sps:$4 sm:$0xff]  }
 0xffd   : > { %v2226_v1 = vpop.f32.mrf.mxu1  ;;  %2305 = vmatpush1.bf16.msra.mxu0 %v5380_v22  ;;  %v5397_v45 = vld [vmem:[#allocation2 + $0x18c] ss:$28 sps:$4 sm:$0xff]   ;;  %v2461_v22 = vrot.slane %v5956_v15, %v5661_v12 }
 0xffe   : > { %v2230_v2 = vsel %vm365_vm0, %v2229_v63, 0.0  ;;  %2511 = vmatprep.subr.bf16.mxu0 %v5394_v61  ;;  %v5400_v1 = vld [vmem:[#allocation2 + $0x154] ss:$28 sps:$4 sm:$0xff]  }
 0xfff   : > { %2231 = vadd.xlane.f32.xlu0 %v2230_v2  ;;  %v5169_v3 = vpop.f32.mrf.mxu1  ;;  %v5398_v2 = vld [vmem:[#allocation2 + $0x150] ss:$28 sps:$4 sm:$0xff]  }
0x1088   : > { %v2232_v4 = vpop.xlane.xlu0 %2231 }
0x1089   : > { %v2233_v5 = vmul.f32 0.020833334, %v2232_v4 }
0x108b   : > { %v2234_v6 = vsub.f32 %v2229_v63, %v2233_v5  ;;  %v5395_v63 = vld [vmem:[#allocation2 + $0x188] ss:$28 sps:$4 sm:$0xff]  }
0x108d   : > { %v2235_v7 = vmul.f32 %v2234_v6, %v2234_v6 }
0x108f   : > { %v2236_v8 = vsel %vm365_vm0, %v2235_v7, 0.0  ;;  %v4849_v7 = vld [vmem:[%s6259_s3 + $0x16] ss:$0 sm:$0xff] }
0x1090   : > { %2237 = vadd.xlane.f32.xlu1 %v2236_v8 }
0x1119   : > { %v2238_v20 = vpop.xlane.xlu1 %2237 }
0x111a   : > { %v2239_v21 = vmul.f32 0.020833334, %v2238_v20 }
0x111c   : > { %v2240_v23 = vadd.f32 1e-05, %v2239_v21 }
0x111e   : > { %5488 = vrsqrt.f32 %v2240_v23 }
0x112b   : > { %v5489_v28 = vpop.eup %5488 }
0x112c   : > { %v2242_v25 = vmul.f32 %v5489_v28, %v2234_v6 }
0x112e   : > { %v2243_v27 = vmul.f32 %v4845_v24, %v2242_v25 }
0x1130   : > { %v2244_v29 = vadd.f32 %v4846_v26, %v2243_v27 }
0x1132   : > { %v2245_v31 = vpack.c.bf16 %v2244_v29, %v2244_v29 }
0x1134   : > { %4880 = vmatmul.mubr.msk.bf16.vlgmr.msra.gmra.mxu0 %vm365_vm0, %v2245_v31 }
0x1135   : > { %2533 = vmatprep.mubr.bf16.mxu0 %v5578_v0  ;;  %2512 = vmatpush1.bf16.msra.mxu0 %v5392_v62 }
0x1136   : > { %2513 = vmatprep.subr.bf16.mxu0 %v5397_v45 }
0x1139   : > { %2514 = vmatpush1.bf16.msra.mxu0 %v5395_v63 }
0x113a   : > { %2515 = vmatprep.subr.bf16.mxu0 %v5400_v1 }
0x113d   : > { %2516 = vmatpush1.bf16.msra.mxu0 %v5398_v2 }
0x113e   : > { %5170 = vmatprep.subr.mxu0 %v5581_v30 }
0x11f4   : > { %v2324_v37 = vpop.f32.mrf.mxu0 }
0x11f5   : > { %v2325_v38 = vadd.f32 %v2324_v37, %v2250_v35 }
0x11f6   : > { %v2326_v39 = vpop.f32.mrf.mxu0 }
0x11f7   : > { %v2327_v40 = vadd.f32 %v2326_v39, %v2254_v36  ;;  %v2331_v41 = vmax.f32 %v2325_v38, 0.0 }
0x11f8   : > { %v2328_v42 = vpop.f32.mrf.mxu0 }
0x11f9   : > { %v2332_v43 = vmax.f32 %v2327_v40, 0.0  ;;  %v2333_v47 = vpack.c.bf16 %v2331_v41, %v2331_v41 }
0x11fa   : > { %v2329_v44 = vpop.f32.mrf.mxu0 }
0x11fb   : > { %v2334_v46 = vpack.c.bf16 %v2332_v43, %v2332_v43 }
0x11fd   : > { %2397 = vmatprep.mubr.bf16.mxu1 %v2334_v46 }
0x11fe   : > { %2398 = vmatmul.mubr.bf16.vlgmr.msra.gmra.mxu1 %v2333_v47 }
0x11ff   : > { %5187 = vmatprep.mubr.msk.f32.mxu1 %vm5582_vm1, %v5581_v30 }
0x12be   : > { %v2399_v49 = vpop.f32.mrf.mxu1 }
0x12bf   : > { %v2400_v50 = vadd.f32 %v4848_v48, %v2399_v49 }
0x12c0   : > { %v2401_v51 = vpop.f32.mrf.mxu1 }
0x12c1   : > { %v2405_v52 = vadd.f32 %v2400_v50, %v2244_v29 }
0x12c2   : > { %v2402_v53 = vpop.f32.mrf.mxu1 }
0x12c3   : > { %v2406_v54 = vsel %vm365_vm0, %v2405_v52, 0.0 }
0x12c4   : > { %v2403_v55 = vpop.f32.mrf.mxu1  ;;  %2407 = vadd.xlane.f32.xlu0 %v2406_v54 }
0x134d   : > { %v2408_v56 = vpop.xlane.xlu0 %2407 }
0x134e   : > { %v2409_v57 = vmul.f32 0.020833334, %v2408_v56 }
0x1350   : > { %v2410_v58 = vsub.f32 %v2405_v52, %v2409_v57  ;;  %v2465_v52 = vrot.slane %v5956_v15, %v5663_v13 }
0x1352   : > { %v2411_v59 = vmul.f32 %v2410_v58, %v2410_v58 }
0x1354   : > { %v2412_v60 = vsel %vm365_vm0, %v2411_v59, 0.0 }
0x1355   : > { %2413 = vadd.xlane.f32.xlu0 %v2412_v60 }
0x13de   : > { %v2414_v3 = vpop.xlane.xlu0 %2413 }
0x13df   : > { %v2415_v4 = vmul.f32 0.020833334, %v2414_v3 }
0x13e1   : > { %v2416_v5 = vadd.f32 1e-05, %v2415_v4 }
0x13e3   : > { %5490 = vrsqrt.f32 %v2416_v5 }
0x13f0   : > { %v5491_v6 = vpop.eup %5490 }
0x13f1   : > { %v2418_v8 = vmul.f32 %v5491_v6, %v2410_v58 }
0x13f3   : > { %v2419_v10 = vmul.f32 %v4849_v7, %v2418_v8 }
0x13f5   : > { %v5946_v11 = vadd.f32 %v4850_v9, %v2419_v10 }
0x13f7   : > { %v2456_v14 = vpack.c.bf16 %v5946_v11, %v5946_v11 }
0x13f9   : > { %4901 = vmatmul.mubr.msk.bf16.vlgmr.msra.gmra.mxu0 %vm365_vm0, %v2456_v14 }
0x13fa   : > { %5172 = vmatprep.mubr.msk.f32.mxu0 %vm5582_vm1, %v5581_v30 }
0x14b9   : > { %v2535_v16 = vpop.f32.mrf.mxu0 }
0x14ba   : > { %v5960_v17 = vadd.f32 %v2535_v16, %v2461_v22 }
0x14bb   : > { %v2537_v18 = vpop.f32.mrf.mxu0 }
0x14bc   : > { %2545 = vrot.lane.b32.xlu0 %v5960_v17, %s5586_s16  ;;  %2543 = vrot.lane.b32.xlu1 %v5960_v17, %s5584_s14  ;;  %v2538_v53 = vadd.f32 %v2537_v18, %v2465_v52 }
0x14bd   : > { %v2539_v19 = vpop.f32.mrf.mxu0 }
0x14bf   : > { %v2540_v20 = vpop.f32.mrf.mxu0 }
0x14c0   : > { %2547 = vrot.lane.b32.xlu1 %v5960_v17, %s5583_s13 }
0x14c4   : > { %2555 = vrot.lane.b32.xlu1 %v5960_v17, %s5585_s15 }
0x152e   : > { %v5970_v21 = vpop.permute.xlu0 %2545  ;;  %v2544_v23 = vpop.permute.xlu1 %2543 }
0x152f   : > { %2707 = vrot.lane.b32.xlu1 %v5970_v21, %s5585_s15  ;;  %2631 = vrot.lane.b32.xlu0 %v2544_v23, %s5585_s15 }
0x1532   : > { %v2548_v28 = vpop.permute.xlu1 %2547 }
0x1533   : > { %2783 = vrot.lane.b32.xlu0 %v2548_v28, %s5585_s15 }
0x1536   : > { %v2556_v24 = vpop.permute.xlu1 %2555 }
0x1537   : > { %5171 = vmatpush3.xpose.msk.msra.mxu0 %vm426_vm2, %v2556_v24 }
0x1538   : > { %5175 = vmatprep.subr.mxu0 %v5581_v30 }
0x153a   : > { %5173 = vmatmul.mubr.msk.f32.vlgmr.msra.gmra.mxu0 %vm426_vm2, %v5960_v17 }
0x153b   : > { %5177 = vmatprep.mubr.msk.f32.mxu0 %vm5582_vm1, %v5581_v30 }
0x15a1   : > { %v2632_v25 = vpop.permute.xlu0 %2631  ;;  %v2708_v26 = vpop.permute.xlu1 %2707 }
0x15a2   : > { %5176 = vmatpush3.xpose.msk.msra.mxu0 %vm426_vm2, %v2632_v25 }
0x15a3   : > { %5180 = vmatprep.subr.mxu0 %v5581_v30 }
0x15a5   : > { %v2784_v27 = vpop.permute.xlu0 %2783  ;;  %5178 = vmatmul.mubr.msk.f32.vlgmr.msra.gmra.mxu0 %vm426_vm2, %v2544_v23 }
0x15a6   : > { %5181 = vmatpush3.xpose.msk.msra.mxu0 %vm426_vm2, %v2708_v26  ;;  %5186 = vmatpush3.xpose.msk.msra.mxu1 %vm426_vm2, %v2784_v27 }
0x15a7   : > { %5182 = vmatprep.mubr.msk.f32.mxu0 %vm5582_vm1, %v5581_v30  ;;  %5190 = vmatprep.subr.mxu0 %v5581_v30 }
0x15a8   : > { %5195 = vmatprep.subr.mxu1 %v5581_v30 }
0x15a9   : > { %5183 = vmatmul.mubr.msk.f32.vlgmr.msra.gmra.mxu0 %vm426_vm2, %v5970_v21  ;;  %5188 = vmatmul.mubr.msk.f32.vlgmr.msra.gmra.mxu1 %vm426_vm2, %v2548_v28 }
0x15aa   : > { %5192 = vmatprep.mubr.msk.f32.mxu0 %vm5582_vm1, %v5581_v30  ;;  %5197 = vmatprep.mubr.msk.f32.mxu1 %vm5582_vm1, %v5581_v30 }
0x15fa   : > { %v2627_v29 = vpop.f32.mrf.mxu0 }
0x15fb   : > { %v2859_v31 = vmul.f32 0.28867513, %v2627_v29 }
0x15fc   : > { %v5174_v33 = vpop.f32.mrf.mxu0 }
0x15fd   : > { %v2863_v34 = vadd.f32 %v5999_v32, %v2859_v31 }
0x15ff   : > { %v2867_v35 = vsel %vm737_vm3, %v2863_v34, -inf }
0x1600   : > { %2868 = vmax.xlane.f32.xlu1 %v2867_v35 }
0x1665   : > { %v2703_v36 = vpop.f32.mrf.mxu0 }
0x1666   : > { %v2860_v37 = vmul.f32 0.28867513, %v2703_v36 }
0x1667   : > { %v5179_v38 = vpop.f32.mrf.mxu0 }
0x1668   : > { %v2864_v39 = vadd.f32 %v5999_v32, %v2860_v37  ;;  %v5402_v37 = vld [vmem:[#allocation2 + $0x1a0] ss:$28 sps:$4 sm:$0xff]   ;;  %v5403_v38 = vld [vmem:[#allocation2 + $0x168] ss:$28 sps:$4 sm:$0xff]  }
0x1669   : > { %v2779_v40 = vpop.f32.mrf.mxu0  ;;  %v2855_v41 = vpop.f32.mrf.mxu1 }
0x166a   : > { %v2861_v42 = vmul.f32 0.28867513, %v2779_v40  ;;  %v2862_v43 = vmul.f32 0.28867513, %v2855_v41  ;;  %v2870_v44 = vsel %vm737_vm3, %v2864_v39, -inf }
0x166b   : > { %v5189_v46 = vpop.f32.mrf.mxu1  ;;  %2871 = vmax.xlane.f32.xlu0 %v2870_v44  ;;  %v5184_v47 = vpop.f32.mrf.mxu0 }
0x166c   : > { %v2866_v48 = vadd.f32 %v5999_v32, %v2862_v43  ;;  %v2865_v49 = vadd.f32 %v5999_v32, %v2861_v42 }
0x166e   : > { %v2876_v50 = vsel %vm737_vm3, %v2866_v48, -inf  ;;  %v2873_v51 = vsel %vm737_vm3, %v2865_v49, -inf }
0x166f   : > { %2877 = vmax.xlane.f32.xlu1 %v2876_v50  ;;  %2874 = vmax.xlane.f32.xlu0 %v2873_v51 }
0x1680   : > { %2553 = vrot.lane.b32.xlu1 %v2538_v53, %s5583_s13 }
0x1684   : > { %2987 = vrot.lane.b32.xlu1 %v2544_v23, %s5587_s22 }
0x1685   : > { %2550 = vrot.lane.b32.xlu0 %v2538_v53, %s5586_s16  ;;  %v4888_v53 = vld [vmem:[%s6259_s3 + $0x21] ss:$0 sm:$0xff] }
0x1689   : > { %2911 = vrot.lane.b32.xlu0 %v5960_v17, %s5587_s22  ;;  %v2869_v54 = vpop.xlane.xlu1 %2868 }
0x168a   : > { %v2879_v55 = vsub.f32 %v2863_v34, %v2869_v54  ;;  %v5401_v34 = vld [vmem:[#allocation2 + $0x1d8] ss:$28 sps:$4 sm:$0xff]  }
0x168c   : > { %v2883_v56 = vmul.f32 1.442695, %v2879_v55 }
0x168e   : > { %5492 = vpow2.f32 %v2883_v56 }
0x169b   : > { %v5493_v57 = vpop.eup %5492 }
0x169c   : > { %v2891_v58 = vsel %vm737_vm3, %v5493_v57, 0.0 }
0x16a8   : > { %2892 = vadd.xlane.f32.xlu1 %v2891_v58 }
0x16f4   : > { %v2872_v59 = vpop.xlane.xlu0 %2871 }
0x16f5   : > { %v2880_v60 = vsub.f32 %v2864_v39, %v2872_v59 }
0x16f7   : > { %v2885_v61 = vmul.f32 1.442695, %v2880_v60 }
0x16f8   : > { %v2875_v62 = vpop.xlane.xlu0 %2874  ;;  %v2878_v45 = vpop.xlane.xlu1 %2877 }
0x16f9   : > { %5494 = vpow2.f32 %v2885_v61  ;;  %v2881_v63 = vsub.f32 %v2865_v49, %v2875_v62  ;;  %v2882_v1 = vsub.f32 %v2866_v48, %v2878_v45 }
0x16fb   : > { %v2887_v2 = vmul.f32 1.442695, %v2881_v63  ;;  %v2889_v3 = vmul.f32 1.442695, %v2882_v1 }
0x16fc   : > { %v2551_v4 = vpop.permute.xlu0 %2550  ;;  %v2554_v5 = vpop.permute.xlu1 %2553 }
0x16fd   : > { %5496 = vpow2.f32 %v2887_v2  ;;  %v2552_v16 = vsel %vm420_vm4, %v5970_v21, %v2551_v4  ;;  %v5406_v2 = vld [vmem:[#allocation2 + $0x1cc] ss:$28 sps:$4 sm:$0xff]   ;;  %v5409_v4 = vld [vmem:[#allocation2 + $0x194] ss:$28 sps:$4 sm:$0xff]  }
0x16fe   : > { %5498 = vpow2.f32 %v2889_v3  ;;  %v5404_v3 = vld [vmem:[#allocation2 + $0x1c8] ss:$28 sps:$4 sm:$0xff]  }
0x1700   : > { %v2912_v6 = vpop.permute.xlu0 %2911  ;;  %v2988_v7 = vpop.permute.xlu1 %2987 }
0x1701   : > { %5191 = vmatpush3.msra.mxu0 %v2912_v6  ;;  %5196 = vmatpush3.msra.mxu1 %v2988_v7  ;;  %v5412_v6 = vld [vmem:[#allocation2 + $0x15c] ss:$28 sps:$4 sm:$0xff]   ;;  %v5413_v7 = vld [vmem:[#allocation2 + $0x1d0] ss:$28 sps:$4 sm:$0xff]  }
0x1702   : > { %5200 = vmatprep.subr.mxu0 %v5581_v30  ;;  %5205 = vmatprep.subr.mxu1 %v5581_v30 }
0x1706   : > { %v5495_v8 = vpop.eup %5494 }
0x1707   : > { %v2894_v9 = vsel %vm737_vm3, %v5495_v8, 0.0 }
0x1708   : > { %2895 = vadd.xlane.f32.xlu0 %v2894_v9  ;;  %v5418_v9 = vld [vmem:[#allocation2 + $0x19c] ss:$28 sps:$4 sm:$0xff]  }
0x170a   : > { %v5497_v10 = vpop.eup %5496 }
0x170b   : > { %v5499_v14 = vpop.eup %5498  ;;  %v2897_v15 = vsel %vm737_vm3, %v5497_v10, 0.0 }
0x170c   : > { %2898 = vadd.xlane.f32.xlu0 %v2897_v15  ;;  %v2900_v22 = vsel %vm737_vm3, %v5499_v14, 0.0 }
0x170d   : > { %2901 = vadd.xlane.f32.xlu1 %v2900_v22 }
0x171e   : > { %3063 = vrot.lane.b32.xlu1 %v2552_v16, %s5587_s22 }
0x1722   : > { %3139 = vrot.lane.b32.xlu0 %v2554_v5, %s5587_s22  ;;  %v5407_v5 = vld [vmem:[#allocation2 + $0x190] ss:$28 sps:$4 sm:$0xff]  }
0x1731   : > { %v2893_v17 = vpop.xlane.xlu1 %2892 }
0x1732   : > { %5500 = vrcp.f32 %v2893_v17  ;;  %v4889_v17 = vld [vmem:[%s6259_s3 + $0x22] ss:$0 sm:$0xff] }
0x173f   : > { %v5501_v18 = vpop.eup %5500 }
0x1740   : > { %v2907_v19 = vmul.f32 %v5501_v18, %v5493_v57 }
0x1742   : > { %5193 = vmatmul.mubr.msk.f32.vlgmr.msra.gmra.mxu0 %vm737_vm3, %v2907_v19  ;;  %v4890_v19 = vld [vmem:[%s6259_s3 + $0x23] ss:$0 sm:$0xff] }
0x1743   : > { %5202 = vmatprep.mubr.msk.f32.mxu0 %vm5582_vm1, %v5581_v30 }
0x1791   : > { %v2896_v20 = vpop.xlane.xlu0 %2895 }
0x1792   : > { %5502 = vrcp.f32 %v2896_v20 }
0x1795   : > { %v2899_v23 = vpop.xlane.xlu0 %2898 }
0x1796   : > { %5504 = vrcp.f32 %v2899_v23  ;;  %v2902_v28 = vpop.xlane.xlu1 %2901 }
0x1797   : > { %5506 = vrcp.f32 %v2902_v28 }
0x1799   : > { %v3140_v26 = vpop.permute.xlu0 %3139 }
0x179a   : > { %v3064_v21 = vpop.permute.xlu1 %3063 }
0x179b   : > { %5201 = vmatpush3.msra.mxu0 %v3064_v21  ;;  %v5421_v21 = vld [vmem:[#allocation2 + $0x164] ss:$28 sps:$4 sm:$0xff]  }
0x179c   : > { %5210 = vmatprep.subr.bf16.mxu0 %v5581_v30 }
0x179f   : > { %v5503_v24 = vpop.eup %5502 }
0x17a0   : > { %v2908_v25 = vmul.f32 %v5503_v24, %v5495_v8  ;;  %v5415_v8 = vld [vmem:[#allocation2 + $0x1d4] ss:$28 sps:$4 sm:$0xff]   ;;  %v5419_v24 = vld [vmem:[#allocation2 + $0x160] ss:$28 sps:$4 sm:$0xff]  }
0x17a2   : > { %5198 = vmatmul.mubr.msk.f32.vlgmr.msra.gmra.mxu1 %vm737_vm3, %v2908_v25  ;;  %v4891_v25 = vld [vmem:[%s6259_s3 + $0x24] ss:$8 sm:$0x3] }
0x17a3   : > { %v5505_v27 = vpop.eup %5504  ;;  %5206 = vmatpush3.msra.mxu1 %v3140_v26  ;;  %5207 = vmatprep.mubr.msk.f32.mxu1 %vm5582_vm1, %v5581_v30  ;;  %v3313_v26 = vrot.slane %v4891_v25, %v5661_v12 }
0x17a4   : > { %v5507_v29 = vpop.eup %5506  ;;  %v2909_v31 = vmul.f32 %v5505_v27, %v5497_v10  ;;  %3363 = vmatprep.subr.bf16.mxu1 %v5406_v2  ;;  %v5416_v10 = vld [vmem:[#allocation2 + $0x198] ss:$28 sps:$4 sm:$0xff]   ;;  %v3317_v27 = vrot.slane %v4891_v25, %v5663_v13 }
0x17a5   : > { %v2910_v33 = vmul.f32 %v5507_v29, %v5499_v14 }
0x17a6   : > { %5203 = vmatmul.mubr.msk.f32.vlgmr.msra.gmra.mxu0 %vm737_vm3, %v2909_v31 }
0x17a7   : > { %5208 = vmatmul.mubr.msk.f32.vlgmr.msra.gmra.mxu1 %vm737_vm3, %v2910_v33  ;;  %5216 = vmatprep.mubr.msk.bf16.mxu0 %vm5582_vm1, %v5581_v30 }
0x17a8   : > { %3385 = vmatprep.mubr.bf16.mxu1 %v5578_v0  ;;  %5211 = vmatpush3.bf16.msra.mxu0 %v5401_v34 }
0x17a9   : > { %5212 = vmatprep.subr.bf16.mxu0 %v5581_v30  ;;  %3364 = vmatpush1.bf16.msra.mxu1 %v5404_v3  ;;  %v4894_v3 = vld [vmem:[%s6259_s3 + $0x27] ss:$0 sm:$0xff] }
0x17aa   : > { %3365 = vmatprep.subr.bf16.mxu1 %v5409_v4 }
0x17ac   : > { %5213 = vmatpush3.bf16.msra.mxu0 %v5402_v37 }
0x17ad   : > { %5214 = vmatprep.subr.bf16.mxu0 %v5581_v30  ;;  %3366 = vmatpush1.bf16.msra.mxu1 %v5407_v5 }
0x17ae   : > { %3367 = vmatprep.subr.bf16.mxu1 %v5412_v6 }
0x17b0   : > { %5215 = vmatpush3.bf16.msra.mxu0 %v5403_v38 }
0x17b1   : > { %3438 = vmatprep.subr.bf16.mxu0 %v5415_v8 }
0x1802   : > { %v2983_v35 = vpop.f32.mrf.mxu0 }
0x1804   : > { %v5194_v36 = vpop.f32.mrf.mxu0 }
0x1862   : > { %v3059_v39 = vpop.f32.mrf.mxu1 }
0x1863   : > { %3216 = vrot.lane.b32.xlu1 %v3059_v39, %s5588_s23 }
0x1864   : > { %v5199_v40 = vpop.f32.mrf.mxu1 }
0x1866   : > { %v3135_v41 = vpop.f32.mrf.mxu0 }
0x1867   : > { %v3211_v42 = vpop.f32.mrf.mxu1  ;;  %3220 = vrot.lane.b32.xlu0 %v3135_v41, %s5589_s24  ;;  %v4892_v41 = vld [vmem:[%s6259_s3 + $0x25] ss:$0 sm:$0xff] }
0x1868   : > { %3224 = vrot.lane.b32.xlu1 %v3211_v42, %s5590_s25  ;;  %v5204_v43 = vpop.f32.mrf.mxu0 }
0x1869   : > { %v5209_v44 = vpop.f32.mrf.mxu1 }
0x18d5   : > { %v3217_v46 = vpop.permute.xlu1 %3216 }
0x18d6   : > { %v3227_v47 = vsel %vm426_vm2, %v2983_v35, %v3217_v46 }
0x18d9   : > { %v3221_v48 = vpop.permute.xlu0 %3220 }
0x18da   : > { %v3228_v49 = vsel %vm1099_vm5, %v3227_v47, %v3221_v48  ;;  %v3225_v50 = vpop.permute.xlu1 %3224 }
0x18db   : > { %v3229_v51 = vsel %vm1101_vm6, %v3228_v49, %v3225_v50 }
0x18dc   : > { %v3230_v52 = vpack.c.bf16 %v3229_v51, %v3229_v51 }
0x18de   : > { %5217 = vmatmul.mubr.msk.bf16.vlgmr.msra.gmra.mxu0 %vm365_vm0, %v3230_v52 }
0x18df   : > { %3439 = vmatpush1.bf16.xpose.msra.mxu0 %v5413_v7 }
0x18e0   : > { %3440 = vmatprep.subr.bf16.mxu0 %v5418_v9 }
0x18e7   : > { %3441 = vmatpush1.bf16.xpose.msra.mxu0 %v5416_v10 }
0x18e8   : > { %3442 = vmatprep.subr.bf16.mxu0 %v5421_v21 }
0x18ef   : > { %3443 = vmatpush1.bf16.xpose.msra.mxu0 %v5419_v24 }
0x18f0   : > { %5235 = vmatprep.subr.mxu0 %v5581_v30 }
0x199e   : > { %v3286_v54 = vpop.f32.mrf.mxu0 }
0x199f   : > { %v3287_v55 = vadd.f32 %v4888_v53, %v3286_v54 }
0x19a0   : > { %v5218_v56 = vpop.f32.mrf.mxu0 }
0x19a1   : > { %v3292_v57 = vadd.f32 %v3287_v55, %v5946_v11  ;;  %v5410_v11 = vld [vmem:[#allocation2 + $0x158] ss:$28 sps:$4 sm:$0xff]   ;;  %v5424_v55 = vld [vmem:[#allocation2 + $0x26c] ss:$28 sps:$4 sm:$0xff]  }
0x19a2   : > { %v3289_v58 = vpop.f32.mrf.mxu0  ;;  %3368 = vmatpush1.bf16.msra.mxu1 %v5410_v11  ;;  %v5422_v56 = vld [vmem:[#allocation2 + $0x268] ss:$28 sps:$4 sm:$0xff]   ;;  %v6091_v11 = vld [vmem:[%s6259_s3 + $0x30] ss:$8 sm:$0x3] }
0x19a3   : > { %v3293_v59 = vsel %vm365_vm0, %v3292_v57, 0.0  ;;  %3574 = vmatprep.subr.bf16.mxu1 %v5424_v55  ;;  %v5425_v58 = vld [vmem:[#allocation2 + $0x230] ss:$28 sps:$4 sm:$0xff]   ;;  %v3524_v7 = vrot.slane %v6091_v11, %v5661_v12 }
0x19a4   : > { %3294 = vadd.xlane.f32.xlu0 %v3293_v59  ;;  %v5219_v60 = vpop.f32.mrf.mxu0  ;;  %v5430_v59 = vld [vmem:[#allocation2 + $0x1fc] ss:$28 sps:$4 sm:$0xff]  }
0x19a5   : > { %v5428_v60 = vld [vmem:[#allocation2 + $0x1f8] ss:$28 sps:$4 sm:$0xff]  }
0x1a2d   : > { %v3295_v61 = vpop.xlane.xlu0 %3294 }
0x1a2e   : > { %v3296_v62 = vmul.f32 0.020833334, %v3295_v61 }
0x1a30   : > { %v3297_v45 = vsub.f32 %v3292_v57, %v3296_v62  ;;  %v5427_v57 = vld [vmem:[#allocation2 + $0x234] ss:$28 sps:$4 sm:$0xff]  }
0x1a32   : > { %v3298_v63 = vmul.f32 %v3297_v45, %v3297_v45 }
0x1a34   : > { %v3299_v1 = vsel %vm365_vm0, %v3298_v63, 0.0 }
0x1a35   : > { %3300 = vadd.xlane.f32.xlu1 %v3299_v1  ;;  %v4893_v1 = vld [vmem:[%s6259_s3 + $0x26] ss:$0 sm:$0xff] }
0x1abe   : > { %v3301_v14 = vpop.xlane.xlu1 %3300 }
0x1abf   : > { %v3302_v15 = vmul.f32 0.020833334, %v3301_v14 }
0x1ac1   : > { %v3303_v22 = vadd.f32 1e-05, %v3302_v15 }
0x1ac3   : > { %5508 = vrsqrt.f32 %v3303_v22 }
0x1ad0   : > { %v5509_v16 = vpop.eup %5508 }
0x1ad1   : > { %v3305_v18 = vmul.f32 %v5509_v16, %v3297_v45 }
0x1ad3   : > { %v3306_v20 = vmul.f32 %v4889_v17, %v3305_v18 }
0x1ad5   : > { %v3307_v23 = vadd.f32 %v4890_v19, %v3306_v20 }
0x1ad7   : > { %v3308_v28 = vpack.c.bf16 %v3307_v23, %v3307_v23 }
0x1ad9   : > { %4924 = vmatmul.mubr.msk.bf16.vlgmr.msra.gmra.mxu1 %vm365_vm0, %v3308_v28 }
0x1ada   : > { %3596 = vmatprep.mubr.bf16.mxu1 %v5578_v0  ;;  %3575 = vmatpush1.bf16.msra.mxu1 %v5422_v56 }
0x1adb   : > { %3576 = vmatprep.subr.bf16.mxu1 %v5427_v57 }
0x1ade   : > { %3577 = vmatpush1.bf16.msra.mxu1 %v5425_v58 }
0x1adf   : > { %3578 = vmatprep.subr.bf16.mxu1 %v5430_v59 }
0x1ae2   : > { %3579 = vmatpush1.bf16.msra.mxu1 %v5428_v60 }
0x1ae3   : > { %5220 = vmatprep.subr.mxu1 %v5581_v30 }
0x1b99   : > { %v3387_v29 = vpop.f32.mrf.mxu1 }
0x1b9a   : > { %v3388_v31 = vadd.f32 %v3387_v29, %v3313_v26 }
0x1b9b   : > { %v3389_v33 = vpop.f32.mrf.mxu1 }
0x1b9c   : > { %v3390_v34 = vadd.f32 %v3389_v33, %v3317_v27  ;;  %v3394_v35 = vmax.f32 %v3388_v31, 0.0 }
0x1b9d   : > { %v3391_v36 = vpop.f32.mrf.mxu1 }
0x1b9e   : > { %v3395_v37 = vmax.f32 %v3390_v34, 0.0  ;;  %v3396_v40 = vpack.c.bf16 %v3394_v35, %v3394_v35 }
0x1b9f   : > { %v3392_v38 = vpop.f32.mrf.mxu1 }
0x1ba0   : > { %v3397_v39 = vpack.c.bf16 %v3395_v37, %v3395_v37 }
0x1ba2   : > { %3460 = vmatprep.mubr.bf16.mxu0 %v3397_v39 }
0x1ba3   : > { %3461 = vmatmul.mubr.bf16.vlgmr.msra.gmra.mxu0 %v3396_v40 }
0x1ba4   : > { %5237 = vmatprep.mubr.msk.f32.mxu0 %vm5582_vm1, %v5581_v30 }
0x1c63   : > { %v3462_v42 = vpop.f32.mrf.mxu0 }
0x1c64   : > { %v3463_v43 = vadd.f32 %v4892_v41, %v3462_v42 }
0x1c65   : > { %v3464_v44 = vpop.f32.mrf.mxu0 }
0x1c66   : > { %v3468_v46 = vadd.f32 %v3463_v43, %v3307_v23 }
0x1c67   : > { %v3465_v47 = vpop.f32.mrf.mxu0 }
0x1c68   : > { %v3469_v48 = vsel %vm365_vm0, %v3468_v46, 0.0 }
0x1c69   : > { %v3466_v49 = vpop.f32.mrf.mxu0  ;;  %3470 = vadd.xlane.f32.xlu0 %v3469_v48 }
0x1cf2   : > { %v3471_v50 = vpop.xlane.xlu0 %3470 }
0x1cf3   : > { %v3472_v51 = vmul.f32 0.020833334, %v3471_v50 }
0x1cf5   : > { %v3473_v52 = vsub.f32 %v3468_v46, %v3472_v51  ;;  %v3528_v46 = vrot.slane %v6091_v11, %v5663_v13 }
0x1cf7   : > { %v3474_v53 = vmul.f32 %v3473_v52, %v3473_v52 }
0x1cf9   : > { %v3475_v54 = vsel %vm365_vm0, %v3474_v53, 0.0 }
0x1cfa   : > { %3476 = vadd.xlane.f32.xlu0 %v3475_v54 }
0x1d83   : > { %v3477_v61 = vpop.xlane.xlu0 %3476 }
0x1d84   : > { %v3478_v62 = vmul.f32 0.020833334, %v3477_v61 }
0x1d86   : > { %v3479_v45 = vadd.f32 1e-05, %v3478_v62 }
0x1d88   : > { %5510 = vrsqrt.f32 %v3479_v45 }
0x1d95   : > { %v5511_v63 = vpop.eup %5510 }
0x1d96   : > { %v3481_v2 = vmul.f32 %v5511_v63, %v3473_v52 }
0x1d98   : > { %v3482_v4 = vmul.f32 %v4893_v1, %v3481_v2 }
0x1d9a   : > { %v6081_v5 = vadd.f32 %v4894_v3, %v3482_v4 }
0x1d9c   : > { %v3519_v6 = vpack.c.bf16 %v6081_v5, %v6081_v5 }
0x1d9e   : > { %4945 = vmatmul.mubr.msk.bf16.vlgmr.msra.gmra.mxu1 %vm365_vm0, %v3519_v6 }
0x1d9f   : > { %5222 = vmatprep.mubr.msk.f32.mxu1 %vm5582_vm1, %v5581_v30 }
0x1e5e   : > { %v3598_v8 = vpop.f32.mrf.mxu1 }
0x1e5f   : > { %v3599_v9 = vadd.f32 %v3598_v8, %v3524_v7 }
0x1e60   : > { %v3600_v10 = vpop.f32.mrf.mxu1 }
0x1e61   : > { %3608 = vrot.lane.b32.xlu0 %v3599_v9, %s5586_s16  ;;  %3606 = vrot.lane.b32.xlu1 %v3599_v9, %s5584_s14  ;;  %v3601_v47 = vadd.f32 %v3600_v10, %v3528_v46 }
0x1e62   : > { %v3602_v14 = vpop.f32.mrf.mxu1 }
0x1e64   : > { %v3603_v15 = vpop.f32.mrf.mxu1 }
0x1e65   : > { %3610 = vrot.lane.b32.xlu1 %v3599_v9, %s5583_s13 }
0x1e69   : > { %3618 = vrot.lane.b32.xlu1 %v3599_v9, %s5585_s15 }
0x1ed3   : > { %v6099_v22 = vpop.permute.xlu0 %3608  ;;  %v3607_v16 = vpop.permute.xlu1 %3606 }
0x1ed4   : > { %3770 = vrot.lane.b32.xlu1 %v6099_v22, %s5585_s15  ;;  %3694 = vrot.lane.b32.xlu0 %v3607_v16, %s5585_s15 }
0x1ed7   : > { %v3611_v17 = vpop.permute.xlu1 %3610 }
0x1ed8   : > { %3846 = vrot.lane.b32.xlu0 %v3611_v17, %s5585_s15 }
0x1edb   : > { %v3619_v18 = vpop.permute.xlu1 %3618 }
0x1edc   : > { %5221 = vmatpush3.xpose.msk.msra.mxu1 %vm426_vm2, %v3619_v18 }
0x1edd   : > { %5225 = vmatprep.subr.mxu1 %v5581_v30 }
0x1edf   : > { %5223 = vmatmul.mubr.msk.f32.vlgmr.msra.gmra.mxu1 %vm426_vm2, %v3599_v9 }
0x1ee0   : > { %5227 = vmatprep.mubr.msk.f32.mxu1 %vm5582_vm1, %v5581_v30 }
0x1f46   : > { %v3695_v19 = vpop.permute.xlu0 %3694  ;;  %v3771_v20 = vpop.permute.xlu1 %3770 }
0x1f47   : > { %5226 = vmatpush3.xpose.msk.msra.mxu1 %vm426_vm2, %v3695_v19 }
0x1f48   : > { %5230 = vmatprep.subr.mxu1 %v5581_v30 }
0x1f4a   : > { %v3847_v23 = vpop.permute.xlu0 %3846  ;;  %5228 = vmatmul.mubr.msk.f32.vlgmr.msra.gmra.mxu1 %vm426_vm2, %v3607_v16 }
0x1f4b   : > { %5231 = vmatpush3.xpose.msk.msra.mxu1 %vm426_vm2, %v3771_v20  ;;  %5236 = vmatpush3.xpose.msk.msra.mxu0 %vm426_vm2, %v3847_v23 }
0x1f4c   : > { %5232 = vmatprep.mubr.msk.f32.mxu1 %vm5582_vm1, %v5581_v30  ;;  %5240 = vmatprep.subr.mxu1 %v5581_v30 }
0x1f4d   : > { %5245 = vmatprep.subr.mxu0 %v5581_v30 }
0x1f4e   : > { %5233 = vmatmul.mubr.msk.f32.vlgmr.msra.gmra.mxu1 %vm426_vm2, %v6099_v22  ;;  %5238 = vmatmul.mubr.msk.f32.vlgmr.msra.gmra.mxu0 %vm426_vm2, %v3611_v17 }
0x1f4f   : > { %5242 = vmatprep.mubr.msk.f32.mxu1 %vm5582_vm1, %v5581_v30  ;;  %5247 = vmatprep.mubr.msk.f32.mxu0 %vm5582_vm1, %v5581_v30 }
0x1f9f   : > { %v3690_v28 = vpop.f32.mrf.mxu1 }
0x1fa0   : > { %v3922_v21 = vmul.f32 0.28867513, %v3690_v28 }
0x1fa1   : > { %v5224_v24 = vpop.f32.mrf.mxu1 }
0x1fa2   : > { %v3926_v25 = vadd.f32 %v5999_v32, %v3922_v21  ;;  %v5431_v24 = vld [vmem:[#allocation2 + $0x280] ss:$28 sps:$4 sm:$0xff]  }
0x1fa4   : > { %v3930_v26 = vsel %vm737_vm3, %v3926_v25, -inf }
0x1fa5   : > { %3931 = vmax.xlane.f32.xlu1 %v3930_v26 }
0x200a   : > { %v3766_v27 = vpop.f32.mrf.mxu1 }
0x200b   : > { %v3923_v29 = vmul.f32 0.28867513, %v3766_v27  ;;  %v5432_v27 = vld [vmem:[#allocation2 + $0x248] ss:$28 sps:$4 sm:$0xff]  }
0x200c   : > { %v5229_v31 = vpop.f32.mrf.mxu1 }
0x200d   : > { %v3927_v33 = vadd.f32 %v5999_v32, %v3923_v29  ;;  %v5433_v29 = vld [vmem:[#allocation2 + $0x210] ss:$28 sps:$4 sm:$0xff]  }
0x200e   : > { %v3842_v34 = vpop.f32.mrf.mxu1  ;;  %v3918_v35 = vpop.f32.mrf.mxu0 }
0x200f   : > { %v3924_v36 = vmul.f32 0.28867513, %v3842_v34  ;;  %v3925_v37 = vmul.f32 0.28867513, %v3918_v35  ;;  %v3933_v38 = vsel %vm737_vm3, %v3927_v33, -inf }
0x2010   : > { %v5239_v39 = vpop.f32.mrf.mxu0  ;;  %3934 = vmax.xlane.f32.xlu0 %v3933_v38  ;;  %v5234_v40 = vpop.f32.mrf.mxu1 }
0x2011   : > { %v3929_v41 = vadd.f32 %v5999_v32, %v3925_v37  ;;  %v3928_v42 = vadd.f32 %v5999_v32, %v3924_v36 }
0x2013   : > { %v3939_v43 = vsel %vm737_vm3, %v3929_v41, -inf  ;;  %v3936_v44 = vsel %vm737_vm3, %v3928_v42, -inf }
0x2014   : > { %3940 = vmax.xlane.f32.xlu1 %v3939_v43  ;;  %3937 = vmax.xlane.f32.xlu0 %v3936_v44  ;;  %v4932_v44 = vld [vmem:[%s6259_s3 + $0x31] ss:$0 sm:$0xff] }
0x2025   : > { %3616 = vrot.lane.b32.xlu1 %v3601_v47, %s5583_s13 }
0x2029   : > { %4050 = vrot.lane.b32.xlu1 %v3607_v16, %s5587_s22 }
0x202a   : > { %3613 = vrot.lane.b32.xlu0 %v3601_v47, %s5586_s16 }
0x202e   : > { %3974 = vrot.lane.b32.xlu0 %v3599_v9, %s5587_s22  ;;  %v3932_v48 = vpop.xlane.xlu1 %3931 }
0x202f   : > { %v3942_v32 = vsub.f32 %v3926_v25, %v3932_v48 }
0x2031   : > { %v3946_v49 = vmul.f32 1.442695, %v3942_v32 }
0x2033   : > { %5512 = vpow2.f32 %v3946_v49 }
0x2040   : > { %v5513_v50 = vpop.eup %5512 }
0x2041   : > { %v3954_v51 = vsel %vm737_vm3, %v5513_v50, 0.0 }
0x204d   : > { %3955 = vadd.xlane.f32.xlu1 %v3954_v51 }
0x2099   : > { %v3935_v52 = vpop.xlane.xlu0 %3934 }
0x209a   : > { %v3943_v53 = vsub.f32 %v3927_v33, %v3935_v52 }
0x209c   : > { %v3948_v54 = vmul.f32 1.442695, %v3943_v53 }
0x209d   : > { %v3938_v55 = vpop.xlane.xlu0 %3937  ;;  %v3941_v56 = vpop.xlane.xlu1 %3940 }
0x209e   : > { %5514 = vpow2.f32 %v3948_v54  ;;  %v3944_v57 = vsub.f32 %v3928_v42, %v3938_v55  ;;  %v3945_v58 = vsub.f32 %v3929_v41, %v3941_v56 }
0x20a0   : > { %v3950_v59 = vmul.f32 1.442695, %v3944_v57  ;;  %v3952_v60 = vmul.f32 1.442695, %v3945_v58  ;;  %v5436_v57 = vld [vmem:[#allocation2 + $0x274] ss:$28 sps:$4 sm:$0xff]  }
0x20a1   : > { %v3614_v61 = vpop.permute.xlu0 %3613  ;;  %v3617_v62 = vpop.permute.xlu1 %3616  ;;  %v5434_v58 = vld [vmem:[#allocation2 + $0x270] ss:$28 sps:$4 sm:$0xff]  }
0x20a2   : > { %5516 = vpow2.f32 %v3950_v59  ;;  %v3615_v7 = vsel %vm420_vm4, %v6099_v22, %v3614_v61  ;;  %v5439_v59 = vld [vmem:[#allocation2 + $0x23c] ss:$28 sps:$4 sm:$0xff]   ;;  %v5442_v61 = vld [vmem:[#allocation2 + $0x204] ss:$28 sps:$4 sm:$0xff]  }
0x20a3   : > { %5518 = vpow2.f32 %v3952_v60  ;;  %v5437_v60 = vld [vmem:[#allocation2 + $0x238] ss:$28 sps:$4 sm:$0xff]  }
0x20a5   : > { %v3975_v45 = vpop.permute.xlu0 %3974  ;;  %v4051_v63 = vpop.permute.xlu1 %4050 }
0x20a6   : > { %5241 = vmatpush3.msra.mxu1 %v3975_v45  ;;  %5246 = vmatpush3.msra.mxu0 %v4051_v63  ;;  %v5445_v45 = vld [vmem:[#allocation2 + $0x27c] ss:$28 sps:$4 sm:$0xff]   ;;  %v5448_v63 = vld [vmem:[#allocation2 + $0x244] ss:$28 sps:$4 sm:$0xff]  }
0x20a7   : > { %5250 = vmatprep.subr.mxu1 %v5581_v30  ;;  %5255 = vmatprep.subr.mxu0 %v5581_v30 }
0x20ab   : > { %v5515_v1 = vpop.eup %5514 }
0x20ac   : > { %v3957_v2 = vsel %vm737_vm3, %v5515_v1, 0.0 }
0x20ad   : > { %3958 = vadd.xlane.f32.xlu0 %v3957_v2 }
0x20af   : > { %v5517_v3 = vpop.eup %5516 }
0x20b0   : > { %v5519_v4 = vpop.eup %5518  ;;  %v3960_v6 = vsel %vm737_vm3, %v5517_v3, 0.0 }
0x20b1   : > { %3961 = vadd.xlane.f32.xlu0 %v3960_v6  ;;  %v3963_v11 = vsel %vm737_vm3, %v5519_v4, 0.0 }
0x20b2   : > { %3964 = vadd.xlane.f32.xlu1 %v3963_v11  ;;  %v4933_v11 = vld [vmem:[%s6259_s3 + $0x32] ss:$0 sm:$0xff] }
0x20c3   : > { %4126 = vrot.lane.b32.xlu1 %v3615_v7, %s5587_s22 }
0x20c7   : > { %4202 = vrot.lane.b32.xlu0 %v3617_v62, %s5587_s22  ;;  %v5443_v62 = vld [vmem:[#allocation2 + $0x278] ss:$28 sps:$4 sm:$0xff]  }
0x20d6   : > { %v3956_v8 = vpop.xlane.xlu1 %3955 }
0x20d7   : > { %5520 = vrcp.f32 %v3956_v8  ;;  %v4934_v8 = vld [vmem:[%s6259_s3 + $0x33] ss:$0 sm:$0xff] }
0x20e4   : > { %v5521_v9 = vpop.eup %5520 }
0x20e5   : > { %v3970_v10 = vmul.f32 %v5521_v9, %v5513_v50 }
0x20e7   : > { %5243 = vmatmul.mubr.msk.f32.vlgmr.msra.gmra.mxu1 %vm737_vm3, %v3970_v10 }
0x20e8   : > { %5252 = vmatprep.mubr.msk.f32.mxu1 %vm5582_vm1, %v5581_v30 }
0x2136   : > { %v3959_v14 = vpop.xlane.xlu0 %3958 }
0x2137   : > { %5522 = vrcp.f32 %v3959_v14 }
0x213a   : > { %v3962_v15 = vpop.xlane.xlu0 %3961 }
0x213b   : > { %5524 = vrcp.f32 %v3962_v15  ;;  %v3965_v16 = vpop.xlane.xlu1 %3964  ;;  %v5451_v15 = vld [vmem:[#allocation2 + $0x20c] ss:$28 sps:$4 sm:$0xff]  }
0x213c   : > { %5526 = vrcp.f32 %v3965_v16  ;;  %v5449_v16 = vld [vmem:[#allocation2 + $0x208] ss:$28 sps:$4 sm:$0xff]  }
0x213e   : > { %v4203_v19 = vpop.permute.xlu0 %4202 }
0x213f   : > { %v4127_v22 = vpop.permute.xlu1 %4126 }
0x2140   : > { %5251 = vmatpush3.msra.mxu1 %v4127_v22  ;;  %v4935_v22 = vld [vmem:[%s6259_s3 + $0x34] ss:$8 sm:$0x3] }
0x2141   : > { %5260 = vmatprep.subr.bf16.mxu1 %v5581_v30 }
0x2144   : > { %v5523_v17 = vpop.eup %5522 }
0x2145   : > { %v3971_v18 = vmul.f32 %v5523_v17, %v5515_v1  ;;  %v5446_v1 = vld [vmem:[#allocation2 + $0x240] ss:$28 sps:$4 sm:$0xff]   ;;  %v4376_v17 = vrot.slane %v4935_v22, %v5661_v12 }
0x2147   : > { %5248 = vmatmul.mubr.msk.f32.vlgmr.msra.gmra.mxu0 %vm737_vm3, %v3971_v18  ;;  %v4380_v18 = vrot.slane %v4935_v22, %v5663_v13 }
0x2148   : > { %v5525_v20 = vpop.eup %5524  ;;  %5256 = vmatpush3.msra.mxu0 %v4203_v19  ;;  %5257 = vmatprep.mubr.msk.f32.mxu0 %vm5582_vm1, %v5581_v30 }
0x2149   : > { %v5527_v23 = vpop.eup %5526  ;;  %v3972_v28 = vmul.f32 %v5525_v20, %v5517_v3  ;;  %4426 = vmatprep.subr.bf16.mxu0 %v5436_v57 }
0x214a   : > { %v3973_v21 = vmul.f32 %v5527_v23, %v5519_v4 }
0x214b   : > { %5253 = vmatmul.mubr.msk.f32.vlgmr.msra.gmra.mxu1 %vm737_vm3, %v3972_v28 }
0x214c   : > { %5258 = vmatmul.mubr.msk.f32.vlgmr.msra.gmra.mxu0 %vm737_vm3, %v3973_v21  ;;  %5266 = vmatprep.mubr.msk.bf16.mxu1 %vm5582_vm1, %v5581_v30 }
0x214d   : > { %4448 = vmatprep.mubr.bf16.mxu0 %v5578_v0  ;;  %5261 = vmatpush3.bf16.msra.mxu1 %v5431_v24 }
0x214e   : > { %5262 = vmatprep.subr.bf16.mxu1 %v5581_v30  ;;  %4427 = vmatpush1.bf16.msra.mxu0 %v5434_v58 }
0x214f   : > { %4428 = vmatprep.subr.bf16.mxu0 %v5439_v59 }
0x2151   : > { %5263 = vmatpush3.bf16.msra.mxu1 %v5432_v27 }
0x2152   : > { %5264 = vmatprep.subr.bf16.mxu1 %v5581_v30  ;;  %4429 = vmatpush1.bf16.msra.mxu0 %v5437_v60 }
0x2153   : > { %4430 = vmatprep.subr.bf16.mxu0 %v5442_v61 }
0x2155   : > { %5265 = vmatpush3.bf16.msra.mxu1 %v5433_v29 }
0x2156   : > { %4501 = vmatprep.subr.bf16.mxu1 %v5445_v45 }
0x21a7   : > { %v4046_v25 = vpop.f32.mrf.mxu1 }
0x21a9   : > { %v5244_v26 = vpop.f32.mrf.mxu1 }
0x2207   : > { %v4122_v31 = vpop.f32.mrf.mxu0 }
0x2208   : > { %4279 = vrot.lane.b32.xlu1 %v4122_v31, %s5588_s23  ;;  %v4936_v31 = vld [vmem:[%s6259_s3 + $0x35] ss:$0 sm:$0xff] }
0x2209   : > { %v5249_v33 = vpop.f32.mrf.mxu0 }
0x220b   : > { %v4198_v34 = vpop.f32.mrf.mxu1 }
0x220c   : > { %v4274_v35 = vpop.f32.mrf.mxu0  ;;  %4283 = vrot.lane.b32.xlu0 %v4198_v34, %s5589_s24 }
0x220d   : > { %4287 = vrot.lane.b32.xlu1 %v4274_v35, %s5590_s25  ;;  %v5254_v0 = vpop.f32.mrf.mxu1 }
0x220e   : > { %v5259_v36 = vpop.f32.mrf.mxu0 }
0x227a   : > { %v4280_v37 = vpop.permute.xlu1 %4279 }
0x227b   : > { %v4290_v38 = vsel %vm426_vm2, %v4046_v25, %v4280_v37 }
0x227e   : > { %v4284_v39 = vpop.permute.xlu0 %4283 }
0x227f   : > { %v4291_v40 = vsel %vm1099_vm5, %v4290_v38, %v4284_v39  ;;  %v4288_v41 = vpop.permute.xlu1 %4287 }
0x2280   : > { %v4292_v42 = vsel %vm1101_vm6, %v4291_v40, %v4288_v41 }
0x2281   : > { %v4293_v43 = vpack.c.bf16 %v4292_v42, %v4292_v42  ;;  %v4561_v42 = vld [vmem:[%s6260_s4 + $0x30] sm:$0xff] }
0x2283   : > { %5267 = vmatmul.mubr.msk.bf16.vlgmr.msra.gmra.mxu1 %vm365_vm0, %v4293_v43  ;;  %v4560_v43 = vld [vmem:[%s6260_s4 + $0x28] sm:$0xff] }
0x2284   : > { %4502 = vmatpush1.bf16.xpose.msra.mxu1 %v5443_v62 }
0x2285   : > { %4503 = vmatprep.subr.bf16.mxu1 %v5448_v63  ;;  %v4565_v63 = vld [vmem:[%s6260_s4 + $0x50] sm:$0xff] }
0x228c   : > { %4504 = vmatpush1.bf16.xpose.msra.mxu1 %v5446_v1  ;;  %v4564_v1 = vld [vmem:[%s6260_s4 + $0x48] sm:$0xff] }
0x228d   : > { %4505 = vmatprep.subr.bf16.mxu1 %v5451_v15 }
0x2294   : > { %4506 = vmatpush1.bf16.xpose.msra.mxu1 %v5449_v16 }
0x2343   : > { %v4349_v46 = vpop.f32.mrf.mxu1 }
0x2344   : > { %v4350_v47 = vadd.f32 %v4932_v44, %v4349_v46  ;;  %v4559_v44 = vld [vmem:[%s6260_s4 + $0x20] sm:$0xff]  ;;  %v4558_v46 = vld [vmem:[%s6260_s4 + $0x18] sm:$0xff] }
0x2345   : > { %v5268_v48 = vpop.f32.mrf.mxu1 }
0x2346   : > { %v4355_v32 = vadd.f32 %v4350_v47, %v6081_v5  ;;  %v5440_v5 = vld [vmem:[#allocation2 + $0x200] ss:$28 sps:$4 sm:$0xff]   ;;  %v4557_v47 = vld [vmem:[%s6260_s4 + $0x10] sm:$0xff]  ;;  %v4556_v48 = vld [vmem:[%s6260_s4 + $0x8] sm:$0xff] }
0x2347   : > { %v4352_v49 = vpop.f32.mrf.mxu1  ;;  %4431 = vmatpush1.bf16.msra.mxu0 %v5440_v5 }
0x2348   : > { %v4356_v50 = vsel %vm365_vm0, %v4355_v32, 0.0  ;;  %5270 = vmatprep.subr.mxu0 %v5581_v30 }
0x2349   : > { %4357 = vadd.xlane.f32.xlu0 %v4356_v50  ;;  %v5269_v51 = vpop.f32.mrf.mxu1 }
0x23d2   : > { %v4358_v52 = vpop.xlane.xlu0 %4357 }
0x23d3   : > { %v4359_v53 = vmul.f32 0.020833334, %v4358_v52  ;;  %v4937_v52 = vld [vmem:[%s6259_s3 + $0x36] ss:$0 sm:$0xff] }
0x23d5   : > { %v4360_v54 = vsub.f32 %v4355_v32, %v4359_v53 }
0x23d7   : > { %v4361_v55 = vmul.f32 %v4360_v54, %v4360_v54 }
0x23d9   : > { %v4362_v56 = vsel %vm365_vm0, %v4361_v55, 0.0 }
0x23da   : > { %4363 = vadd.xlane.f32.xlu1 %v4362_v56 }
0x2463   : > { %v4364_v2 = vpop.xlane.xlu1 %4363 }
0x2464   : > { %v4365_v3 = vmul.f32 0.020833334, %v4364_v2  ;;  %v4563_v2 = vld [vmem:[%s6260_s4 + $0x40] sm:$0xff] }
0x2466   : > { %v4366_v4 = vadd.f32 1e-05, %v4365_v3  ;;  %v4562_v3 = vld [vmem:[%s6260_s4 + $0x38] sm:$0x1] }
0x2468   : > { %5528 = vrsqrt.f32 %v4366_v4 }
0x2475   : > { %v5529_v6 = vpop.eup %5528 }
0x2476   : > { %v4368_v7 = vmul.f32 %v5529_v6, %v4360_v54  ;;  %v4938_v54 = vld [vmem:[%s6259_s3 + $0x37] ss:$0 sm:$0xff] }
0x2478   : > { %v4369_v9 = vmul.f32 %v4933_v11, %v4368_v7 }
0x247a   : > { %v4370_v10 = vadd.f32 %v4934_v8, %v4369_v9  ;;  %v4566_v8 = vld [vmem:[%s6260_s4 + $0x39] sm:$0x1] }
0x247c   : > { %v4371_v14 = vpack.c.bf16 %v4370_v10, %v4370_v10 }
0x247e   : > { %4968 = vmatmul.mubr.msk.bf16.vlgmr.msra.gmra.mxu0 %vm365_vm0, %v4371_v14 }
0x247f   : > { %5282 = vmatprep.mubr.msk.f32.mxu0 %vm5582_vm1, %v5581_v30  ;;  %5271 = vmatpush3.msra.mxu0 %v4561_v42 }
0x2480   : > { %5272 = vmatprep.subr.mxu0 %v5581_v30 }
0x2481   : > { %5273 = vmatpush3.msra.mxu0 %v4560_v43 }
0x2482   : > { %5274 = vmatprep.subr.mxu0 %v5581_v30 }
0x2483   : > { %5275 = vmatpush3.msra.mxu0 %v4559_v44 }
0x2484   : > { %5276 = vmatprep.subr.mxu0 %v5581_v30 }
0x2485   : > { %5277 = vmatpush3.msra.mxu0 %v4558_v46 }
0x2486   : > { %5278 = vmatprep.subr.mxu0 %v5581_v30 }
0x2487   : > { %5279 = vmatpush3.msra.mxu0 %v4557_v47 }
0x2488   : > { %5280 = vmatprep.subr.mxu0 %v5581_v30 }
0x2489   : > { %5281 = vmatpush3.msra.mxu0 %v4556_v48 }
0x248a   : > { %5285 = vmatprep.subr.mxu0 %v5581_v30 }
0x253e   : > { %v4450_v19 = vpop.f32.mrf.mxu0 }
0x253f   : > { %v4451_v20 = vadd.f32 %v4450_v19, %v4376_v17 }
0x2540   : > { %v4452_v23 = vpop.f32.mrf.mxu0 }
0x2541   : > { %v4453_v28 = vadd.f32 %v4452_v23, %v4380_v18  ;;  %v4457_v21 = vmax.f32 %v4451_v20, 0.0 }
0x2542   : > { %v4454_v24 = vpop.f32.mrf.mxu0 }
0x2543   : > { %v4458_v25 = vmax.f32 %v4453_v28, 0.0  ;;  %v4459_v29 = vpack.c.bf16 %v4457_v21, %v4457_v21 }
0x2544   : > { %v4455_v26 = vpop.f32.mrf.mxu0 }
0x2545   : > { %v4460_v27 = vpack.c.bf16 %v4458_v25, %v4458_v25 }
0x2547   : > { %4523 = vmatprep.mubr.bf16.mxu1 %v4460_v27 }
0x2548   : > { %4524 = vmatmul.mubr.bf16.vlgmr.msra.gmra.mxu1 %v4459_v29 }
0x2608   : > { %v4525_v33 = vpop.f32.mrf.mxu1 }
0x2609   : > { %v4526_v12 = vadd.f32 %v4936_v31, %v4525_v33 }
0x260a   : > { %v4527_v34 = vpop.f32.mrf.mxu1 }
0x260b   : > { %v4531_v13 = vadd.f32 %v4526_v12, %v4370_v10 }
0x260c   : > { %v4528_v35 = vpop.f32.mrf.mxu1 }
0x260d   : > { %v4532_v0 = vsel %vm365_vm0, %v4531_v13, 0.0 }
0x260e   : > { %v4529_v36 = vpop.f32.mrf.mxu1  ;;  %4533 = vadd.xlane.f32.xlu0 %v4532_v0 }
0x2697   : > { %v4534_v37 = vpop.xlane.xlu0 %4533 }
0x2698   : > { %v4535_v38 = vmul.f32 0.020833334, %v4534_v37 }
0x269a   : > { %v4536_v39 = vsub.f32 %v4531_v13, %v4535_v38 }
0x269c   : > { %v4537_v40 = vmul.f32 %v4536_v39, %v4536_v39 }
0x269e   : > { %v4538_v41 = vsel %vm365_vm0, %v4537_v40, 0.0 }
0x269f   : > { %4539 = vadd.xlane.f32.xlu0 %v4538_v41 }
0x2728   : > { %v4540_v32 = vpop.xlane.xlu0 %4539 }
0x2729   : > { %v4541_v49 = vmul.f32 0.020833334, %v4540_v32 }
0x272b   : > { %v4542_v50 = vadd.f32 1e-05, %v4541_v49 }
0x272d   : > { %5530 = vrsqrt.f32 %v4542_v50 }
0x273a   : > { %v5531_v51 = vpop.eup %5530 }
0x273b   : > { %v4544_v53 = vmul.f32 %v5531_v51, %v4536_v39 }
0x273d   : > { %v4545_v55 = vmul.f32 %v4937_v52, %v4544_v53 }
0x273f   : > { %v4546_v56 = vadd.f32 %v4938_v54, %v4545_v55 }
0x2741   : > { %v4547_v57 = vsel %vm365_vm0, %v4546_v56, 0.0 }
0x2742   : > { %v4548_v58 = vrot.slane %v4547_v57, 4 }
0x2744   : > { %v4549_v59 = vadd.f32 %v4548_v58, %v4547_v57 }
0x2746   : > { %v4550_v60 = vrot.slane %v4549_v59, 2 }
0x2748   : > { %v4551_v61 = vadd.f32 %v4550_v60, %v4549_v59 }
0x274a   : > { %v4552_v5 = vrot.slane %v4551_v61, 1 }
0x274c   : > { %v4553_v62 = vadd.f32 %v4552_v5, %v4551_v61 }
0x274e   : > { %v4555_v45 = vmul.f32 0.125, %v4553_v62 }
0x2750   : > { %5283 = vmatmul.mubr.msk.f32.vlgmr.msra.gmra.mxu0 %vm365_vm0, %v4555_v45 }
0x2751   : > { %5291 = vmatprep.mubr.msk.f32.mxu0 %vm5582_vm1, %v5581_v30  ;;  %5286 = vmatpush3.msra.mxu0 %v4565_v63 }
0x2752   : > { %5287 = vmatprep.subr.mxu0 %v5581_v30 }
0x2753   : > { %5288 = vmatpush3.msra.mxu0 %v4564_v1 }
0x2754   : > { %5289 = vmatprep.subr.mxu0 %v5581_v30 }
0x2755   : > { %5290 = vmatpush3.msra.mxu0 %v4563_v2 }
0x2810   : > { %v4636_v4 = vpop.f32.mrf.mxu0 }
0x2811   : > { %v4637_v6 = vadd.f32 %v4636_v4, %v4562_v3 }
0x2812   : > { %v5284_v11 = vpop.f32.mrf.mxu0 }
0x2813   : > { %v4640_v7 = vmax.f32 %v4637_v6, 0.0 }
0x2815   : > { %5292 = vmatmul.mubr.msk.f32.vlgmr.msra.gmra.mxu0 %vm1099_vm5, %v4640_v7 }
0x28d5   : > { %v4710_v9 = vpop.f32.mrf.mxu0 }
0x28d6   : > { %v4711_v10 = vadd.f32 %v4710_v9, %v4566_v8 }
0x28d7   : > { %v5293_v14 = vpop.f32.mrf.mxu0 }
0x28d8   : > { %v4714_v30 = vsub.f32 0.0, %v4711_v10 }
0x28da   : > { %v4715_v15 = vmul.f32 1.442695, %v4714_v30 }
0x28dc   : > { %5532 = vpow2.f32 %v4715_v15 }
0x28e9   : > { %v5533_v16 = vpop.eup %5532 }
0x28ea   : > { %v4717_v22 = vadd.f32 1.0, %v5533_v16 }
0x28ec   : > { %5534 = vrcp.f32 %v4717_v22 }
0x28f9   : > { %v5535_v17 = vpop.eup %5534 }
0x28fa   : > { %4721 = vst.msk [vmem:[%s249_s12] sm:$0x1] %vm4720_vm7, %v5535_v17 }
0x28fb PF: > { %s16_s18 = sadd.s32 1, %s5573_s18  }
0x28fc   : > { %p13_p1 = scmp.ge.s32.totalorder %s16_s18, 4  }
0x28fe   :  { %15 = sbr.rel (!%p13_p1) target bundleno = 1 (0x1), region = 88 }
0x2903   :  { %4739 = vsyncpa [#allocation3], 1 }
0x2904   :  { %4741 = vsyncpa [#allocation3 + $0x1], 1 }

</bundles_post_ra>
